<compile_context>
chip_gen: v7x
topology: tpu7x:2x2x1
jax: 0.10.0
libtpu: 0.0.40
codegen_flags: <defaults>
</compile_context>

<pallas_src>
import functools

import jax
import jax.numpy as jnp
from jax.experimental import pallas as pl
from jax.experimental.pallas import tpu as pltpu

FT = 11      # true channel count
C_PAD = 16   # channel count padded for sublane alignment (k*16 % 8 == 0)
KT = 19      # temporal kernel size


# ----------------------------------------------------------------------------
# Fused Pallas kernel
# ----------------------------------------------------------------------------
def _tcn_fused_kernel(tp_ref, x_ref, w5_ref, b5_ref, w6_ref, b6_ref,
                      w7_ref, b7_ref, w8_ref, b8_ref, wl_ref,
                      o_ref, cur_ref, res_ref, col_ref, *, n, t, classes):
    """Whole TCN forward in VMEM.

    tp_ref:  (1, N*T) int32     time-within-batch index per lane (pad mask)
    x_ref:   (C_PAD, N*T)       input, channel-padded, batch-major time lanes
    wX_ref:  (C_PAD, KT*C_PAD)  conv weight, BN-scale folded, tap-major flatten
    bX_ref:  (C_PAD, 1)         BN shift (eval-mode fold), padded rows zero
    wl_ref:  (classes, C_PAD, N*T) linear weight (flatten(1) order, batch-tiled)
    o_ref:   (classes, N)       sigmoid output (host transposes back)
    cur_ref: (C_PAD, N*T)       scratch: residual stream
    res_ref: (C_PAD, N*T)       scratch: res branch
    col_ref: (KT*C_PAD, N*T)    scratch: im2col buffer
    """
    c_pad = C_PAD
    nt = n * t

    # Residual stream: one aligned full-block copy (input already pre-laid-out).
    cur_ref[...] = x_ref[...]

    # Per-lane "time within batch element" index, broadcast once (hoisted).
    tpos = jnp.broadcast_to(tp_ref[...], (c_pad, nt))

    def conv_bn_relu(src_ref, dst_ref, w_ref, b_ref, dil):
        # NOTE: src_ref may alias dst_ref (conv6/conv8 calls).  This is safe
        # only because src is fully loaded into registers and col_ref is fully
        # built BEFORE dst_ref is written.  Keep that invariant if this conv is
        # ever tiled / streamed.
        src = src_ref[...]                                  # (C_PAD, N*T), single load
        zeros = jnp.zeros_like(src)
        for k in range(KT):
            shift = (KT - 1 - k) * dil                      # causal left shift of tap k
            if shift == 0:
                tap = src
            elif shift >= t:
                tap = zeros                                 # tap entirely in pad region
            else:
                rolled = pltpu.roll(src, shift, axis=1)     # lane rotate (XLU slot)
                tap = jnp.where(tpos >= shift, rolled, 0.0)  # zero pad/cross-batch lanes
            # Aligned store: sublane offset k*16, full N*T lanes.
            col_ref[k * c_pad:(k + 1) * c_pad, :] = tap
        # One MXU matmul per conv: (C_PAD, KT*C_PAD) @ (KT*C_PAD, N*T).
        y = jnp.dot(w_ref[...], col_ref[...], preferred_element_type=jnp.float32)
        dst_ref[...] = jnp.maximum(y + b_ref[...], 0.0)     # BN shift + ReLU epilogue

    # block 3 (dilation 4)
    conv_bn_relu(cur_ref, res_ref, w5_ref, b5_ref, 4)
    conv_bn_relu(res_ref, res_ref, w6_ref, b6_ref, 4)
    cur_ref[...] = jnp.maximum(cur_ref[...] + res_ref[...], 0.0)
    # block 4 (dilation 8)
    conv_bn_relu(cur_ref, res_ref, w7_ref, b7_ref, 8)
    conv_bn_relu(res_ref, res_ref, w8_ref, b8_ref, 8)
    cur_ref[...] = jnp.maximum(cur_ref[...] + res_ref[...], 0.0)

    # Head: logits[cls, i] = sum_{ch,tt} wl[cls, ch, tt] * x_i[ch, tt]
    # All batch elements at once: per class one VPU multiply + one sublane
    # reduce, then one lane-block reduce per batch element.
    xcur = cur_ref[...]
    partials = []
    for cls in range(classes):
        prod = wl_ref[cls] * xcur                           # (C_PAD, N*T)
        partials.append(jnp.sum(prod, axis=0, keepdims=True))   # (1, N*T)
    per_lane = jnp.concatenate(partials, axis=0)            # (classes, N*T)
    cols = [jnp.sum(per_lane[:, i * t:(i + 1) * t], axis=1, keepdims=True)
            for i in range(n)]
    logits = jnp.concatenate(cols, axis=1)                  # (classes, N)
    o_ref[...] = 1.0 / (1.0 + jnp.exp(-logits))


# ----------------------------------------------------------------------------
# Wrapper
# ----------------------------------------------------------------------------
def forward(x, p):
    n, c, t = x.shape
    assert c == FT
    classes = p["wl"].shape[0]

    def fold(wname, sname):
        # BN scale folded into the conv weight, tap-major flatten, channel-padded:
        #   w2[co, k*C_PAD + ci] = w[co, ci, k] * scale[co]   (matches im2col rows)
        w = p[wname] * p[sname].reshape(c, 1, 1)            # (Cout, Cin, KT)
        w = jnp.transpose(w, (0, 2, 1))                     # (Cout, KT, Cin)
        wp = jnp.zeros((C_PAD, KT, C_PAD), jnp.float32).at[:c, :, :c].set(w)
        return wp.reshape(C_PAD, KT * C_PAD)

    def pad_bias(bname):
        return jnp.zeros((C_PAD, 1), jnp.float32).at[:c, :].set(p[bname])

    w5, w6, w7, w8 = fold("w5", "s5"), fold("w6", "s6"), fold("w7", "s7"), fold("w8", "s8")
    b5, b6, b7, b8 = pad_bias("b5"), pad_bias("b6"), pad_bias("b7"), pad_bias("b8")

    # Linear weight: flatten(1) order f = ch*T + tt; channel-pad and batch-tile.
    wl3 = p["wl"].reshape(classes, c, t)
    wl_p = jnp.zeros((classes, C_PAD, t), jnp.float32).at[:, :c, :].set(wl3)
    wl_tiled = jnp.tile(wl_p, (1, 1, n))                    # (classes, C_PAD, N*T)

    # Pre-layout the input as (C_PAD, N*T) so the kernel ingests it with one
    # aligned block copy.
    x_cnt = jnp.zeros((C_PAD, n * t), jnp.float32).at[:c, :].set(
        jnp.transpose(x, (1, 0, 2)).reshape(c, n * t))
    timepos = jnp.tile(jnp.arange(t, dtype=jnp.int32), n).reshape(1, n * t)

    flops = 4 * 2 * C_PAD * (KT * C_PAD) * n * t + 2 * classes * C_PAD * n * t
    bytes_accessed = 4 * (x_cnt.size + 4 * (w5.size + b5.size)
                          + wl_tiled.size + timepos.size + classes * n)

    kernel = functools.partial(_tcn_fused_kernel, n=n, t=t, classes=classes)
    out_t = pl.pallas_call(
        kernel,
        out_shape=jax.ShapeDtypeStruct((classes, n), jnp.float32),
        scratch_shapes=[
            pltpu.VMEM((C_PAD, n * t), jnp.float32),        # residual stream
            pltpu.VMEM((C_PAD, n * t), jnp.float32),        # res branch
            pltpu.VMEM((KT * C_PAD, n * t), jnp.float32),   # im2col buffer
        ],
        cost_estimate=pl.CostEstimate(flops=flops,
                                      transcendentals=classes * n,
                                      bytes_accessed=bytes_accessed),
    )(timepos, x_cnt, w5, b5, w6, b6, w7, b7, w8, b8, wl_tiled)
    return out_t.T                                          # (N, classes)


# ----------------------------------------------------------------------------
# Pure-JAX reference (independent math path, uses raw conv weights + BN fold)
# ----------------------------------------------------------------------------
def _ref_conv_bn_relu(x, w, scale, shift, dilation):
    n, c, t = x.shape
    pad = (KT - 1) * dilation
    xp = jnp.pad(x, ((0, 0), (0, 0), (pad, 0)))
    acc = jnp.zeros((n, c, t), jnp.float32)
    for k in range(KT):
        xs = xp[:, :, k * dilation: k * dilation + t]
        acc = acc + jnp.einsum("oc,nct->not", w[:, :, k], xs)
    y = acc * scale[None, :, :] + shift[None, :, :]
    return jnp.maximum(y, 0.0)


def ref_forward(x, p):
    res = _ref_conv_bn_relu(x, p["w5"], p["s5"], p["b5"], 4)
    res = _ref_conv_bn_relu(res, p["w6"], p["s6"], p["b6"], 4)
    x = jnp.maximum(x + res, 0.0)
    res = _ref_conv_bn_relu(x, p["w7"], p["s7"], p["b7"], 8)
    res = _ref_conv_bn_relu(res, p["w8"], p["s8"], p["b8"], 8)
    x = jnp.maximum(x + res, 0.0)
    xf = x.reshape(x.shape[0], -1)
    logits = xf @ p["wl"].T
    return 1.0 / (1.0 + jnp.exp(-logits))


# ----------------------------------------------------------------------------
# Deterministic parameter init
# ----------------------------------------------------------------------------
def make_params(key, classes, t):
    keys = jax.random.split(key, 24)
    ki = iter(range(24))
    p = {}
    w_scale = 1.0 / jnp.sqrt(FT * KT)                       # keep activations O(1)
    eps = 1e-5
    for name in ("5", "6", "7", "8"):
        p["w" + name] = (w_scale *
                         jax.random.normal(keys[next(ki)], (FT, FT, KT), jnp.float32))
        gamma = 1.0 + 0.1 * jax.random.normal(keys[next(ki)], (FT,), jnp.float32)
        beta = 0.1 * jax.random.normal(keys[next(ki)], (FT,), jnp.float32)
        mean = 0.1 * jax.random.normal(keys[next(ki)], (FT,), jnp.float32)
        var = 0.9 + 0.2 * jnp.abs(jax.random.normal(keys[next(ki)], (FT,), jnp.float32))
        scale = gamma / jnp.sqrt(var + eps)                 # BN eval-mode fold
        shift = beta - mean * scale
        p["s" + name] = scale.reshape(FT, 1)
        p["b" + name] = shift.reshape(FT, 1)
    feat = FT * t
    p["wl"] = (1.0 / jnp.sqrt(feat)) * jax.random.normal(
        keys[next(ki)], (classes, feat), jnp.float32)
    return p


# ----------------------------------------------------------------------------
if __name__ == "__main__":
    N, T, CLASSES = 2, 128, 4                               # small shapes (original T=1000)
    key = jax.random.PRNGKey(0)
    k_params, k_x = jax.random.split(key)
    params = make_params(k_params, CLASSES, T)
    x = jax.random.normal(k_x, (N, FT, T), jnp.float32)

    out = jax.block_until_ready(forward(x, params))
    ref = jax.block_until_ready(ref_forward(x, params))

    assert out.shape == (N, CLASSES), out.shape
    assert bool(jnp.all(jnp.isfinite(out)))
    assert bool(jnp.allclose(out, ref, atol=5e-2)), "Pallas / reference mismatch"
    print("KERNEL_OK")
</pallas_src>

<mosaic_0001>
module attributes {stable_mosaic.version = 11 : i64} {
  func.func @_tcn_fused_kernel(%arg0: memref<1x256xi32, #tpu.memory_space<vmem>>, %arg1: memref<16x256xf32, #tpu.memory_space<vmem>>, %arg2: memref<16x304xf32, #tpu.memory_space<vmem>>, %arg3: memref<16x1xf32, #tpu.memory_space<vmem>>, %arg4: memref<16x304xf32, #tpu.memory_space<vmem>>, %arg5: memref<16x1xf32, #tpu.memory_space<vmem>>, %arg6: memref<16x304xf32, #tpu.memory_space<vmem>>, %arg7: memref<16x1xf32, #tpu.memory_space<vmem>>, %arg8: memref<16x304xf32, #tpu.memory_space<vmem>>, %arg9: memref<16x1xf32, #tpu.memory_space<vmem>>, %arg10: memref<4x16x256xf32, #tpu.memory_space<vmem>>, %arg11: memref<4x2xf32, #tpu.memory_space<vmem>>, %arg12: memref<16x256xf32, #tpu.memory_space<vmem>>, %arg13: memref<16x256xf32, #tpu.memory_space<vmem>>, %arg14: memref<304x256xf32, #tpu.memory_space<vmem>>) attributes {dimension_semantics = [], scalar_prefetch = 0 : i64, scratch_operands = 3 : i64, tpu.core_type = #tpu.core_type<tc>} {
    %c0 = arith.constant 0 : index
    %c0_0 = arith.constant 0 : index
    %0 = vector.load %arg1[%c0, %c0_0] : memref<16x256xf32, #tpu.memory_space<vmem>>, vector<16x256xf32>
    %c0_1 = arith.constant 0 : index
    %c0_2 = arith.constant 0 : index
    %1 = vector.load %arg12[%c0_1, %c0_2] : memref<16x256xf32, #tpu.memory_space<vmem>>, vector<16x256xf32>
    tpu.vector_store %arg12[%c0_1, %c0_2], %0 {strides = array<i32>} : memref<16x256xf32, #tpu.memory_space<vmem>>, vector<16x256xf32>,
    %c0_3 = arith.constant 0 : index
    %c0_4 = arith.constant 0 : index
    %2 = vector.load %arg0[%c0_3, %c0_4] : memref<1x256xi32, #tpu.memory_space<vmem>>, vector<1x256xi32>
    %3 = vector.shape_cast %2 : vector<1x256xi32> to vector<1x256xi32>
    %4 = vector.broadcast %3 : vector<1x256xi32> to vector<16x256xi32>
    %c0_5 = arith.constant 0 : index
    %c0_6 = arith.constant 0 : index
    %5 = vector.load %arg12[%c0_5, %c0_6] : memref<16x256xf32, #tpu.memory_space<vmem>>, vector<16x256xf32>
    %c72_i32 = arith.constant 72 : i32
    %6 = tpu.dynamic_rotate %5 by %c72_i32 dim 1 : vector<16x256xf32>, i32 -> vector<16x256xf32>
    %c72_i32_7 = arith.constant 72 : i32
    %7 = vector.broadcast %c72_i32_7 : i32 to vector<16x256xi32>
    %8 = arith.cmpi sge, %4, %7 : vector<16x256xi32>
    %cst = arith.constant 0.000000e+00 : f32
    %9 = vector.broadcast %cst : f32 to vector<16x256xf32>
    %10 = arith.select %8, %6, %9 : vector<16x256xi1>, vector<16x256xf32>
    %c0_8 = arith.constant 0 : index
    %c0_9 = arith.constant 0 : index
    %11 = vector.load %arg14[%c0_8, %c0_9] : memref<304x256xf32, #tpu.memory_space<vmem>>, vector<16x256xf32>
    tpu.vector_store %arg14[%c0_8, %c0_9], %10 {strides = array<i32>} : memref<304x256xf32, #tpu.memory_space<vmem>>, vector<16x256xf32>,
    %c68_i32 = arith.constant 68 : i32
    %12 = tpu.dynamic_rotate %5 by %c68_i32 dim 1 : vector<16x256xf32>, i32 -> vector<16x256xf32>
    %c68_i32_10 = arith.constant 68 : i32
    %13 = vector.broadcast %c68_i32_10 : i32 to vector<16x256xi32>
    %14 = arith.cmpi sge, %4, %13 : vector<16x256xi32>
    %cst_11 = arith.constant 0.000000e+00 : f32
    %15 = vector.broadcast %cst_11 : f32 to vector<16x256xf32>
    %16 = arith.select %14, %12, %15 : vector<16x256xi1>, vector<16x256xf32>
    %c16 = arith.constant 16 : index
    %c0_12 = arith.constant 0 : index
    %17 = vector.load %arg14[%c16, %c0_12] : memref<304x256xf32, #tpu.memory_space<vmem>>, vector<16x256xf32>
    tpu.vector_store %arg14[%c16, %c0_12], %16 {strides = array<i32>} : memref<304x256xf32, #tpu.memory_space<vmem>>, vector<16x256xf32>,
    %c64_i32 = arith.constant 64 : i32
    %18 = tpu.dynamic_rotate %5 by %c64_i32 dim 1 : vector<16x256xf32>, i32 -> vector<16x256xf32>
    %c64_i32_13 = arith.constant 64 : i32
    %19 = vector.broadcast %c64_i32_13 : i32 to vector<16x256xi32>
    %20 = arith.cmpi sge, %4, %19 : vector<16x256xi32>
    %cst_14 = arith.constant 0.000000e+00 : f32
    %21 = vector.broadcast %cst_14 : f32 to vector<16x256xf32>
    %22 = arith.select %20, %18, %21 : vector<16x256xi1>, vector<16x256xf32>
    %c32 = arith.constant 32 : index
    %c0_15 = arith.constant 0 : index
    %23 = vector.load %arg14[%c32, %c0_15] : memref<304x256xf32, #tpu.memory_space<vmem>>, vector<16x256xf32>
    tpu.vector_store %arg14[%c32, %c0_15], %22 {strides = array<i32>} : memref<304x256xf32, #tpu.memory_space<vmem>>, vector<16x256xf32>,
    %c60_i32 = arith.constant 60 : i32
    %24 = tpu.dynamic_rotate %5 by %c60_i32 dim 1 : vector<16x256xf32>, i32 -> vector<16x256xf32>
    %c60_i32_16 = arith.constant 60 : i32
    %25 = vector.broadcast %c60_i32_16 : i32 to vector<16x256xi32>
    %26 = arith.cmpi sge, %4, %25 : vector<16x256xi32>
    %cst_17 = arith.constant 0.000000e+00 : f32
    %27 = vector.broadcast %cst_17 : f32 to vector<16x256xf32>
    %28 = arith.select %26, %24, %27 : vector<16x256xi1>, vector<16x256xf32>
    %c48 = arith.constant 48 : index
    %c0_18 = arith.constant 0 : index
    %29 = vector.load %arg14[%c48, %c0_18] : memref<304x256xf32, #tpu.memory_space<vmem>>, vector<16x256xf32>
    tpu.vector_store %arg14[%c48, %c0_18], %28 {strides = array<i32>} : memref<304x256xf32, #tpu.memory_space<vmem>>, vector<16x256xf32>,
    %c56_i32 = arith.constant 56 : i32
    %30 = tpu.dynamic_rotate %5 by %c56_i32 dim 1 : vector<16x256xf32>, i32 -> vector<16x256xf32>
    %c56_i32_19 = arith.constant 56 : i32
    %31 = vector.broadcast %c56_i32_19 : i32 to vector<16x256xi32>
    %32 = arith.cmpi sge, %4, %31 : vector<16x256xi32>
    %cst_20 = arith.constant 0.000000e+00 : f32
    %33 = vector.broadcast %cst_20 : f32 to vector<16x256xf32>
    %34 = arith.select %32, %30, %33 : vector<16x256xi1>, vector<16x256xf32>
    %c64 = arith.constant 64 : index
    %c0_21 = arith.constant 0 : index
    %35 = vector.load %arg14[%c64, %c0_21] : memref<304x256xf32, #tpu.memory_space<vmem>>, vector<16x256xf32>
    tpu.vector_store %arg14[%c64, %c0_21], %34 {strides = array<i32>} : memref<304x256xf32, #tpu.memory_space<vmem>>, vector<16x256xf32>,
    %c52_i32 = arith.constant 52 : i32
    %36 = tpu.dynamic_rotate %5 by %c52_i32 dim 1 : vector<16x256xf32>, i32 -> vector<16x256xf32>
    %c52_i32_22 = arith.constant 52 : i32
    %37 = vector.broadcast %c52_i32_22 : i32 to vector<16x256xi32>
    %38 = arith.cmpi sge, %4, %37 : vector<16x256xi32>
    %cst_23 = arith.constant 0.000000e+00 : f32
    %39 = vector.broadcast %cst_23 : f32 to vector<16x256xf32>
    %40 = arith.select %38, %36, %39 : vector<16x256xi1>, vector<16x256xf32>
    %c80 = arith.constant 80 : index
    %c0_24 = arith.constant 0 : index
    %41 = vector.load %arg14[%c80, %c0_24] : memref<304x256xf32, #tpu.memory_space<vmem>>, vector<16x256xf32>
    tpu.vector_store %arg14[%c80, %c0_24], %40 {strides = array<i32>} : memref<304x256xf32, #tpu.memory_space<vmem>>, vector<16x256xf32>,
    %c48_i32 = arith.constant 48 : i32
    %42 = tpu.dynamic_rotate %5 by %c48_i32 dim 1 : vector<16x256xf32>, i32 -> vector<16x256xf32>
    %c48_i32_25 = arith.constant 48 : i32
    %43 = vector.broadcast %c48_i32_25 : i32 to vector<16x256xi32>
    %44 = arith.cmpi sge, %4, %43 : vector<16x256xi32>
    %cst_26 = arith.constant 0.000000e+00 : f32
    %45 = vector.broadcast %cst_26 : f32 to vector<16x256xf32>
    %46 = arith.select %44, %42, %45 : vector<16x256xi1>, vector<16x256xf32>
    %c96 = arith.constant 96 : index
    %c0_27 = arith.constant 0 : index
    %47 = vector.load %arg14[%c96, %c0_27] : memref<304x256xf32, #tpu.memory_space<vmem>>, vector<16x256xf32>
    tpu.vector_store %arg14[%c96, %c0_27], %46 {strides = array<i32>} : memref<304x256xf32, #tpu.memory_space<vmem>>, vector<16x256xf32>,
    %c44_i32 = arith.constant 44 : i32
    %48 = tpu.dynamic_rotate %5 by %c44_i32 dim 1 : vector<16x256xf32>, i32 -> vector<16x256xf32>
    %c44_i32_28 = arith.constant 44 : i32
    %49 = vector.broadcast %c44_i32_28 : i32 to vector<16x256xi32>
    %50 = arith.cmpi sge, %4, %49 : vector<16x256xi32>
    %cst_29 = arith.constant 0.000000e+00 : f32
    %51 = vector.broadcast %cst_29 : f32 to vector<16x256xf32>
    %52 = arith.select %50, %48, %51 : vector<16x256xi1>, vector<16x256xf32>
    %c112 = arith.constant 112 : index
    %c0_30 = arith.constant 0 : index
    %53 = vector.load %arg14[%c112, %c0_30] : memref<304x256xf32, #tpu.memory_space<vmem>>, vector<16x256xf32>
    tpu.vector_store %arg14[%c112, %c0_30], %52 {strides = array<i32>} : memref<304x256xf32, #tpu.memory_space<vmem>>, vector<16x256xf32>,
    %c40_i32 = arith.constant 40 : i32
    %54 = tpu.dynamic_rotate %5 by %c40_i32 dim 1 : vector<16x256xf32>, i32 -> vector<16x256xf32>
    %c40_i32_31 = arith.constant 40 : i32
    %55 = vector.broadcast %c40_i32_31 : i32 to vector<16x256xi32>
    %56 = arith.cmpi sge, %4, %55 : vector<16x256xi32>
    %cst_32 = arith.constant 0.000000e+00 : f32
    %57 = vector.broadcast %cst_32 : f32 to vector<16x256xf32>
    %58 = arith.select %56, %54, %57 : vector<16x256xi1>, vector<16x256xf32>
    %c128 = arith.constant 128 : index
    %c0_33 = arith.constant 0 : index
    %59 = vector.load %arg14[%c128, %c0_33] : memref<304x256xf32, #tpu.memory_space<vmem>>, vector<16x256xf32>
    tpu.vector_store %arg14[%c128, %c0_33], %58 {strides = array<i32>} : memref<304x256xf32, #tpu.memory_space<vmem>>, vector<16x256xf32>,
    %c36_i32 = arith.constant 36 : i32
    %60 = tpu.dynamic_rotate %5 by %c36_i32 dim 1 : vector<16x256xf32>, i32 -> vector<16x256xf32>
    %c36_i32_34 = arith.constant 36 : i32
    %61 = vector.broadcast %c36_i32_34 : i32 to vector<16x256xi32>
    %62 = arith.cmpi sge, %4, %61 : vector<16x256xi32>
    %cst_35 = arith.constant 0.000000e+00 : f32
    %63 = vector.broadcast %cst_35 : f32 to vector<16x256xf32>
    %64 = arith.select %62, %60, %63 : vector<16x256xi1>, vector<16x256xf32>
    %c144 = arith.constant 144 : index
    %c0_36 = arith.constant 0 : index
    %65 = vector.load %arg14[%c144, %c0_36] : memref<304x256xf32, #tpu.memory_space<vmem>>, vector<16x256xf32>
    tpu.vector_store %arg14[%c144, %c0_36], %64 {strides = array<i32>} : memref<304x256xf32, #tpu.memory_space<vmem>>, vector<16x256xf32>,
    %c32_i32 = arith.constant 32 : i32
    %66 = tpu.dynamic_rotate %5 by %c32_i32 dim 1 : vector<16x256xf32>, i32 -> vector<16x256xf32>
    %c32_i32_37 = arith.constant 32 : i32
    %67 = vector.broadcast %c32_i32_37 : i32 to vector<16x256xi32>
    %68 = arith.cmpi sge, %4, %67 : vector<16x256xi32>
    %cst_38 = arith.constant 0.000000e+00 : f32
    %69 = vector.broadcast %cst_38 : f32 to vector<16x256xf32>
    %70 = arith.select %68, %66, %69 : vector<16x256xi1>, vector<16x256xf32>
    %c160 = arith.constant 160 : index
    %c0_39 = arith.constant 0 : index
    %71 = vector.load %arg14[%c160, %c0_39] : memref<304x256xf32, #tpu.memory_space<vmem>>, vector<16x256xf32>
    tpu.vector_store %arg14[%c160, %c0_39], %70 {strides = array<i32>} : memref<304x256xf32, #tpu.memory_space<vmem>>, vector<16x256xf32>,
    %c28_i32 = arith.constant 28 : i32
    %72 = tpu.dynamic_rotate %5 by %c28_i32 dim 1 : vector<16x256xf32>, i32 -> vector<16x256xf32>
    %c28_i32_40 = arith.constant 28 : i32
    %73 = vector.broadcast %c28_i32_40 : i32 to vector<16x256xi32>
    %74 = arith.cmpi sge, %4, %73 : vector<16x256xi32>
    %cst_41 = arith.constant 0.000000e+00 : f32
    %75 = vector.broadcast %cst_41 : f32 to vector<16x256xf32>
    %76 = arith.select %74, %72, %75 : vector<16x256xi1>, vector<16x256xf32>
    %c176 = arith.constant 176 : index
    %c0_42 = arith.constant 0 : index
    %77 = vector.load %arg14[%c176, %c0_42] : memref<304x256xf32, #tpu.memory_space<vmem>>, vector<16x256xf32>
    tpu.vector_store %arg14[%c176, %c0_42], %76 {strides = array<i32>} : memref<304x256xf32, #tpu.memory_space<vmem>>, vector<16x256xf32>,
    %c24_i32 = arith.constant 24 : i32
    %78 = tpu.dynamic_rotate %5 by %c24_i32 dim 1 : vector<16x256xf32>, i32 -> vector<16x256xf32>
    %c24_i32_43 = arith.constant 24 : i32
    %79 = vector.broadcast %c24_i32_43 : i32 to vector<16x256xi32>
    %80 = arith.cmpi sge, %4, %79 : vector<16x256xi32>
    %cst_44 = arith.constant 0.000000e+00 : f32
    %81 = vector.broadcast %cst_44 : f32 to vector<16x256xf32>
    %82 = arith.select %80, %78, %81 : vector<16x256xi1>, vector<16x256xf32>
    %c192 = arith.constant 192 : index
    %c0_45 = arith.constant 0 : index
    %83 = vector.load %arg14[%c192, %c0_45] : memref<304x256xf32, #tpu.memory_space<vmem>>, vector<16x256xf32>
    tpu.vector_store %arg14[%c192, %c0_45], %82 {strides = array<i32>} : memref<304x256xf32, #tpu.memory_space<vmem>>, vector<16x256xf32>,
    %c20_i32 = arith.constant 20 : i32
    %84 = tpu.dynamic_rotate %5 by %c20_i32 dim 1 : vector<16x256xf32>, i32 -> vector<16x256xf32>
    %c20_i32_46 = arith.constant 20 : i32
    %85 = vector.broadcast %c20_i32_46 : i32 to vector<16x256xi32>
    %86 = arith.cmpi sge, %4, %85 : vector<16x256xi32>
    %cst_47 = arith.constant 0.000000e+00 : f32
    %87 = vector.broadcast %cst_47 : f32 to vector<16x256xf32>
    %88 = arith.select %86, %84, %87 : vector<16x256xi1>, vector<16x256xf32>
    %c208 = arith.constant 208 : index
    %c0_48 = arith.constant 0 : index
    %89 = vector.load %arg14[%c208, %c0_48] : memref<304x256xf32, #tpu.memory_space<vmem>>, vector<16x256xf32>
    tpu.vector_store %arg14[%c208, %c0_48], %88 {strides = array<i32>} : memref<304x256xf32, #tpu.memory_space<vmem>>, vector<16x256xf32>,
    %c16_i32 = arith.constant 16 : i32
    %90 = tpu.dynamic_rotate %5 by %c16_i32 dim 1 : vector<16x256xf32>, i32 -> vector<16x256xf32>
    %c16_i32_49 = arith.constant 16 : i32
    %91 = vector.broadcast %c16_i32_49 : i32 to vector<16x256xi32>
    %92 = arith.cmpi sge, %4, %91 : vector<16x256xi32>
    %cst_50 = arith.constant 0.000000e+00 : f32
    %93 = vector.broadcast %cst_50 : f32 to vector<16x256xf32>
    %94 = arith.select %92, %90, %93 : vector<16x256xi1>, vector<16x256xf32>
    %c224 = arith.constant 224 : index
    %c0_51 = arith.constant 0 : index
    %95 = vector.load %arg14[%c224, %c0_51] : memref<304x256xf32, #tpu.memory_space<vmem>>, vector<16x256xf32>
    tpu.vector_store %arg14[%c224, %c0_51], %94 {strides = array<i32>} : memref<304x256xf32, #tpu.memory_space<vmem>>, vector<16x256xf32>,
    %c12_i32 = arith.constant 12 : i32
    %96 = tpu.dynamic_rotate %5 by %c12_i32 dim 1 : vector<16x256xf32>, i32 -> vector<16x256xf32>
    %c12_i32_52 = arith.constant 12 : i32
    %97 = vector.broadcast %c12_i32_52 : i32 to vector<16x256xi32>
    %98 = arith.cmpi sge, %4, %97 : vector<16x256xi32>
    %cst_53 = arith.constant 0.000000e+00 : f32
    %99 = vector.broadcast %cst_53 : f32 to vector<16x256xf32>
    %100 = arith.select %98, %96, %99 : vector<16x256xi1>, vector<16x256xf32>
    %c240 = arith.constant 240 : index
    %c0_54 = arith.constant 0 : index
    %101 = vector.load %arg14[%c240, %c0_54] : memref<304x256xf32, #tpu.memory_space<vmem>>, vector<16x256xf32>
    tpu.vector_store %arg14[%c240, %c0_54], %100 {strides = array<i32>} : memref<304x256xf32, #tpu.memory_space<vmem>>, vector<16x256xf32>,
    %c8_i32 = arith.constant 8 : i32
    %102 = tpu.dynamic_rotate %5 by %c8_i32 dim 1 : vector<16x256xf32>, i32 -> vector<16x256xf32>
    %c8_i32_55 = arith.constant 8 : i32
    %103 = vector.broadcast %c8_i32_55 : i32 to vector<16x256xi32>
    %104 = arith.cmpi sge, %4, %103 : vector<16x256xi32>
    %cst_56 = arith.constant 0.000000e+00 : f32
    %105 = vector.broadcast %cst_56 : f32 to vector<16x256xf32>
    %106 = arith.select %104, %102, %105 : vector<16x256xi1>, vector<16x256xf32>
    %c256 = arith.constant 256 : index
    %c0_57 = arith.constant 0 : index
    %107 = vector.load %arg14[%c256, %c0_57] : memref<304x256xf32, #tpu.memory_space<vmem>>, vector<16x256xf32>
    tpu.vector_store %arg14[%c256, %c0_57], %106 {strides = array<i32>} : memref<304x256xf32, #tpu.memory_space<vmem>>, vector<16x256xf32>,
    %c4_i32 = arith.constant 4 : i32
    %108 = tpu.dynamic_rotate %5 by %c4_i32 dim 1 : vector<16x256xf32>, i32 -> vector<16x256xf32>
    %c4_i32_58 = arith.constant 4 : i32
    %109 = vector.broadcast %c4_i32_58 : i32 to vector<16x256xi32>
    %110 = arith.cmpi sge, %4, %109 : vector<16x256xi32>
    %cst_59 = arith.constant 0.000000e+00 : f32
    %111 = vector.broadcast %cst_59 : f32 to vector<16x256xf32>
    %112 = arith.select %110, %108, %111 : vector<16x256xi1>, vector<16x256xf32>
    %c272 = arith.constant 272 : index
    %c0_60 = arith.constant 0 : index
    %113 = vector.load %arg14[%c272, %c0_60] : memref<304x256xf32, #tpu.memory_space<vmem>>, vector<16x256xf32>
    tpu.vector_store %arg14[%c272, %c0_60], %112 {strides = array<i32>} : memref<304x256xf32, #tpu.memory_space<vmem>>, vector<16x256xf32>,
    %c288 = arith.constant 288 : index
    %c0_61 = arith.constant 0 : index
    %114 = vector.load %arg14[%c288, %c0_61] : memref<304x256xf32, #tpu.memory_space<vmem>>, vector<16x256xf32>
    tpu.vector_store %arg14[%c288, %c0_61], %5 {strides = array<i32>} : memref<304x256xf32, #tpu.memory_space<vmem>>, vector<16x256xf32>,
    %c0_62 = arith.constant 0 : index
    %c0_63 = arith.constant 0 : index
    %115 = vector.load %arg2[%c0_62, %c0_63] : memref<16x304xf32, #tpu.memory_space<vmem>>, vector<16x304xf32>
    %c0_64 = arith.constant 0 : index
    %c0_65 = arith.constant 0 : index
    %116 = vector.load %arg14[%c0_64, %c0_65] : memref<304x256xf32, #tpu.memory_space<vmem>>, vector<304x256xf32>
    %cst_66 = arith.constant dense<0.000000e+00> : vector<16x256xf32>
    %117 = tpu.matmul %115, %116, %cst_66 {dimension_numbers = #tpu.dot_dimension_numbers<[1], [0], [0], [1], [0, 0, 1, 1], [], []>} : vector<16x304xf32>, vector<304x256xf32>, vector<16x256xf32> -> vector<16x256xf32>
    %c0_67 = arith.constant 0 : index
    %c0_68 = arith.constant 0 : index
    %118 = vector.load %arg3[%c0_67, %c0_68] : memref<16x1xf32, #tpu.memory_space<vmem>>, vector<16x1xf32>
    %119 = vector.broadcast %118 : vector<16x1xf32> to vector<16x256xf32>
    %120 = arith.addf %117, %119 : vector<16x256xf32>
    %cst_69 = arith.constant 0.000000e+00 : f32
    %121 = vector.broadcast %cst_69 : f32 to vector<16x256xf32>
    %122 = arith.maximumf %120, %121 : vector<16x256xf32>
    %c0_70 = arith.constant 0 : index
    %c0_71 = arith.constant 0 : index
    %123 = vector.load %arg13[%c0_70, %c0_71] : memref<16x256xf32, #tpu.memory_space<vmem>>, vector<16x256xf32>
    tpu.vector_store %arg13[%c0_70, %c0_71], %122 {strides = array<i32>} : memref<16x256xf32, #tpu.memory_space<vmem>>, vector<16x256xf32>,
    %c0_72 = arith.constant 0 : index
    %c0_73 = arith.constant 0 : index
    %124 = vector.load %arg13[%c0_72, %c0_73] : memref<16x256xf32, #tpu.memory_space<vmem>>, vector<16x256xf32>
    %c72_i32_74 = arith.constant 72 : i32
    %125 = tpu.dynamic_rotate %124 by %c72_i32_74 dim 1 : vector<16x256xf32>, i32 -> vector<16x256xf32>
    %c72_i32_75 = arith.constant 72 : i32
    %126 = vector.broadcast %c72_i32_75 : i32 to vector<16x256xi32>
    %127 = arith.cmpi sge, %4, %126 : vector<16x256xi32>
    %cst_76 = arith.constant 0.000000e+00 : f32
    %128 = vector.broadcast %cst_76 : f32 to vector<16x256xf32>
    %129 = arith.select %127, %125, %128 : vector<16x256xi1>, vector<16x256xf32>
    %c0_77 = arith.constant 0 : index
    %c0_78 = arith.constant 0 : index
    %130 = vector.load %arg14[%c0_77, %c0_78] : memref<304x256xf32, #tpu.memory_space<vmem>>, vector<16x256xf32>
    tpu.vector_store %arg14[%c0_77, %c0_78], %129 {strides = array<i32>} : memref<304x256xf32, #tpu.memory_space<vmem>>, vector<16x256xf32>,
    %c68_i32_79 = arith.constant 68 : i32
    %131 = tpu.dynamic_rotate %124 by %c68_i32_79 dim 1 : vector<16x256xf32>, i32 -> vector<16x256xf32>
    %c68_i32_80 = arith.constant 68 : i32
    %132 = vector.broadcast %c68_i32_80 : i32 to vector<16x256xi32>
    %133 = arith.cmpi sge, %4, %132 : vector<16x256xi32>
    %cst_81 = arith.constant 0.000000e+00 : f32
    %134 = vector.broadcast %cst_81 : f32 to vector<16x256xf32>
    %135 = arith.select %133, %131, %134 : vector<16x256xi1>, vector<16x256xf32>
    %c16_82 = arith.constant 16 : index
    %c0_83 = arith.constant 0 : index
    %136 = vector.load %arg14[%c16_82, %c0_83] : memref<304x256xf32, #tpu.memory_space<vmem>>, vector<16x256xf32>
    tpu.vector_store %arg14[%c16_82, %c0_83], %135 {strides = array<i32>} : memref<304x256xf32, #tpu.memory_space<vmem>>, vector<16x256xf32>,
    %c64_i32_84 = arith.constant 64 : i32
    %137 = tpu.dynamic_rotate %124 by %c64_i32_84 dim 1 : vector<16x256xf32>, i32 -> vector<16x256xf32>
    %c64_i32_85 = arith.constant 64 : i32
    %138 = vector.broadcast %c64_i32_85 : i32 to vector<16x256xi32>
    %139 = arith.cmpi sge, %4, %138 : vector<16x256xi32>
    %cst_86 = arith.constant 0.000000e+00 : f32
    %140 = vector.broadcast %cst_86 : f32 to vector<16x256xf32>
    %141 = arith.select %139, %137, %140 : vector<16x256xi1>, vector<16x256xf32>
    %c32_87 = arith.constant 32 : index
    %c0_88 = arith.constant 0 : index
    %142 = vector.load %arg14[%c32_87, %c0_88] : memref<304x256xf32, #tpu.memory_space<vmem>>, vector<16x256xf32>
    tpu.vector_store %arg14[%c32_87, %c0_88], %141 {strides = array<i32>} : memref<304x256xf32, #tpu.memory_space<vmem>>, vector<16x256xf32>,
    %c60_i32_89 = arith.constant 60 : i32
    %143 = tpu.dynamic_rotate %124 by %c60_i32_89 dim 1 : vector<16x256xf32>, i32 -> vector<16x256xf32>
    %c60_i32_90 = arith.constant 60 : i32
    %144 = vector.broadcast %c60_i32_90 : i32 to vector<16x256xi32>
    %145 = arith.cmpi sge, %4, %144 : vector<16x256xi32>
    %cst_91 = arith.constant 0.000000e+00 : f32
    %146 = vector.broadcast %cst_91 : f32 to vector<16x256xf32>
    %147 = arith.select %145, %143, %146 : vector<16x256xi1>, vector<16x256xf32>
    %c48_92 = arith.constant 48 : index
    %c0_93 = arith.constant 0 : index
    %148 = vector.load %arg14[%c48_92, %c0_93] : memref<304x256xf32, #tpu.memory_space<vmem>>, vector<16x256xf32>
    tpu.vector_store %arg14[%c48_92, %c0_93], %147 {strides = array<i32>} : memref<304x256xf32, #tpu.memory_space<vmem>>, vector<16x256xf32>,
    %c56_i32_94 = arith.constant 56 : i32
    %149 = tpu.dynamic_rotate %124 by %c56_i32_94 dim 1 : vector<16x256xf32>, i32 -> vector<16x256xf32>
    %c56_i32_95 = arith.constant 56 : i32
    %150 = vector.broadcast %c56_i32_95 : i32 to vector<16x256xi32>
    %151 = arith.cmpi sge, %4, %150 : vector<16x256xi32>
    %cst_96 = arith.constant 0.000000e+00 : f32
    %152 = vector.broadcast %cst_96 : f32 to vector<16x256xf32>
    %153 = arith.select %151, %149, %152 : vector<16x256xi1>, vector<16x256xf32>
    %c64_97 = arith.constant 64 : index
    %c0_98 = arith.constant 0 : index
    %154 = vector.load %arg14[%c64_97, %c0_98] : memref<304x256xf32, #tpu.memory_space<vmem>>, vector<16x256xf32>
    tpu.vector_store %arg14[%c64_97, %c0_98], %153 {strides = array<i32>} : memref<304x256xf32, #tpu.memory_space<vmem>>, vector<16x256xf32>,
    %c52_i32_99 = arith.constant 52 : i32
    %155 = tpu.dynamic_rotate %124 by %c52_i32_99 dim 1 : vector<16x256xf32>, i32 -> vector<16x256xf32>
    %c52_i32_100 = arith.constant 52 : i32
    %156 = vector.broadcast %c52_i32_100 : i32 to vector<16x256xi32>
    %157 = arith.cmpi sge, %4, %156 : vector<16x256xi32>
    %cst_101 = arith.constant 0.000000e+00 : f32
    %158 = vector.broadcast %cst_101 : f32 to vector<16x256xf32>
    %159 = arith.select %157, %155, %158 : vector<16x256xi1>, vector<16x256xf32>
    %c80_102 = arith.constant 80 : index
    %c0_103 = arith.constant 0 : index
    %160 = vector.load %arg14[%c80_102, %c0_103] : memref<304x256xf32, #tpu.memory_space<vmem>>, vector<16x256xf32>
    tpu.vector_store %arg14[%c80_102, %c0_103], %159 {strides = array<i32>} : memref<304x256xf32, #tpu.memory_space<vmem>>, vector<16x256xf32>,
    %c48_i32_104 = arith.constant 48 : i32
    %161 = tpu.dynamic_rotate %124 by %c48_i32_104 dim 1 : vector<16x256xf32>, i32 -> vector<16x256xf32>
    %c48_i32_105 = arith.constant 48 : i32
    %162 = vector.broadcast %c48_i32_105 : i32 to vector<16x256xi32>
    %163 = arith.cmpi sge, %4, %162 : vector<16x256xi32>
    %cst_106 = arith.constant 0.000000e+00 : f32
    %164 = vector.broadcast %cst_106 : f32 to vector<16x256xf32>
    %165 = arith.select %163, %161, %164 : vector<16x256xi1>, vector<16x256xf32>
    %c96_107 = arith.constant 96 : index
    %c0_108 = arith.constant 0 : index
    %166 = vector.load %arg14[%c96_107, %c0_108] : memref<304x256xf32, #tpu.memory_space<vmem>>, vector<16x256xf32>
    tpu.vector_store %arg14[%c96_107, %c0_108], %165 {strides = array<i32>} : memref<304x256xf32, #tpu.memory_space<vmem>>, vector<16x256xf32>,
    %c44_i32_109 = arith.constant 44 : i32
    %167 = tpu.dynamic_rotate %124 by %c44_i32_109 dim 1 : vector<16x256xf32>, i32 -> vector<16x256xf32>
    %c44_i32_110 = arith.constant 44 : i32
    %168 = vector.broadcast %c44_i32_110 : i32 to vector<16x256xi32>
    %169 = arith.cmpi sge, %4, %168 : vector<16x256xi32>
    %cst_111 = arith.constant 0.000000e+00 : f32
    %170 = vector.broadcast %cst_111 : f32 to vector<16x256xf32>
    %171 = arith.select %169, %167, %170 : vector<16x256xi1>, vector<16x256xf32>
    %c112_112 = arith.constant 112 : index
    %c0_113 = arith.constant 0 : index
    %172 = vector.load %arg14[%c112_112, %c0_113] : memref<304x256xf32, #tpu.memory_space<vmem>>, vector<16x256xf32>
    tpu.vector_store %arg14[%c112_112, %c0_113], %171 {strides = array<i32>} : memref<304x256xf32, #tpu.memory_space<vmem>>, vector<16x256xf32>,
    %c40_i32_114 = arith.constant 40 : i32
    %173 = tpu.dynamic_rotate %124 by %c40_i32_114 dim 1 : vector<16x256xf32>, i32 -> vector<16x256xf32>
    %c40_i32_115 = arith.constant 40 : i32
    %174 = vector.broadcast %c40_i32_115 : i32 to vector<16x256xi32>
    %175 = arith.cmpi sge, %4, %174 : vector<16x256xi32>
    %cst_116 = arith.constant 0.000000e+00 : f32
    %176 = vector.broadcast %cst_116 : f32 to vector<16x256xf32>
    %177 = arith.select %175, %173, %176 : vector<16x256xi1>, vector<16x256xf32>
    %c128_117 = arith.constant 128 : index
    %c0_118 = arith.constant 0 : index
    %178 = vector.load %arg14[%c128_117, %c0_118] : memref<304x256xf32, #tpu.memory_space<vmem>>, vector<16x256xf32>
    tpu.vector_store %arg14[%c128_117, %c0_118], %177 {strides = array<i32>} : memref<304x256xf32, #tpu.memory_space<vmem>>, vector<16x256xf32>,
    %c36_i32_119 = arith.constant 36 : i32
    %179 = tpu.dynamic_rotate %124 by %c36_i32_119 dim 1 : vector<16x256xf32>, i32 -> vector<16x256xf32>
    %c36_i32_120 = arith.constant 36 : i32
    %180 = vector.broadcast %c36_i32_120 : i32 to vector<16x256xi32>
    %181 = arith.cmpi sge, %4, %180 : vector<16x256xi32>
    %cst_121 = arith.constant 0.000000e+00 : f32
    %182 = vector.broadcast %cst_121 : f32 to vector<16x256xf32>
    %183 = arith.select %181, %179, %182 : vector<16x256xi1>, vector<16x256xf32>
    %c144_122 = arith.constant 144 : index
    %c0_123 = arith.constant 0 : index
    %184 = vector.load %arg14[%c144_122, %c0_123] : memref<304x256xf32, #tpu.memory_space<vmem>>, vector<16x256xf32>
    tpu.vector_store %arg14[%c144_122, %c0_123], %183 {strides = array<i32>} : memref<304x256xf32, #tpu.memory_space<vmem>>, vector<16x256xf32>,
    %c32_i32_124 = arith.constant 32 : i32
    %185 = tpu.dynamic_rotate %124 by %c32_i32_124 dim 1 : vector<16x256xf32>, i32 -> vector<16x256xf32>
    %c32_i32_125 = arith.constant 32 : i32
    %186 = vector.broadcast %c32_i32_125 : i32 to vector<16x256xi32>
    %187 = arith.cmpi sge, %4, %186 : vector<16x256xi32>
    %cst_126 = arith.constant 0.000000e+00 : f32
    %188 = vector.broadcast %cst_126 : f32 to vector<16x256xf32>
    %189 = arith.select %187, %185, %188 : vector<16x256xi1>, vector<16x256xf32>
    %c160_127 = arith.constant 160 : index
    %c0_128 = arith.constant 0 : index
    %190 = vector.load %arg14[%c160_127, %c0_128] : memref<304x256xf32, #tpu.memory_space<vmem>>, vector<16x256xf32>
    tpu.vector_store %arg14[%c160_127, %c0_128], %189 {strides = array<i32>} : memref<304x256xf32, #tpu.memory_space<vmem>>, vector<16x256xf32>,
    %c28_i32_129 = arith.constant 28 : i32
    %191 = tpu.dynamic_rotate %124 by %c28_i32_129 dim 1 : vector<16x256xf32>, i32 -> vector<16x256xf32>
    %c28_i32_130 = arith.constant 28 : i32
    %192 = vector.broadcast %c28_i32_130 : i32 to vector<16x256xi32>
    %193 = arith.cmpi sge, %4, %192 : vector<16x256xi32>
    %cst_131 = arith.constant 0.000000e+00 : f32
    %194 = vector.broadcast %cst_131 : f32 to vector<16x256xf32>
    %195 = arith.select %193, %191, %194 : vector<16x256xi1>, vector<16x256xf32>
    %c176_132 = arith.constant 176 : index
    %c0_133 = arith.constant 0 : index
    %196 = vector.load %arg14[%c176_132, %c0_133] : memref<304x256xf32, #tpu.memory_space<vmem>>, vector<16x256xf32>
    tpu.vector_store %arg14[%c176_132, %c0_133], %195 {strides = array<i32>} : memref<304x256xf32, #tpu.memory_space<vmem>>, vector<16x256xf32>,
    %c24_i32_134 = arith.constant 24 : i32
    %197 = tpu.dynamic_rotate %124 by %c24_i32_134 dim 1 : vector<16x256xf32>, i32 -> vector<16x256xf32>
    %c24_i32_135 = arith.constant 24 : i32
    %198 = vector.broadcast %c24_i32_135 : i32 to vector<16x256xi32>
    %199 = arith.cmpi sge, %4, %198 : vector<16x256xi32>
    %cst_136 = arith.constant 0.000000e+00 : f32
    %200 = vector.broadcast %cst_136 : f32 to vector<16x256xf32>
    %201 = arith.select %199, %197, %200 : vector<16x256xi1>, vector<16x256xf32>
    %c192_137 = arith.constant 192 : index
    %c0_138 = arith.constant 0 : index
    %202 = vector.load %arg14[%c192_137, %c0_138] : memref<304x256xf32, #tpu.memory_space<vmem>>, vector<16x256xf32>
    tpu.vector_store %arg14[%c192_137, %c0_138], %201 {strides = array<i32>} : memref<304x256xf32, #tpu.memory_space<vmem>>, vector<16x256xf32>,
    %c20_i32_139 = arith.constant 20 : i32
    %203 = tpu.dynamic_rotate %124 by %c20_i32_139 dim 1 : vector<16x256xf32>, i32 -> vector<16x256xf32>
    %c20_i32_140 = arith.constant 20 : i32
    %204 = vector.broadcast %c20_i32_140 : i32 to vector<16x256xi32>
    %205 = arith.cmpi sge, %4, %204 : vector<16x256xi32>
    %cst_141 = arith.constant 0.000000e+00 : f32
    %206 = vector.broadcast %cst_141 : f32 to vector<16x256xf32>
    %207 = arith.select %205, %203, %206 : vector<16x256xi1>, vector<16x256xf32>
    %c208_142 = arith.constant 208 : index
    %c0_143 = arith.constant 0 : index
    %208 = vector.load %arg14[%c208_142, %c0_143] : memref<304x256xf32, #tpu.memory_space<vmem>>, vector<16x256xf32>
    tpu.vector_store %arg14[%c208_142, %c0_143], %207 {strides = array<i32>} : memref<304x256xf32, #tpu.memory_space<vmem>>, vector<16x256xf32>,
    %c16_i32_144 = arith.constant 16 : i32
    %209 = tpu.dynamic_rotate %124 by %c16_i32_144 dim 1 : vector<16x256xf32>, i32 -> vector<16x256xf32>
    %c16_i32_145 = arith.constant 16 : i32
    %210 = vector.broadcast %c16_i32_145 : i32 to vector<16x256xi32>
    %211 = arith.cmpi sge, %4, %210 : vector<16x256xi32>
    %cst_146 = arith.constant 0.000000e+00 : f32
    %212 = vector.broadcast %cst_146 : f32 to vector<16x256xf32>
    %213 = arith.select %211, %209, %212 : vector<16x256xi1>, vector<16x256xf32>
    %c224_147 = arith.constant 224 : index
    %c0_148 = arith.constant 0 : index
    %214 = vector.load %arg14[%c224_147, %c0_148] : memref<304x256xf32, #tpu.memory_space<vmem>>, vector<16x256xf32>
    tpu.vector_store %arg14[%c224_147, %c0_148], %213 {strides = array<i32>} : memref<304x256xf32, #tpu.memory_space<vmem>>, vector<16x256xf32>,
    %c12_i32_149 = arith.constant 12 : i32
    %215 = tpu.dynamic_rotate %124 by %c12_i32_149 dim 1 : vector<16x256xf32>, i32 -> vector<16x256xf32>
    %c12_i32_150 = arith.constant 12 : i32
    %216 = vector.broadcast %c12_i32_150 : i32 to vector<16x256xi32>
    %217 = arith.cmpi sge, %4, %216 : vector<16x256xi32>
    %cst_151 = arith.constant 0.000000e+00 : f32
    %218 = vector.broadcast %cst_151 : f32 to vector<16x256xf32>
    %219 = arith.select %217, %215, %218 : vector<16x256xi1>, vector<16x256xf32>
    %c240_152 = arith.constant 240 : index
    %c0_153 = arith.constant 0 : index
    %220 = vector.load %arg14[%c240_152, %c0_153] : memref<304x256xf32, #tpu.memory_space<vmem>>, vector<16x256xf32>
    tpu.vector_store %arg14[%c240_152, %c0_153], %219 {strides = array<i32>} : memref<304x256xf32, #tpu.memory_space<vmem>>, vector<16x256xf32>,
    %c8_i32_154 = arith.constant 8 : i32
    %221 = tpu.dynamic_rotate %124 by %c8_i32_154 dim 1 : vector<16x256xf32>, i32 -> vector<16x256xf32>
    %c8_i32_155 = arith.constant 8 : i32
    %222 = vector.broadcast %c8_i32_155 : i32 to vector<16x256xi32>
    %223 = arith.cmpi sge, %4, %222 : vector<16x256xi32>
    %cst_156 = arith.constant 0.000000e+00 : f32
    %224 = vector.broadcast %cst_156 : f32 to vector<16x256xf32>
    %225 = arith.select %223, %221, %224 : vector<16x256xi1>, vector<16x256xf32>
    %c256_157 = arith.constant 256 : index
    %c0_158 = arith.constant 0 : index
    %226 = vector.load %arg14[%c256_157, %c0_158] : memref<304x256xf32, #tpu.memory_space<vmem>>, vector<16x256xf32>
    tpu.vector_store %arg14[%c256_157, %c0_158], %225 {strides = array<i32>} : memref<304x256xf32, #tpu.memory_space<vmem>>, vector<16x256xf32>,
    %c4_i32_159 = arith.constant 4 : i32
    %227 = tpu.dynamic_rotate %124 by %c4_i32_159 dim 1 : vector<16x256xf32>, i32 -> vector<16x256xf32>
    %c4_i32_160 = arith.constant 4 : i32
    %228 = vector.broadcast %c4_i32_160 : i32 to vector<16x256xi32>
    %229 = arith.cmpi sge, %4, %228 : vector<16x256xi32>
    %cst_161 = arith.constant 0.000000e+00 : f32
    %230 = vector.broadcast %cst_161 : f32 to vector<16x256xf32>
    %231 = arith.select %229, %227, %230 : vector<16x256xi1>, vector<16x256xf32>
    %c272_162 = arith.constant 272 : index
    %c0_163 = arith.constant 0 : index
    %232 = vector.load %arg14[%c272_162, %c0_163] : memref<304x256xf32, #tpu.memory_space<vmem>>, vector<16x256xf32>
    tpu.vector_store %arg14[%c272_162, %c0_163], %231 {strides = array<i32>} : memref<304x256xf32, #tpu.memory_space<vmem>>, vector<16x256xf32>,
    %c288_164 = arith.constant 288 : index
    %c0_165 = arith.constant 0 : index
    %233 = vector.load %arg14[%c288_164, %c0_165] : memref<304x256xf32, #tpu.memory_space<vmem>>, vector<16x256xf32>
    tpu.vector_store %arg14[%c288_164, %c0_165], %124 {strides = array<i32>} : memref<304x256xf32, #tpu.memory_space<vmem>>, vector<16x256xf32>,
    %c0_166 = arith.constant 0 : index
    %c0_167 = arith.constant 0 : index
    %234 = vector.load %arg4[%c0_166, %c0_167] : memref<16x304xf32, #tpu.memory_space<vmem>>, vector<16x304xf32>
    %c0_168 = arith.constant 0 : index
    %c0_169 = arith.constant 0 : index
    %235 = vector.load %arg14[%c0_168, %c0_169] : memref<304x256xf32, #tpu.memory_space<vmem>>, vector<304x256xf32>
    %cst_170 = arith.constant dense<0.000000e+00> : vector<16x256xf32>
    %236 = tpu.matmul %234, %235, %cst_170 {dimension_numbers = #tpu.dot_dimension_numbers<[1], [0], [0], [1], [0, 0, 1, 1], [], []>} : vector<16x304xf32>, vector<304x256xf32>, vector<16x256xf32> -> vector<16x256xf32>
    %c0_171 = arith.constant 0 : index
    %c0_172 = arith.constant 0 : index
    %237 = vector.load %arg5[%c0_171, %c0_172] : memref<16x1xf32, #tpu.memory_space<vmem>>, vector<16x1xf32>
    %238 = vector.broadcast %237 : vector<16x1xf32> to vector<16x256xf32>
    %239 = arith.addf %236, %238 : vector<16x256xf32>
    %cst_173 = arith.constant 0.000000e+00 : f32
    %240 = vector.broadcast %cst_173 : f32 to vector<16x256xf32>
    %241 = arith.maximumf %239, %240 : vector<16x256xf32>
    %c0_174 = arith.constant 0 : index
    %c0_175 = arith.constant 0 : index
    %242 = vector.load %arg13[%c0_174, %c0_175] : memref<16x256xf32, #tpu.memory_space<vmem>>, vector<16x256xf32>
    tpu.vector_store %arg13[%c0_174, %c0_175], %241 {strides = array<i32>} : memref<16x256xf32, #tpu.memory_space<vmem>>, vector<16x256xf32>,
    %c0_176 = arith.constant 0 : index
    %c0_177 = arith.constant 0 : index
    %243 = vector.load %arg12[%c0_176, %c0_177] : memref<16x256xf32, #tpu.memory_space<vmem>>, vector<16x256xf32>
    %c0_178 = arith.constant 0 : index
    %c0_179 = arith.constant 0 : index
    %244 = vector.load %arg13[%c0_178, %c0_179] : memref<16x256xf32, #tpu.memory_space<vmem>>, vector<16x256xf32>
    %245 = arith.addf %243, %244 : vector<16x256xf32>
    %cst_180 = arith.constant 0.000000e+00 : f32
    %246 = vector.broadcast %cst_180 : f32 to vector<16x256xf32>
    %247 = arith.maximumf %245, %246 : vector<16x256xf32>
    %c0_181 = arith.constant 0 : index
    %c0_182 = arith.constant 0 : index
    %248 = vector.load %arg12[%c0_181, %c0_182] : memref<16x256xf32, #tpu.memory_space<vmem>>, vector<16x256xf32>
    tpu.vector_store %arg12[%c0_181, %c0_182], %247 {strides = array<i32>} : memref<16x256xf32, #tpu.memory_space<vmem>>, vector<16x256xf32>,
    %c0_183 = arith.constant 0 : index
    %c0_184 = arith.constant 0 : index
    %249 = vector.load %arg12[%c0_183, %c0_184] : memref<16x256xf32, #tpu.memory_space<vmem>>, vector<16x256xf32>
    %cst_185 = arith.constant 0.000000e+00 : f32
    %250 = vector.broadcast %cst_185 : f32 to vector<16x256xf32>
    %c0_186 = arith.constant 0 : index
    %c0_187 = arith.constant 0 : index
    %251 = vector.load %arg14[%c0_186, %c0_187] : memref<304x256xf32, #tpu.memory_space<vmem>>, vector<16x256xf32>
    tpu.vector_store %arg14[%c0_186, %c0_187], %250 {strides = array<i32>} : memref<304x256xf32, #tpu.memory_space<vmem>>, vector<16x256xf32>,
    %c16_188 = arith.constant 16 : index
    %c0_189 = arith.constant 0 : index
    %252 = vector.load %arg14[%c16_188, %c0_189] : memref<304x256xf32, #tpu.memory_space<vmem>>, vector<16x256xf32>
    tpu.vector_store %arg14[%c16_188, %c0_189], %250 {strides = array<i32>} : memref<304x256xf32, #tpu.memory_space<vmem>>, vector<16x256xf32>,
    %c32_190 = arith.constant 32 : index
    %c0_191 = arith.constant 0 : index
    %253 = vector.load %arg14[%c32_190, %c0_191] : memref<304x256xf32, #tpu.memory_space<vmem>>, vector<16x256xf32>
    tpu.vector_store %arg14[%c32_190, %c0_191], %250 {strides = array<i32>} : memref<304x256xf32, #tpu.memory_space<vmem>>, vector<16x256xf32>,
    %c120_i32 = arith.constant 120 : i32
    %254 = tpu.dynamic_rotate %249 by %c120_i32 dim 1 : vector<16x256xf32>, i32 -> vector<16x256xf32>
    %c120_i32_192 = arith.constant 120 : i32
    %255 = vector.broadcast %c120_i32_192 : i32 to vector<16x256xi32>
    %256 = arith.cmpi sge, %4, %255 : vector<16x256xi32>
    %cst_193 = arith.constant 0.000000e+00 : f32
    %257 = vector.broadcast %cst_193 : f32 to vector<16x256xf32>
    %258 = arith.select %256, %254, %257 : vector<16x256xi1>, vector<16x256xf32>
    %c48_194 = arith.constant 48 : index
    %c0_195 = arith.constant 0 : index
    %259 = vector.load %arg14[%c48_194, %c0_195] : memref<304x256xf32, #tpu.memory_space<vmem>>, vector<16x256xf32>
    tpu.vector_store %arg14[%c48_194, %c0_195], %258 {strides = array<i32>} : memref<304x256xf32, #tpu.memory_space<vmem>>, vector<16x256xf32>,
    %c112_i32 = arith.constant 112 : i32
    %260 = tpu.dynamic_rotate %249 by %c112_i32 dim 1 : vector<16x256xf32>, i32 -> vector<16x256xf32>
    %c112_i32_196 = arith.constant 112 : i32
    %261 = vector.broadcast %c112_i32_196 : i32 to vector<16x256xi32>
    %262 = arith.cmpi sge, %4, %261 : vector<16x256xi32>
    %cst_197 = arith.constant 0.000000e+00 : f32
    %263 = vector.broadcast %cst_197 : f32 to vector<16x256xf32>
    %264 = arith.select %262, %260, %263 : vector<16x256xi1>, vector<16x256xf32>
    %c64_198 = arith.constant 64 : index
    %c0_199 = arith.constant 0 : index
    %265 = vector.load %arg14[%c64_198, %c0_199] : memref<304x256xf32, #tpu.memory_space<vmem>>, vector<16x256xf32>
    tpu.vector_store %arg14[%c64_198, %c0_199], %264 {strides = array<i32>} : memref<304x256xf32, #tpu.memory_space<vmem>>, vector<16x256xf32>,
    %c104_i32 = arith.constant 104 : i32
    %266 = tpu.dynamic_rotate %249 by %c104_i32 dim 1 : vector<16x256xf32>, i32 -> vector<16x256xf32>
    %c104_i32_200 = arith.constant 104 : i32
    %267 = vector.broadcast %c104_i32_200 : i32 to vector<16x256xi32>
    %268 = arith.cmpi sge, %4, %267 : vector<16x256xi32>
    %cst_201 = arith.constant 0.000000e+00 : f32
    %269 = vector.broadcast %cst_201 : f32 to vector<16x256xf32>
    %270 = arith.select %268, %266, %269 : vector<16x256xi1>, vector<16x256xf32>
    %c80_202 = arith.constant 80 : index
    %c0_203 = arith.constant 0 : index
    %271 = vector.load %arg14[%c80_202, %c0_203] : memref<304x256xf32, #tpu.memory_space<vmem>>, vector<16x256xf32>
    tpu.vector_store %arg14[%c80_202, %c0_203], %270 {strides = array<i32>} : memref<304x256xf32, #tpu.memory_space<vmem>>, vector<16x256xf32>,
    %c96_i32 = arith.constant 96 : i32
    %272 = tpu.dynamic_rotate %249 by %c96_i32 dim 1 : vector<16x256xf32>, i32 -> vector<16x256xf32>
    %c96_i32_204 = arith.constant 96 : i32
    %273 = vector.broadcast %c96_i32_204 : i32 to vector<16x256xi32>
    %274 = arith.cmpi sge, %4, %273 : vector<16x256xi32>
    %cst_205 = arith.constant 0.000000e+00 : f32
    %275 = vector.broadcast %cst_205 : f32 to vector<16x256xf32>
    %276 = arith.select %274, %272, %275 : vector<16x256xi1>, vector<16x256xf32>
    %c96_206 = arith.constant 96 : index
    %c0_207 = arith.constant 0 : index
    %277 = vector.load %arg14[%c96_206, %c0_207] : memref<304x256xf32, #tpu.memory_space<vmem>>, vector<16x256xf32>
    tpu.vector_store %arg14[%c96_206, %c0_207], %276 {strides = array<i32>} : memref<304x256xf32, #tpu.memory_space<vmem>>, vector<16x256xf32>,
    %c88_i32 = arith.constant 88 : i32
    %278 = tpu.dynamic_rotate %249 by %c88_i32 dim 1 : vector<16x256xf32>, i32 -> vector<16x256xf32>
    %c88_i32_208 = arith.constant 88 : i32
    %279 = vector.broadcast %c88_i32_208 : i32 to vector<16x256xi32>
    %280 = arith.cmpi sge, %4, %279 : vector<16x256xi32>
    %cst_209 = arith.constant 0.000000e+00 : f32
    %281 = vector.broadcast %cst_209 : f32 to vector<16x256xf32>
    %282 = arith.select %280, %278, %281 : vector<16x256xi1>, vector<16x256xf32>
    %c112_210 = arith.constant 112 : index
    %c0_211 = arith.constant 0 : index
    %283 = vector.load %arg14[%c112_210, %c0_211] : memref<304x256xf32, #tpu.memory_space<vmem>>, vector<16x256xf32>
    tpu.vector_store %arg14[%c112_210, %c0_211], %282 {strides = array<i32>} : memref<304x256xf32, #tpu.memory_space<vmem>>, vector<16x256xf32>,
    %c80_i32 = arith.constant 80 : i32
    %284 = tpu.dynamic_rotate %249 by %c80_i32 dim 1 : vector<16x256xf32>, i32 -> vector<16x256xf32>
    %c80_i32_212 = arith.constant 80 : i32
    %285 = vector.broadcast %c80_i32_212 : i32 to vector<16x256xi32>
    %286 = arith.cmpi sge, %4, %285 : vector<16x256xi32>
    %cst_213 = arith.constant 0.000000e+00 : f32
    %287 = vector.broadcast %cst_213 : f32 to vector<16x256xf32>
    %288 = arith.select %286, %284, %287 : vector<16x256xi1>, vector<16x256xf32>
    %c128_214 = arith.constant 128 : index
    %c0_215 = arith.constant 0 : index
    %289 = vector.load %arg14[%c128_214, %c0_215] : memref<304x256xf32, #tpu.memory_space<vmem>>, vector<16x256xf32>
    tpu.vector_store %arg14[%c128_214, %c0_215], %288 {strides = array<i32>} : memref<304x256xf32, #tpu.memory_space<vmem>>, vector<16x256xf32>,
    %c72_i32_216 = arith.constant 72 : i32
    %290 = tpu.dynamic_rotate %249 by %c72_i32_216 dim 1 : vector<16x256xf32>, i32 -> vector<16x256xf32>
    %c72_i32_217 = arith.constant 72 : i32
    %291 = vector.broadcast %c72_i32_217 : i32 to vector<16x256xi32>
    %292 = arith.cmpi sge, %4, %291 : vector<16x256xi32>
    %cst_218 = arith.constant 0.000000e+00 : f32
    %293 = vector.broadcast %cst_218 : f32 to vector<16x256xf32>
    %294 = arith.select %292, %290, %293 : vector<16x256xi1>, vector<16x256xf32>
    %c144_219 = arith.constant 144 : index
    %c0_220 = arith.constant 0 : index
    %295 = vector.load %arg14[%c144_219, %c0_220] : memref<304x256xf32, #tpu.memory_space<vmem>>, vector<16x256xf32>
    tpu.vector_store %arg14[%c144_219, %c0_220], %294 {strides = array<i32>} : memref<304x256xf32, #tpu.memory_space<vmem>>, vector<16x256xf32>,
    %c64_i32_221 = arith.constant 64 : i32
    %296 = tpu.dynamic_rotate %249 by %c64_i32_221 dim 1 : vector<16x256xf32>, i32 -> vector<16x256xf32>
    %c64_i32_222 = arith.constant 64 : i32
    %297 = vector.broadcast %c64_i32_222 : i32 to vector<16x256xi32>
    %298 = arith.cmpi sge, %4, %297 : vector<16x256xi32>
    %cst_223 = arith.constant 0.000000e+00 : f32
    %299 = vector.broadcast %cst_223 : f32 to vector<16x256xf32>
    %300 = arith.select %298, %296, %299 : vector<16x256xi1>, vector<16x256xf32>
    %c160_224 = arith.constant 160 : index
    %c0_225 = arith.constant 0 : index
    %301 = vector.load %arg14[%c160_224, %c0_225] : memref<304x256xf32, #tpu.memory_space<vmem>>, vector<16x256xf32>
    tpu.vector_store %arg14[%c160_224, %c0_225], %300 {strides = array<i32>} : memref<304x256xf32, #tpu.memory_space<vmem>>, vector<16x256xf32>,
    %c56_i32_226 = arith.constant 56 : i32
    %302 = tpu.dynamic_rotate %249 by %c56_i32_226 dim 1 : vector<16x256xf32>, i32 -> vector<16x256xf32>
    %c56_i32_227 = arith.constant 56 : i32
    %303 = vector.broadcast %c56_i32_227 : i32 to vector<16x256xi32>
    %304 = arith.cmpi sge, %4, %303 : vector<16x256xi32>
    %cst_228 = arith.constant 0.000000e+00 : f32
    %305 = vector.broadcast %cst_228 : f32 to vector<16x256xf32>
    %306 = arith.select %304, %302, %305 : vector<16x256xi1>, vector<16x256xf32>
    %c176_229 = arith.constant 176 : index
    %c0_230 = arith.constant 0 : index
    %307 = vector.load %arg14[%c176_229, %c0_230] : memref<304x256xf32, #tpu.memory_space<vmem>>, vector<16x256xf32>
    tpu.vector_store %arg14[%c176_229, %c0_230], %306 {strides = array<i32>} : memref<304x256xf32, #tpu.memory_space<vmem>>, vector<16x256xf32>,
    %c48_i32_231 = arith.constant 48 : i32
    %308 = tpu.dynamic_rotate %249 by %c48_i32_231 dim 1 : vector<16x256xf32>, i32 -> vector<16x256xf32>
    %c48_i32_232 = arith.constant 48 : i32
    %309 = vector.broadcast %c48_i32_232 : i32 to vector<16x256xi32>
    %310 = arith.cmpi sge, %4, %309 : vector<16x256xi32>
    %cst_233 = arith.constant 0.000000e+00 : f32
    %311 = vector.broadcast %cst_233 : f32 to vector<16x256xf32>
    %312 = arith.select %310, %308, %311 : vector<16x256xi1>, vector<16x256xf32>
    %c192_234 = arith.constant 192 : index
    %c0_235 = arith.constant 0 : index
    %313 = vector.load %arg14[%c192_234, %c0_235] : memref<304x256xf32, #tpu.memory_space<vmem>>, vector<16x256xf32>
    tpu.vector_store %arg14[%c192_234, %c0_235], %312 {strides = array<i32>} : memref<304x256xf32, #tpu.memory_space<vmem>>, vector<16x256xf32>,
    %c40_i32_236 = arith.constant 40 : i32
    %314 = tpu.dynamic_rotate %249 by %c40_i32_236 dim 1 : vector<16x256xf32>, i32 -> vector<16x256xf32>
    %c40_i32_237 = arith.constant 40 : i32
    %315 = vector.broadcast %c40_i32_237 : i32 to vector<16x256xi32>
    %316 = arith.cmpi sge, %4, %315 : vector<16x256xi32>
    %cst_238 = arith.constant 0.000000e+00 : f32
    %317 = vector.broadcast %cst_238 : f32 to vector<16x256xf32>
    %318 = arith.select %316, %314, %317 : vector<16x256xi1>, vector<16x256xf32>
    %c208_239 = arith.constant 208 : index
    %c0_240 = arith.constant 0 : index
    %319 = vector.load %arg14[%c208_239, %c0_240] : memref<304x256xf32, #tpu.memory_space<vmem>>, vector<16x256xf32>
    tpu.vector_store %arg14[%c208_239, %c0_240], %318 {strides = array<i32>} : memref<304x256xf32, #tpu.memory_space<vmem>>, vector<16x256xf32>,
    %c32_i32_241 = arith.constant 32 : i32
    %320 = tpu.dynamic_rotate %249 by %c32_i32_241 dim 1 : vector<16x256xf32>, i32 -> vector<16x256xf32>
    %c32_i32_242 = arith.constant 32 : i32
    %321 = vector.broadcast %c32_i32_242 : i32 to vector<16x256xi32>
    %322 = arith.cmpi sge, %4, %321 : vector<16x256xi32>
    %cst_243 = arith.constant 0.000000e+00 : f32
    %323 = vector.broadcast %cst_243 : f32 to vector<16x256xf32>
    %324 = arith.select %322, %320, %323 : vector<16x256xi1>, vector<16x256xf32>
    %c224_244 = arith.constant 224 : index
    %c0_245 = arith.constant 0 : index
    %325 = vector.load %arg14[%c224_244, %c0_245] : memref<304x256xf32, #tpu.memory_space<vmem>>, vector<16x256xf32>
    tpu.vector_store %arg14[%c224_244, %c0_245], %324 {strides = array<i32>} : memref<304x256xf32, #tpu.memory_space<vmem>>, vector<16x256xf32>,
    %c24_i32_246 = arith.constant 24 : i32
    %326 = tpu.dynamic_rotate %249 by %c24_i32_246 dim 1 : vector<16x256xf32>, i32 -> vector<16x256xf32>
    %c24_i32_247 = arith.constant 24 : i32
    %327 = vector.broadcast %c24_i32_247 : i32 to vector<16x256xi32>
    %328 = arith.cmpi sge, %4, %327 : vector<16x256xi32>
    %cst_248 = arith.constant 0.000000e+00 : f32
    %329 = vector.broadcast %cst_248 : f32 to vector<16x256xf32>
    %330 = arith.select %328, %326, %329 : vector<16x256xi1>, vector<16x256xf32>
    %c240_249 = arith.constant 240 : index
    %c0_250 = arith.constant 0 : index
    %331 = vector.load %arg14[%c240_249, %c0_250] : memref<304x256xf32, #tpu.memory_space<vmem>>, vector<16x256xf32>
    tpu.vector_store %arg14[%c240_249, %c0_250], %330 {strides = array<i32>} : memref<304x256xf32, #tpu.memory_space<vmem>>, vector<16x256xf32>,
    %c16_i32_251 = arith.constant 16 : i32
    %332 = tpu.dynamic_rotate %249 by %c16_i32_251 dim 1 : vector<16x256xf32>, i32 -> vector<16x256xf32>
    %c16_i32_252 = arith.constant 16 : i32
    %333 = vector.broadcast %c16_i32_252 : i32 to vector<16x256xi32>
    %334 = arith.cmpi sge, %4, %333 : vector<16x256xi32>
    %cst_253 = arith.constant 0.000000e+00 : f32
    %335 = vector.broadcast %cst_253 : f32 to vector<16x256xf32>
    %336 = arith.select %334, %332, %335 : vector<16x256xi1>, vector<16x256xf32>
    %c256_254 = arith.constant 256 : index
    %c0_255 = arith.constant 0 : index
    %337 = vector.load %arg14[%c256_254, %c0_255] : memref<304x256xf32, #tpu.memory_space<vmem>>, vector<16x256xf32>
    tpu.vector_store %arg14[%c256_254, %c0_255], %336 {strides = array<i32>} : memref<304x256xf32, #tpu.memory_space<vmem>>, vector<16x256xf32>,
    %c8_i32_256 = arith.constant 8 : i32
    %338 = tpu.dynamic_rotate %249 by %c8_i32_256 dim 1 : vector<16x256xf32>, i32 -> vector<16x256xf32>
    %c8_i32_257 = arith.constant 8 : i32
    %339 = vector.broadcast %c8_i32_257 : i32 to vector<16x256xi32>
    %340 = arith.cmpi sge, %4, %339 : vector<16x256xi32>
    %cst_258 = arith.constant 0.000000e+00 : f32
    %341 = vector.broadcast %cst_258 : f32 to vector<16x256xf32>
    %342 = arith.select %340, %338, %341 : vector<16x256xi1>, vector<16x256xf32>
    %c272_259 = arith.constant 272 : index
    %c0_260 = arith.constant 0 : index
    %343 = vector.load %arg14[%c272_259, %c0_260] : memref<304x256xf32, #tpu.memory_space<vmem>>, vector<16x256xf32>
    tpu.vector_store %arg14[%c272_259, %c0_260], %342 {strides = array<i32>} : memref<304x256xf32, #tpu.memory_space<vmem>>, vector<16x256xf32>,
    %c288_261 = arith.constant 288 : index
    %c0_262 = arith.constant 0 : index
    %344 = vector.load %arg14[%c288_261, %c0_262] : memref<304x256xf32, #tpu.memory_space<vmem>>, vector<16x256xf32>
    tpu.vector_store %arg14[%c288_261, %c0_262], %249 {strides = array<i32>} : memref<304x256xf32, #tpu.memory_space<vmem>>, vector<16x256xf32>,
    %c0_263 = arith.constant 0 : index
    %c0_264 = arith.constant 0 : index
    %345 = vector.load %arg6[%c0_263, %c0_264] : memref<16x304xf32, #tpu.memory_space<vmem>>, vector<16x304xf32>
    %c0_265 = arith.constant 0 : index
    %c0_266 = arith.constant 0 : index
    %346 = vector.load %arg14[%c0_265, %c0_266] : memref<304x256xf32, #tpu.memory_space<vmem>>, vector<304x256xf32>
    %cst_267 = arith.constant dense<0.000000e+00> : vector<16x256xf32>
    %347 = tpu.matmul %345, %346, %cst_267 {dimension_numbers = #tpu.dot_dimension_numbers<[1], [0], [0], [1], [0, 0, 1, 1], [], []>} : vector<16x304xf32>, vector<304x256xf32>, vector<16x256xf32> -> vector<16x256xf32>
    %c0_268 = arith.constant 0 : index
    %c0_269 = arith.constant 0 : index
    %348 = vector.load %arg7[%c0_268, %c0_269] : memref<16x1xf32, #tpu.memory_space<vmem>>, vector<16x1xf32>
    %349 = vector.broadcast %348 : vector<16x1xf32> to vector<16x256xf32>
    %350 = arith.addf %347, %349 : vector<16x256xf32>
    %cst_270 = arith.constant 0.000000e+00 : f32
    %351 = vector.broadcast %cst_270 : f32 to vector<16x256xf32>
    %352 = arith.maximumf %350, %351 : vector<16x256xf32>
    %c0_271 = arith.constant 0 : index
    %c0_272 = arith.constant 0 : index
    %353 = vector.load %arg13[%c0_271, %c0_272] : memref<16x256xf32, #tpu.memory_space<vmem>>, vector<16x256xf32>
    tpu.vector_store %arg13[%c0_271, %c0_272], %352 {strides = array<i32>} : memref<16x256xf32, #tpu.memory_space<vmem>>, vector<16x256xf32>,
    %c0_273 = arith.constant 0 : index
    %c0_274 = arith.constant 0 : index
    %354 = vector.load %arg13[%c0_273, %c0_274] : memref<16x256xf32, #tpu.memory_space<vmem>>, vector<16x256xf32>
    %cst_275 = arith.constant 0.000000e+00 : f32
    %355 = vector.broadcast %cst_275 : f32 to vector<16x256xf32>
    %c0_276 = arith.constant 0 : index
    %c0_277 = arith.constant 0 : index
    %356 = vector.load %arg14[%c0_276, %c0_277] : memref<304x256xf32, #tpu.memory_space<vmem>>, vector<16x256xf32>
    tpu.vector_store %arg14[%c0_276, %c0_277], %355 {strides = array<i32>} : memref<304x256xf32, #tpu.memory_space<vmem>>, vector<16x256xf32>,
    %c16_278 = arith.constant 16 : index
    %c0_279 = arith.constant 0 : index
    %357 = vector.load %arg14[%c16_278, %c0_279] : memref<304x256xf32, #tpu.memory_space<vmem>>, vector<16x256xf32>
    tpu.vector_store %arg14[%c16_278, %c0_279], %355 {strides = array<i32>} : memref<304x256xf32, #tpu.memory_space<vmem>>, vector<16x256xf32>,
    %c32_280 = arith.constant 32 : index
    %c0_281 = arith.constant 0 : index
    %358 = vector.load %arg14[%c32_280, %c0_281] : memref<304x256xf32, #tpu.memory_space<vmem>>, vector<16x256xf32>
    tpu.vector_store %arg14[%c32_280, %c0_281], %355 {strides = array<i32>} : memref<304x256xf32, #tpu.memory_space<vmem>>, vector<16x256xf32>,
    %c120_i32_282 = arith.constant 120 : i32
    %359 = tpu.dynamic_rotate %354 by %c120_i32_282 dim 1 : vector<16x256xf32>, i32 -> vector<16x256xf32>
    %c120_i32_283 = arith.constant 120 : i32
    %360 = vector.broadcast %c120_i32_283 : i32 to vector<16x256xi32>
    %361 = arith.cmpi sge, %4, %360 : vector<16x256xi32>
    %cst_284 = arith.constant 0.000000e+00 : f32
    %362 = vector.broadcast %cst_284 : f32 to vector<16x256xf32>
    %363 = arith.select %361, %359, %362 : vector<16x256xi1>, vector<16x256xf32>
    %c48_285 = arith.constant 48 : index
    %c0_286 = arith.constant 0 : index
    %364 = vector.load %arg14[%c48_285, %c0_286] : memref<304x256xf32, #tpu.memory_space<vmem>>, vector<16x256xf32>
    tpu.vector_store %arg14[%c48_285, %c0_286], %363 {strides = array<i32>} : memref<304x256xf32, #tpu.memory_space<vmem>>, vector<16x256xf32>,
    %c112_i32_287 = arith.constant 112 : i32
    %365 = tpu.dynamic_rotate %354 by %c112_i32_287 dim 1 : vector<16x256xf32>, i32 -> vector<16x256xf32>
    %c112_i32_288 = arith.constant 112 : i32
    %366 = vector.broadcast %c112_i32_288 : i32 to vector<16x256xi32>
    %367 = arith.cmpi sge, %4, %366 : vector<16x256xi32>
    %cst_289 = arith.constant 0.000000e+00 : f32
    %368 = vector.broadcast %cst_289 : f32 to vector<16x256xf32>
    %369 = arith.select %367, %365, %368 : vector<16x256xi1>, vector<16x256xf32>
    %c64_290 = arith.constant 64 : index
    %c0_291 = arith.constant 0 : index
    %370 = vector.load %arg14[%c64_290, %c0_291] : memref<304x256xf32, #tpu.memory_space<vmem>>, vector<16x256xf32>
    tpu.vector_store %arg14[%c64_290, %c0_291], %369 {strides = array<i32>} : memref<304x256xf32, #tpu.memory_space<vmem>>, vector<16x256xf32>,
    %c104_i32_292 = arith.constant 104 : i32
    %371 = tpu.dynamic_rotate %354 by %c104_i32_292 dim 1 : vector<16x256xf32>, i32 -> vector<16x256xf32>
    %c104_i32_293 = arith.constant 104 : i32
    %372 = vector.broadcast %c104_i32_293 : i32 to vector<16x256xi32>
    %373 = arith.cmpi sge, %4, %372 : vector<16x256xi32>
    %cst_294 = arith.constant 0.000000e+00 : f32
    %374 = vector.broadcast %cst_294 : f32 to vector<16x256xf32>
    %375 = arith.select %373, %371, %374 : vector<16x256xi1>, vector<16x256xf32>
    %c80_295 = arith.constant 80 : index
    %c0_296 = arith.constant 0 : index
    %376 = vector.load %arg14[%c80_295, %c0_296] : memref<304x256xf32, #tpu.memory_space<vmem>>, vector<16x256xf32>
    tpu.vector_store %arg14[%c80_295, %c0_296], %375 {strides = array<i32>} : memref<304x256xf32, #tpu.memory_space<vmem>>, vector<16x256xf32>,
    %c96_i32_297 = arith.constant 96 : i32
    %377 = tpu.dynamic_rotate %354 by %c96_i32_297 dim 1 : vector<16x256xf32>, i32 -> vector<16x256xf32>
    %c96_i32_298 = arith.constant 96 : i32
    %378 = vector.broadcast %c96_i32_298 : i32 to vector<16x256xi32>
    %379 = arith.cmpi sge, %4, %378 : vector<16x256xi32>
    %cst_299 = arith.constant 0.000000e+00 : f32
    %380 = vector.broadcast %cst_299 : f32 to vector<16x256xf32>
    %381 = arith.select %379, %377, %380 : vector<16x256xi1>, vector<16x256xf32>
    %c96_300 = arith.constant 96 : index
    %c0_301 = arith.constant 0 : index
    %382 = vector.load %arg14[%c96_300, %c0_301] : memref<304x256xf32, #tpu.memory_space<vmem>>, vector<16x256xf32>
    tpu.vector_store %arg14[%c96_300, %c0_301], %381 {strides = array<i32>} : memref<304x256xf32, #tpu.memory_space<vmem>>, vector<16x256xf32>,
    %c88_i32_302 = arith.constant 88 : i32
    %383 = tpu.dynamic_rotate %354 by %c88_i32_302 dim 1 : vector<16x256xf32>, i32 -> vector<16x256xf32>
    %c88_i32_303 = arith.constant 88 : i32
    %384 = vector.broadcast %c88_i32_303 : i32 to vector<16x256xi32>
    %385 = arith.cmpi sge, %4, %384 : vector<16x256xi32>
    %cst_304 = arith.constant 0.000000e+00 : f32
    %386 = vector.broadcast %cst_304 : f32 to vector<16x256xf32>
    %387 = arith.select %385, %383, %386 : vector<16x256xi1>, vector<16x256xf32>
    %c112_305 = arith.constant 112 : index
    %c0_306 = arith.constant 0 : index
    %388 = vector.load %arg14[%c112_305, %c0_306] : memref<304x256xf32, #tpu.memory_space<vmem>>, vector<16x256xf32>
    tpu.vector_store %arg14[%c112_305, %c0_306], %387 {strides = array<i32>} : memref<304x256xf32, #tpu.memory_space<vmem>>, vector<16x256xf32>,
    %c80_i32_307 = arith.constant 80 : i32
    %389 = tpu.dynamic_rotate %354 by %c80_i32_307 dim 1 : vector<16x256xf32>, i32 -> vector<16x256xf32>
    %c80_i32_308 = arith.constant 80 : i32
    %390 = vector.broadcast %c80_i32_308 : i32 to vector<16x256xi32>
    %391 = arith.cmpi sge, %4, %390 : vector<16x256xi32>
    %cst_309 = arith.constant 0.000000e+00 : f32
    %392 = vector.broadcast %cst_309 : f32 to vector<16x256xf32>
    %393 = arith.select %391, %389, %392 : vector<16x256xi1>, vector<16x256xf32>
    %c128_310 = arith.constant 128 : index
    %c0_311 = arith.constant 0 : index
    %394 = vector.load %arg14[%c128_310, %c0_311] : memref<304x256xf32, #tpu.memory_space<vmem>>, vector<16x256xf32>
    tpu.vector_store %arg14[%c128_310, %c0_311], %393 {strides = array<i32>} : memref<304x256xf32, #tpu.memory_space<vmem>>, vector<16x256xf32>,
    %c72_i32_312 = arith.constant 72 : i32
    %395 = tpu.dynamic_rotate %354 by %c72_i32_312 dim 1 : vector<16x256xf32>, i32 -> vector<16x256xf32>
    %c72_i32_313 = arith.constant 72 : i32
    %396 = vector.broadcast %c72_i32_313 : i32 to vector<16x256xi32>
    %397 = arith.cmpi sge, %4, %396 : vector<16x256xi32>
    %cst_314 = arith.constant 0.000000e+00 : f32
    %398 = vector.broadcast %cst_314 : f32 to vector<16x256xf32>
    %399 = arith.select %397, %395, %398 : vector<16x256xi1>, vector<16x256xf32>
    %c144_315 = arith.constant 144 : index
    %c0_316 = arith.constant 0 : index
    %400 = vector.load %arg14[%c144_315, %c0_316] : memref<304x256xf32, #tpu.memory_space<vmem>>, vector<16x256xf32>
    tpu.vector_store %arg14[%c144_315, %c0_316], %399 {strides = array<i32>} : memref<304x256xf32, #tpu.memory_space<vmem>>, vector<16x256xf32>,
    %c64_i32_317 = arith.constant 64 : i32
    %401 = tpu.dynamic_rotate %354 by %c64_i32_317 dim 1 : vector<16x256xf32>, i32 -> vector<16x256xf32>
    %c64_i32_318 = arith.constant 64 : i32
    %402 = vector.broadcast %c64_i32_318 : i32 to vector<16x256xi32>
    %403 = arith.cmpi sge, %4, %402 : vector<16x256xi32>
    %cst_319 = arith.constant 0.000000e+00 : f32
    %404 = vector.broadcast %cst_319 : f32 to vector<16x256xf32>
    %405 = arith.select %403, %401, %404 : vector<16x256xi1>, vector<16x256xf32>
    %c160_320 = arith.constant 160 : index
    %c0_321 = arith.constant 0 : index
    %406 = vector.load %arg14[%c160_320, %c0_321] : memref<304x256xf32, #tpu.memory_space<vmem>>, vector<16x256xf32>
    tpu.vector_store %arg14[%c160_320, %c0_321], %405 {strides = array<i32>} : memref<304x256xf32, #tpu.memory_space<vmem>>, vector<16x256xf32>,
    %c56_i32_322 = arith.constant 56 : i32
    %407 = tpu.dynamic_rotate %354 by %c56_i32_322 dim 1 : vector<16x256xf32>, i32 -> vector<16x256xf32>
    %c56_i32_323 = arith.constant 56 : i32
    %408 = vector.broadcast %c56_i32_323 : i32 to vector<16x256xi32>
    %409 = arith.cmpi sge, %4, %408 : vector<16x256xi32>
    %cst_324 = arith.constant 0.000000e+00 : f32
    %410 = vector.broadcast %cst_324 : f32 to vector<16x256xf32>
    %411 = arith.select %409, %407, %410 : vector<16x256xi1>, vector<16x256xf32>
    %c176_325 = arith.constant 176 : index
    %c0_326 = arith.constant 0 : index
    %412 = vector.load %arg14[%c176_325, %c0_326] : memref<304x256xf32, #tpu.memory_space<vmem>>, vector<16x256xf32>
    tpu.vector_store %arg14[%c176_325, %c0_326], %411 {strides = array<i32>} : memref<304x256xf32, #tpu.memory_space<vmem>>, vector<16x256xf32>,
    %c48_i32_327 = arith.constant 48 : i32
    %413 = tpu.dynamic_rotate %354 by %c48_i32_327 dim 1 : vector<16x256xf32>, i32 -> vector<16x256xf32>
    %c48_i32_328 = arith.constant 48 : i32
    %414 = vector.broadcast %c48_i32_328 : i32 to vector<16x256xi32>
    %415 = arith.cmpi sge, %4, %414 : vector<16x256xi32>
    %cst_329 = arith.constant 0.000000e+00 : f32
    %416 = vector.broadcast %cst_329 : f32 to vector<16x256xf32>
    %417 = arith.select %415, %413, %416 : vector<16x256xi1>, vector<16x256xf32>
    %c192_330 = arith.constant 192 : index
    %c0_331 = arith.constant 0 : index
    %418 = vector.load %arg14[%c192_330, %c0_331] : memref<304x256xf32, #tpu.memory_space<vmem>>, vector<16x256xf32>
    tpu.vector_store %arg14[%c192_330, %c0_331], %417 {strides = array<i32>} : memref<304x256xf32, #tpu.memory_space<vmem>>, vector<16x256xf32>,
    %c40_i32_332 = arith.constant 40 : i32
    %419 = tpu.dynamic_rotate %354 by %c40_i32_332 dim 1 : vector<16x256xf32>, i32 -> vector<16x256xf32>
    %c40_i32_333 = arith.constant 40 : i32
    %420 = vector.broadcast %c40_i32_333 : i32 to vector<16x256xi32>
    %421 = arith.cmpi sge, %4, %420 : vector<16x256xi32>
    %cst_334 = arith.constant 0.000000e+00 : f32
    %422 = vector.broadcast %cst_334 : f32 to vector<16x256xf32>
    %423 = arith.select %421, %419, %422 : vector<16x256xi1>, vector<16x256xf32>
    %c208_335 = arith.constant 208 : index
    %c0_336 = arith.constant 0 : index
    %424 = vector.load %arg14[%c208_335, %c0_336] : memref<304x256xf32, #tpu.memory_space<vmem>>, vector<16x256xf32>
    tpu.vector_store %arg14[%c208_335, %c0_336], %423 {strides = array<i32>} : memref<304x256xf32, #tpu.memory_space<vmem>>, vector<16x256xf32>,
    %c32_i32_337 = arith.constant 32 : i32
    %425 = tpu.dynamic_rotate %354 by %c32_i32_337 dim 1 : vector<16x256xf32>, i32 -> vector<16x256xf32>
    %c32_i32_338 = arith.constant 32 : i32
    %426 = vector.broadcast %c32_i32_338 : i32 to vector<16x256xi32>
    %427 = arith.cmpi sge, %4, %426 : vector<16x256xi32>
    %cst_339 = arith.constant 0.000000e+00 : f32
    %428 = vector.broadcast %cst_339 : f32 to vector<16x256xf32>
    %429 = arith.select %427, %425, %428 : vector<16x256xi1>, vector<16x256xf32>
    %c224_340 = arith.constant 224 : index
    %c0_341 = arith.constant 0 : index
    %430 = vector.load %arg14[%c224_340, %c0_341] : memref<304x256xf32, #tpu.memory_space<vmem>>, vector<16x256xf32>
    tpu.vector_store %arg14[%c224_340, %c0_341], %429 {strides = array<i32>} : memref<304x256xf32, #tpu.memory_space<vmem>>, vector<16x256xf32>,
    %c24_i32_342 = arith.constant 24 : i32
    %431 = tpu.dynamic_rotate %354 by %c24_i32_342 dim 1 : vector<16x256xf32>, i32 -> vector<16x256xf32>
    %c24_i32_343 = arith.constant 24 : i32
    %432 = vector.broadcast %c24_i32_343 : i32 to vector<16x256xi32>
    %433 = arith.cmpi sge, %4, %432 : vector<16x256xi32>
    %cst_344 = arith.constant 0.000000e+00 : f32
    %434 = vector.broadcast %cst_344 : f32 to vector<16x256xf32>
    %435 = arith.select %433, %431, %434 : vector<16x256xi1>, vector<16x256xf32>
    %c240_345 = arith.constant 240 : index
    %c0_346 = arith.constant 0 : index
    %436 = vector.load %arg14[%c240_345, %c0_346] : memref<304x256xf32, #tpu.memory_space<vmem>>, vector<16x256xf32>
    tpu.vector_store %arg14[%c240_345, %c0_346], %435 {strides = array<i32>} : memref<304x256xf32, #tpu.memory_space<vmem>>, vector<16x256xf32>,
    %c16_i32_347 = arith.constant 16 : i32
    %437 = tpu.dynamic_rotate %354 by %c16_i32_347 dim 1 : vector<16x256xf32>, i32 -> vector<16x256xf32>
    %c16_i32_348 = arith.constant 16 : i32
    %438 = vector.broadcast %c16_i32_348 : i32 to vector<16x256xi32>
    %439 = arith.cmpi sge, %4, %438 : vector<16x256xi32>
    %cst_349 = arith.constant 0.000000e+00 : f32
    %440 = vector.broadcast %cst_349 : f32 to vector<16x256xf32>
    %441 = arith.select %439, %437, %440 : vector<16x256xi1>, vector<16x256xf32>
    %c256_350 = arith.constant 256 : index
    %c0_351 = arith.constant 0 : index
    %442 = vector.load %arg14[%c256_350, %c0_351] : memref<304x256xf32, #tpu.memory_space<vmem>>, vector<16x256xf32>
    tpu.vector_store %arg14[%c256_350, %c0_351], %441 {strides = array<i32>} : memref<304x256xf32, #tpu.memory_space<vmem>>, vector<16x256xf32>,
    %c8_i32_352 = arith.constant 8 : i32
    %443 = tpu.dynamic_rotate %354 by %c8_i32_352 dim 1 : vector<16x256xf32>, i32 -> vector<16x256xf32>
    %c8_i32_353 = arith.constant 8 : i32
    %444 = vector.broadcast %c8_i32_353 : i32 to vector<16x256xi32>
    %445 = arith.cmpi sge, %4, %444 : vector<16x256xi32>
    %cst_354 = arith.constant 0.000000e+00 : f32
    %446 = vector.broadcast %cst_354 : f32 to vector<16x256xf32>
    %447 = arith.select %445, %443, %446 : vector<16x256xi1>, vector<16x256xf32>
    %c272_355 = arith.constant 272 : index
    %c0_356 = arith.constant 0 : index
    %448 = vector.load %arg14[%c272_355, %c0_356] : memref<304x256xf32, #tpu.memory_space<vmem>>, vector<16x256xf32>
    tpu.vector_store %arg14[%c272_355, %c0_356], %447 {strides = array<i32>} : memref<304x256xf32, #tpu.memory_space<vmem>>, vector<16x256xf32>,
    %c288_357 = arith.constant 288 : index
    %c0_358 = arith.constant 0 : index
    %449 = vector.load %arg14[%c288_357, %c0_358] : memref<304x256xf32, #tpu.memory_space<vmem>>, vector<16x256xf32>
    tpu.vector_store %arg14[%c288_357, %c0_358], %354 {strides = array<i32>} : memref<304x256xf32, #tpu.memory_space<vmem>>, vector<16x256xf32>,
    %c0_359 = arith.constant 0 : index
    %c0_360 = arith.constant 0 : index
    %450 = vector.load %arg8[%c0_359, %c0_360] : memref<16x304xf32, #tpu.memory_space<vmem>>, vector<16x304xf32>
    %c0_361 = arith.constant 0 : index
    %c0_362 = arith.constant 0 : index
    %451 = vector.load %arg14[%c0_361, %c0_362] : memref<304x256xf32, #tpu.memory_space<vmem>>, vector<304x256xf32>
    %cst_363 = arith.constant dense<0.000000e+00> : vector<16x256xf32>
    %452 = tpu.matmul %450, %451, %cst_363 {dimension_numbers = #tpu.dot_dimension_numbers<[1], [0], [0], [1], [0, 0, 1, 1], [], []>} : vector<16x304xf32>, vector<304x256xf32>, vector<16x256xf32> -> vector<16x256xf32>
    %c0_364 = arith.constant 0 : index
    %c0_365 = arith.constant 0 : index
    %453 = vector.load %arg9[%c0_364, %c0_365] : memref<16x1xf32, #tpu.memory_space<vmem>>, vector<16x1xf32>
    %454 = vector.broadcast %453 : vector<16x1xf32> to vector<16x256xf32>
    %455 = arith.addf %452, %454 : vector<16x256xf32>
    %cst_366 = arith.constant 0.000000e+00 : f32
    %456 = vector.broadcast %cst_366 : f32 to vector<16x256xf32>
    %457 = arith.maximumf %455, %456 : vector<16x256xf32>
    %c0_367 = arith.constant 0 : index
    %c0_368 = arith.constant 0 : index
    %458 = vector.load %arg13[%c0_367, %c0_368] : memref<16x256xf32, #tpu.memory_space<vmem>>, vector<16x256xf32>
    tpu.vector_store %arg13[%c0_367, %c0_368], %457 {strides = array<i32>} : memref<16x256xf32, #tpu.memory_space<vmem>>, vector<16x256xf32>,
    %c0_369 = arith.constant 0 : index
    %c0_370 = arith.constant 0 : index
    %459 = vector.load %arg12[%c0_369, %c0_370] : memref<16x256xf32, #tpu.memory_space<vmem>>, vector<16x256xf32>
    %c0_371 = arith.constant 0 : index
    %c0_372 = arith.constant 0 : index
    %460 = vector.load %arg13[%c0_371, %c0_372] : memref<16x256xf32, #tpu.memory_space<vmem>>, vector<16x256xf32>
    %461 = arith.addf %459, %460 : vector<16x256xf32>
    %cst_373 = arith.constant 0.000000e+00 : f32
    %462 = vector.broadcast %cst_373 : f32 to vector<16x256xf32>
    %463 = arith.maximumf %461, %462 : vector<16x256xf32>
    %c0_374 = arith.constant 0 : index
    %c0_375 = arith.constant 0 : index
    %464 = vector.load %arg12[%c0_374, %c0_375] : memref<16x256xf32, #tpu.memory_space<vmem>>, vector<16x256xf32>
    tpu.vector_store %arg12[%c0_374, %c0_375], %463 {strides = array<i32>} : memref<16x256xf32, #tpu.memory_space<vmem>>, vector<16x256xf32>,
    %c0_376 = arith.constant 0 : index
    %c0_377 = arith.constant 0 : index
    %465 = vector.load %arg12[%c0_376, %c0_377] : memref<16x256xf32, #tpu.memory_space<vmem>>, vector<16x256xf32>
    %c0_378 = arith.constant 0 : index
    %c0_379 = arith.constant 0 : index
    %c0_380 = arith.constant 0 : index
    %466 = vector.load %arg10[%c0_378, %c0_379, %c0_380] : memref<4x16x256xf32, #tpu.memory_space<vmem>>, vector<1x16x256xf32>
    %467 = vector.shape_cast %466 : vector<1x16x256xf32> to vector<16x256xf32>
    %468 = arith.mulf %467, %465 : vector<16x256xf32>
    %cst_381 = arith.constant dense<0.000000e+00> : vector<256xf32>
    %469 = vector.multi_reduction <add>, %468, %cst_381 [0] : vector<16x256xf32> to vector<256xf32>
    %470 = vector.shape_cast %469 : vector<256xf32> to vector<1x256xf32>
    %c1 = arith.constant 1 : index
    %c0_382 = arith.constant 0 : index
    %c0_383 = arith.constant 0 : index
    %471 = vector.load %arg10[%c1, %c0_382, %c0_383] : memref<4x16x256xf32, #tpu.memory_space<vmem>>, vector<1x16x256xf32>
    %472 = vector.shape_cast %471 : vector<1x16x256xf32> to vector<16x256xf32>
    %473 = arith.mulf %472, %465 : vector<16x256xf32>
    %cst_384 = arith.constant dense<0.000000e+00> : vector<256xf32>
    %474 = vector.multi_reduction <add>, %473, %cst_384 [0] : vector<16x256xf32> to vector<256xf32>
    %475 = vector.shape_cast %474 : vector<256xf32> to vector<1x256xf32>
    %c2 = arith.constant 2 : index
    %c0_385 = arith.constant 0 : index
    %c0_386 = arith.constant 0 : index
    %476 = vector.load %arg10[%c2, %c0_385, %c0_386] : memref<4x16x256xf32, #tpu.memory_space<vmem>>, vector<1x16x256xf32>
    %477 = vector.shape_cast %476 : vector<1x16x256xf32> to vector<16x256xf32>
    %478 = arith.mulf %477, %465 : vector<16x256xf32>
    %cst_387 = arith.constant dense<0.000000e+00> : vector<256xf32>
    %479 = vector.multi_reduction <add>, %478, %cst_387 [0] : vector<16x256xf32> to vector<256xf32>
    %480 = vector.shape_cast %479 : vector<256xf32> to vector<1x256xf32>
    %c3 = arith.constant 3 : index
    %c0_388 = arith.constant 0 : index
    %c0_389 = arith.constant 0 : index
    %481 = vector.load %arg10[%c3, %c0_388, %c0_389] : memref<4x16x256xf32, #tpu.memory_space<vmem>>, vector<1x16x256xf32>
    %482 = vector.shape_cast %481 : vector<1x16x256xf32> to vector<16x256xf32>
    %483 = arith.mulf %482, %465 : vector<16x256xf32>
    %cst_390 = arith.constant dense<0.000000e+00> : vector<256xf32>
    %484 = vector.multi_reduction <add>, %483, %cst_390 [0] : vector<16x256xf32> to vector<256xf32>
    %485 = vector.shape_cast %484 : vector<256xf32> to vector<1x256xf32>
    %486 = tpu.concatenate %470, %475, %480, %485 in 0 : vector<1x256xf32>, vector<1x256xf32>, vector<1x256xf32>, vector<1x256xf32> -> vector<4x256xf32>
    %487 = vector.extract_strided_slice %486 {offsets = [0, 0], sizes = [4, 128], strides = [1, 1]} : vector<4x256xf32> to vector<4x128xf32>
    %cst_391 = arith.constant dense<0.000000e+00> : vector<4xf32>
    %488 = vector.multi_reduction <add>, %487, %cst_391 [1] : vector<4x128xf32> to vector<4xf32>
    %489 = vector.shape_cast %488 : vector<4xf32> to vector<4x1xf32>
    %490 = vector.extract_strided_slice %486 {offsets = [0, 128], sizes = [4, 128], strides = [1, 1]} : vector<4x256xf32> to vector<4x128xf32>
    %cst_392 = arith.constant dense<0.000000e+00> : vector<4xf32>
    %491 = vector.multi_reduction <add>, %490, %cst_392 [1] : vector<4x128xf32> to vector<4xf32>
    %492 = vector.shape_cast %491 : vector<4xf32> to vector<4x1xf32>
    %493 = tpu.concatenate %489, %492 in 1 : vector<4x1xf32>, vector<4x1xf32> -> vector<4x2xf32>
    %cst_393 = arith.constant 0.000000e+00 : f32
    %494 = vector.broadcast %cst_393 : f32 to vector<4x2xf32>
    %495 = arith.subf %494, %493 : vector<4x2xf32>
    %496 = math.exp %495 : vector<4x2xf32>
    %cst_394 = arith.constant 1.000000e+00 : f32
    %497 = vector.broadcast %cst_394 : f32 to vector<4x2xf32>
    %498 = arith.addf %497, %496 : vector<4x2xf32>
    %cst_395 = arith.constant 1.000000e+00 : f32
    %499 = vector.broadcast %cst_395 : f32 to vector<4x2xf32>
    %500 = arith.divf %499, %498 : vector<4x2xf32>
    %c0_396 = arith.constant 0 : index
    %c0_397 = arith.constant 0 : index
    %501 = vector.load %arg11[%c0_396, %c0_397] : memref<4x2xf32, #tpu.memory_space<vmem>>, vector<4x2xf32>
    tpu.vector_store %arg11[%c0_396, %c0_397], %500 {strides = array<i32>} : memref<4x2xf32, #tpu.memory_space<vmem>>, vector<4x2xf32>,
    return
  }
}

</mosaic_0001>

<bundles_post_ra>
// kernel: tpu_custom_call.1
= control target key start
LH: loop header
LB: loop body
LE: loop exit
PB: predicated region body
PF: predicated region fallthrough
CT: control target
= control target key end

     0   :  { %16 = vsyncpa [#allocation6], 0  ;;  %s5818_s0 = inlined_call_operand.vmem [shape: s32[1,256], index: 0, kind: input, shape index: {}]   ;;  %s5819_s1 = inlined_call_operand.hbm [shape: f32[16,256], index: 1, kind: input, shape index: {}]   ;;  %s5820_s2 = inlined_call_operand.vmem [shape: f32[16,304], index: 2, kind: input, shape index: {}]   ;;  %s5821_s3 = inlined_call_operand.vmem [shape: f32[16,1], index: 3, kind: input, shape index: {}]   ;;  %s5822_s4 = inlined_call_operand.hbm [shape: f32[16,304], index: 4, kind: input, shape index: {}]   ;;  %s5823_s5 = inlined_call_operand.vmem [shape: f32[16,1], index: 5, kind: input, shape index: {}]   ;;  %s5824_s6 = inlined_call_operand.hbm [shape: f32[16,304], index: 6, kind: input, shape index: {}]   ;;  %s5825_s7 = inlined_call_operand.vmem [shape: f32[16,1], index: 7, kind: input, shape index: {}]   ;;  %s5826_s8 = inlined_call_operand.vmem [shape: f32[16,304], index: 8, kind: input, shape index: {}]   ;;  %s5827_s9 = inlined_call_operand.vmem [shape: f32[16,1], index: 9, kind: input, shape index: {}]   ;;  %s5828_s10 = inlined_call_operand.hbm [shape: f32[4,16,256], index: 10, kind: input, shape index: {}]   ;;  %s5829_s11 = inlined_call_operand.vmem [shape: f32[4,2], index: 11, kind: output, shape index: {}]  }
   0x1   :  { %17 = vsyncpa [#allocation8], 0 }
   0x2   :  { %18 = vsyncpa [#allocation11], 0  ;;  %s4302_s17 = smov [#allocation7]   ;;  %s4208_s21 = scalar_lea.hbm %s5822_s4, 768 }
   0x3   :  { %s42_s18 = sshll.u32 %s4302_s17, 4  ;;  %p4209_p0 = scmp.ne.s32.totalorder %s5822_s4, %s4208_s21  ;;  %s43_s18 = int_to_ptr.vmem [resolvable:$true] %s42_s18 }
   0x4   :  { %p4212_p1 = scmp.lt.u32.totalorder %s4208_s21, %s5822_s4 }
   0x6   :  { %p4214_p2 = pnand %p4212_p1, %p4209_p0 }
   0x8   :  { %4217 = shalt.err (!%p4214_p2)
}
   0x9   :  { %s4218_s26 = scalar_lea.vmem %s43_s18, 768  ;;  %p4223_p4 = scmp.lt.s32.totalorder %s43_s18, %s43_s18 }
   0xa   :  { %p4219_p3 = scmp.ne.s32.totalorder %s43_s18, %s4218_s26  ;;  %p4224_p5 = scmp.lt.s32.totalorder %s4218_s26, %s4218_s26 }
   0xc   :  { %p4225_p6 = por %p4224_p5, %p4223_p4 }
   0xe   :  { %p4226_p7 = pnand %p4225_p6, %p4219_p3 }
  0x10   :  { %4229 = shalt.err (!%p4226_p7)
}
  0x11   :  { %s4303_s27 = smov 384   ;;  %s4304_s28 = smov 24  }
  0x12   :  { %48 = dma.hbm_to_vmem [thread:$0]  %s5822_s4, 768, %s43_s18, [#allocation8], %s4303_s27, %s4303_s27, %s4304_s28  }
  0x13   :  { %s4305_s12 = smov [#allocation5]   ;;  %s4230_s16 = scalar_lea.hbm %s5819_s1, 512 }
  0x14   :  { %s26_s13 = sshll.u32 %s4305_s12, 4  ;;  %p4231_p8 = scmp.ne.s32.totalorder %s5819_s1, %s4230_s16  ;;  %s27_s13 = int_to_ptr.vmem [resolvable:$true] %s26_s13 }
  0x15   :  { %p4234_p9 = scmp.lt.u32.totalorder %s4230_s16, %s5819_s1 }
  0x17   :  { %p4236_p10 = pnand %p4234_p9, %p4231_p8 }
  0x19   :  { %4239 = shalt.err (!%p4236_p10)
}
  0x1a   :  { %s4240_s22 = scalar_lea.vmem %s27_s13, 512  ;;  %p4245_p12 = scmp.lt.s32.totalorder %s27_s13, %s27_s13 }
  0x1b   :  { %p4241_p11 = scmp.ne.s32.totalorder %s27_s13, %s4240_s22  ;;  %p4246_p13 = scmp.lt.s32.totalorder %s4240_s22, %s4240_s22 }
  0x1d   :  { %p4247_p0 = por %p4246_p13, %p4245_p12 }
  0x1f   :  { %p4248_p1 = pnand %p4247_p0, %p4241_p11 }
  0x21   :  { %4251 = shalt.err (!%p4248_p1)
}
  0x22   :  { %s4306_s4 = smov 256   ;;  %s4307_s18 = smov 16  }
  0x23   :  { %32 = dma.hbm_to_vmem [thread:$0]  %s5819_s1, 512, %s27_s13, [#allocation6], %s4306_s4, %s4306_s4, %s4307_s18  }
  0x24   :  { %s4308_s25 = smov [#allocation9]   ;;  %s4309_s29 = smov [#allocation10]  }
  0x25   :  { %s56_s26 = sshll.u32 %s4308_s25, 4  ;;  %s74_s30 = sshll.u32 %s4309_s29, 4  ;;  %s57_s26 = int_to_ptr.vmem [resolvable:$true] %s56_s26  ;;  %s4425_s30 = int_to_ptr.vmem [resolvable:$true] %s74_s30 }
  0x26   :  { %s4252_s15 = scalar_lea.hbm %s5824_s6, 768 }
  0x27   :  { %p4253_p2 = scmp.ne.s32.totalorder %s5824_s6, %s4252_s15  ;;  %p4256_p3 = scmp.lt.u32.totalorder %s4252_s15, %s5824_s6 }
  0x29   :  { %p4258_p4 = pnand %p4256_p3, %p4253_p2 }
  0x2b   :  { %4261 = shalt.err (!%p4258_p4)
}
  0x2c   :  { %s4262_s1 = scalar_lea.vmem %s57_s26, 768  ;;  %p4267_p6 = scmp.lt.s32.totalorder %s57_s26, %s57_s26 }
  0x2d   :  { %p4263_p5 = scmp.ne.s32.totalorder %s57_s26, %s4262_s1  ;;  %p4268_p7 = scmp.lt.s32.totalorder %s4262_s1, %s4262_s1 }
  0x2f   :  { %p4269_p8 = por %p4268_p7, %p4267_p6 }
  0x31   :  { %p4270_p9 = pnand %p4269_p8, %p4263_p5 }
  0x33   :  { %4273 = shalt.err (!%p4270_p9)
}
  0x34   :  { %62 = dma.hbm_to_vmem [thread:$0]  %s5824_s6, 768, %s57_s26, [#allocation8], %s4303_s27, %s4303_s27, %s4304_s28  }
  0x35   :  { %s4274_s24 = scalar_lea.hbm %s5828_s10, 2048 }
  0x36   :  { %p4275_p10 = scmp.ne.s32.totalorder %s5828_s10, %s4274_s24  ;;  %p4278_p11 = scmp.lt.u32.totalorder %s4274_s24, %s5828_s10 }
  0x38   :  { %p4280_p12 = pnand %p4278_p11, %p4275_p10 }
  0x3a   :  { %4283 = shalt.err (!%p4280_p12)
}
  0x3b   :  { %s4284_s15 = scalar_lea.vmem %s4425_s30, 2048  ;;  %p4289_p0 = scmp.lt.s32.totalorder %s4425_s30, %s4425_s30 }
  0x3c   :  { %p4285_p13 = scmp.ne.s32.totalorder %s4425_s30, %s4284_s15  ;;  %p4290_p1 = scmp.lt.s32.totalorder %s4284_s15, %s4284_s15 }
  0x3e   :  { %p4291_p2 = por %p4290_p1, %p4289_p0 }
  0x40   :  { %p4292_p3 = pnand %p4291_p2, %p4285_p13 }
  0x42   :  { %4295 = shalt.err (!%p4292_p3)
}
  0x43   :  { %80 = dma.hbm_to_vmem [thread:$0]  %s5828_s10, 2048, %s4425_s30, [#allocation11], %s4306_s4, %s4306_s4, %s4307_s18  }
  0x44   :  { %4296 = dma.done.wait [#allocation6], 512  }
  0x45   :  { %4297 = vsyncadd [#allocation6], 4294966784 }
  0x46   :  { %4298 = dma.done.wait [#allocation8], 1536  }
  0x47   :  { %4299 = vsyncadd [#allocation8], 4294965760 }
  0x48   :  { %4300 = dma.done.wait [#allocation11], 2048  }
  0x49   :  { %4301 = vsyncadd [#allocation11], 4294965248  ;;  %v4462_v0 = vld [vmem:[#allocation5] sm:$0xff]  ;;  %v4464_v1 = vld [vmem:[#allocation5 + $0x10] sm:$0xff]  ;;  %s4310_s26 = smov 68   ;;  %s4311_s10 = smov 72   ;;  %v102_v10 = vlaneseq }
  0x4a   :  { %v4466_v2 = vld [vmem:[#allocation5 + $0x8] sm:$0xff]  ;;  %v3548_v3 = vpack.i.bf16 %v4464_v1, %v4462_v0  ;;  %v4470_v4 = vld [vmem:[#allocation5 + $0x18] sm:$0xff]  ;;  %s4312_s4 = smov 64   ;;  %s4313_s30 = smov 60   ;;  %v616_v7 = vld [vmem:[%s5821_s3] sm:$0xff]  ;;  %v4326_v9 = vmov 0  }
  0x4b   :  { %v3553_v5 = vpack.i.bf16 %v4470_v4, %v4466_v2  ;;  %s4314_s16 = smov 56   ;;  %s4315_s17 = smov 52   ;;  %v535_v6 = vld [vmem:[%s5820_s2 + $0x8] sm:$0xff]  ;;  %3718 = vset.pattern.permute.xlu0 %v4326_v9  ;;  %3719 = vset.pattern.permute.xlu1 %v4326_v9  ;;  %v103_v11 = vshrl.u32 %v102_v10, 7  ;;  %v101_v13 = vld [vmem:[%s5818_s0] sm:$0x3] }
  0x4c   :  { %3549 = vrot.lane.b32.xlu1 %v3548_v3, %s4310_s26  ;;  %3539 = vrot.lane.b32.xlu0 %v3548_v3, %s4311_s10  ;;  %s4316_s19 = smov 48   ;;  %s4317_s20 = smov 44   ;;  %v617_v8 = vld [vmem:[%s5821_s3 + $0x8] sm:$0xff]  ;;  %v4522_v17 = vand.u32 127, %v102_v10 }
  0x4d   :  { %s4318_s1 = smov 40   ;;  %s4319_s13 = smov 36   ;;  %699 = vmatprep.mubr.f32.mxu0 %v535_v6  ;;  %v108_v12 = vsub.s32 1, %v103_v11  ;;  %v104_v14 = vsub.s32 0, %v103_v11 }
  0x4e   :  { %s4320_s21 = smov 32   ;;  %s4321_s22 = smov 28   ;;  %vm5835_vm0 = vcmp.lt.s32.totalorder %v4522_v17, 68  ;;  %vm5837_vm1 = vcmp.lt.s32.totalorder %v4522_v17, 72  ;;  %vm5834_vm4 = vcmp.lt.s32.totalorder %v4522_v17, 64  ;;  %vm5832_vm10 = vcmp.lt.s32.totalorder %v4522_v17, 60 }
  0x4f   :  { %s4322_s23 = smov 20   ;;  %s4323_s29 = smov 12   ;;  %v4524_v18 = vrot.slane %v101_v13, %v108_v12  ;;  %v4526_v19 = vrot.slane %v101_v13, %v104_v14  ;;  %vm5833_vm15 = vcmp.lt.s32.totalorder %v4522_v17, 56 }
  0x50   :  { %3554 = vrot.lane.b32.xlu1 %v3553_v5, %s4310_s26  ;;  %3544 = vrot.lane.b32.xlu0 %v3553_v5, %s4311_s10  ;;  %s5830_s12 = smov 8   ;;  %s4325_s14 = smov 4  }
  0x51   :  { %vm130_vm2 = vcmp.ge.s32.totalorder %v4524_v18, 72  ;;  %vm129_vm3 = vcmp.ge.s32.totalorder %v4526_v19, 72  ;;  %vm153_vm5 = vcmp.ge.s32.totalorder %v4524_v18, 68  ;;  %vm152_vm9 = vcmp.ge.s32.totalorder %v4526_v19, 68 }
  0x52   :  { %vm4542_vm6 = vmpackc.low %vm130_vm2, %vm130_vm2  ;;  %vm176_vm11 = vcmp.ge.s32.totalorder %v4524_v18, 64  ;;  %vm175_vm14 = vcmp.ge.s32.totalorder %v4526_v19, 64  ;;  %vm199_vm2 = vcmp.ge.s32.totalorder %v4524_v18, 60 }
  0x53   :  { %vm4550_vm7 = vmpackc.low %vm129_vm3, %vm129_vm3 }
  0x54   :  { %3564 = vrot.lane.b32.xlu1 %v3553_v5, %s4312_s4  ;;  %3559 = vrot.lane.b32.xlu0 %v3548_v3, %s4312_s4  ;;  %vm4554_vm8 = vmpackc.low %vm153_vm5, %vm153_vm5 }
  0x55   :  { %vm4579_vm12 = vmpackc.low %vm152_vm9, %vm152_vm9  ;;  %vm198_vm9 = vcmp.ge.s32.totalorder %v4526_v19, 60 }
  0x56   :  { %vm4586_vm13 = vmpackc.low %vm176_vm11, %vm176_vm11  ;;  %vm5836_vm11 = vcmp.lt.s32.totalorder %v4522_v17, 52 }
  0x57   :  { %vm4605_vm3 = vmpackc.low %vm175_vm14, %vm175_vm14  ;;  %vm222_vm14 = vcmp.ge.s32.totalorder %v4524_v18, 56 }
  0x58   :  { %3574 = vrot.lane.b32.xlu1 %v3553_v5, %s4313_s30  ;;  %3569 = vrot.lane.b32.xlu0 %v3548_v3, %s4313_s30  ;;  %vm4609_vm5 = vmpackc.low %vm199_vm2, %vm199_vm2 }
  0x59   :  { %vm4628_vm2 = vmpackc.low %vm198_vm9, %vm198_vm9  ;;  %vm5838_vm9 = vcmp.lt.s32.totalorder %v4522_v17, 48 }
  0x5c   :  { %3584 = vrot.lane.b32.xlu1 %v3553_v5, %s4314_s16  ;;  %3579 = vrot.lane.b32.xlu0 %v3548_v3, %s4314_s16 }
  0x60   :  { %3594 = vrot.lane.b32.xlu1 %v3553_v5, %s4315_s17  ;;  %3589 = vrot.lane.b32.xlu0 %v3548_v3, %s4315_s17 }
  0x64   :  { %3604 = vrot.lane.b32.xlu1 %v3553_v5, %s4316_s19  ;;  %3599 = vrot.lane.b32.xlu0 %v3548_v3, %s4316_s19 }
  0x68   :  { %3614 = vrot.lane.b32.xlu1 %v3553_v5, %s4317_s20  ;;  %3609 = vrot.lane.b32.xlu0 %v3548_v3, %s4317_s20 }
  0x6c   :  { %3624 = vrot.lane.b32.xlu1 %v3553_v5, %s4318_s1  ;;  %3619 = vrot.lane.b32.xlu0 %v3548_v3, %s4318_s1 }
  0x70   :  { %3634 = vrot.lane.b32.xlu1 %v3553_v5, %s4319_s13  ;;  %3629 = vrot.lane.b32.xlu0 %v3548_v3, %s4319_s13 }
  0x74   :  { %3644 = vrot.lane.b32.xlu1 %v3553_v5, %s4320_s21  ;;  %3639 = vrot.lane.b32.xlu0 %v3548_v3, %s4320_s21 }
  0x78   :  { %3654 = vrot.lane.b32.xlu1 %v3553_v5, %s4321_s22  ;;  %3649 = vrot.lane.b32.xlu0 %v3548_v3, %s4321_s22 }
  0x7c   :  { %3664 = vrot.lane.b32.xlu1 %v3553_v5, %s4304_s28  ;;  %3659 = vrot.lane.b32.xlu0 %v3548_v3, %s4304_s28 }
  0x80   :  { %3674 = vrot.lane.b32.xlu1 %v3553_v5, %s4322_s23  ;;  %3669 = vrot.lane.b32.xlu0 %v3548_v3, %s4322_s23 }
  0x84   :  { %3684 = vrot.lane.b32.xlu1 %v3553_v5, %s4307_s18  ;;  %3679 = vrot.lane.b32.xlu0 %v3548_v3, %s4307_s18 }
  0x88   :  { %3694 = vrot.lane.b32.xlu1 %v3553_v5, %s4323_s29  ;;  %3689 = vrot.lane.b32.xlu0 %v3548_v3, %s4323_s29 }
  0x8c   :  { %3704 = vrot.lane.b32.xlu1 %v3553_v5, %s5830_s12  ;;  %3699 = vrot.lane.b32.xlu0 %v3548_v3, %s5830_s12 }
  0x90   :  { %3714 = vrot.lane.b32.xlu1 %v3553_v5, %s4325_s14  ;;  %3709 = vrot.lane.b32.xlu0 %v3548_v3, %s4325_s14 }
  0x94   :  { %620 = vperm.xlu0 %3718, %v616_v7   ;;  %625 = vperm.xlu1 %3719, %v617_v8  }
  0xbe   :  { %v3550_v15 = vpop.permute.xlu1 %3549  ;;  %v3540_v16 = vpop.permute.xlu0 %3539 }
  0xbf   :  { %v3552_v20 = vunpack.i.h.bf16 %v3550_v15  ;;  %v3551_v21 = vunpack.i.l.bf16 %v3550_v15  ;;  %v3542_v28 = vunpack.i.h.bf16 %v3540_v16  ;;  %v3541_v29 = vunpack.i.l.bf16 %v3540_v16 }
  0xc2   :  { %v3555_v22 = vpop.permute.xlu1 %3554  ;;  %v3545_v23 = vpop.permute.xlu0 %3544 }
  0xc3   :  { %v3557_v24 = vunpack.i.h.bf16 %v3555_v22  ;;  %v3556_v25 = vunpack.i.l.bf16 %v3555_v22  ;;  %v3547_v26 = vunpack.i.h.bf16 %v3545_v23  ;;  %v3546_v27 = vunpack.i.l.bf16 %v3545_v23 }
  0xc5   :  { %v148_v30 = vsel %vm5835_vm0, %v3551_v21, %v3556_v25  ;;  %v149_v31 = vsel %vm5835_vm0, %v3552_v20, %v3557_v24  ;;  %v125_v32 = vsel %vm5837_vm1, %v3541_v29, %v3546_v27  ;;  %v126_v33 = vsel %vm5837_vm1, %v3542_v28, %v3547_v26 }
  0xc6   :  { %v127_v35 = vsel %vm5837_vm1, %v3546_v27, %v3541_v29  ;;  %v128_v36 = vsel %vm5837_vm1, %v3547_v26, %v3542_v28  ;;  %v3565_v37 = vpop.permute.xlu1 %3564  ;;  %v3560_v38 = vpop.permute.xlu0 %3559  ;;  %v3049_v39 = vpack.c.bf16 %v126_v33, %v125_v32  ;;  %v150_v47 = vsel %vm5835_vm0, %v3556_v25, %v3551_v21 }
  0xc7   :  { %v3052_v40 = vpack.c.bf16 %v128_v36, %v127_v35  ;;  %v3567_v42 = vunpack.i.h.bf16 %v3565_v37  ;;  %v3566_v43 = vunpack.i.l.bf16 %v3565_v37  ;;  %v3562_v44 = vunpack.i.h.bf16 %v3560_v38 }
  0xc8   :  { %v3561_v45 = vunpack.i.l.bf16 %v3560_v38  ;;  %v151_v48 = vsel %vm5835_vm0, %v3557_v24, %v3552_v20  ;;  %3051 = vmatprep.subr.msk.bf16.mxu0 %vm4542_vm6, %v3049_v39  ;;  %v3055_v49 = vpack.c.bf16 %v149_v31, %v148_v30  ;;  %v5911_v29 = vmov 0 }
  0xc9   :  { %3054 = vmatpush1.bf16.msk.msra.mxu0 %vm4550_vm7, %v3052_v40  ;;  %v172_v50 = vsel %vm5834_vm4, %v3562_v44, %v3567_v42  ;;  %v174_v51 = vsel %vm5834_vm4, %v3567_v42, %v3562_v44  ;;  %v3058_v61 = vpack.c.bf16 %v151_v48, %v150_v47  ;;  %v5912_v29 = vsel %vm4628_vm2, 4294967295, %v5911_v29 }
  0xca   :  { %v171_v52 = vsel %vm5834_vm4, %v3561_v45, %v3566_v43  ;;  %v173_v53 = vsel %vm5834_vm4, %v3566_v43, %v3561_v45  ;;  %v3575_v54 = vpop.permute.xlu1 %3574  ;;  %v3570_v55 = vpop.permute.xlu0 %3569  ;;  %3057 = vmatprep.subr.msk.bf16.mxu0 %vm4554_vm8, %v3055_v49  ;;  %v5913_v35 = vmov 0  ;;  %vm245_vm4 = vcmp.ge.s32.totalorder %v4524_v18, 52 }
  0xcb   :  { %v3577_v57 = vunpack.i.h.bf16 %v3575_v54  ;;  %v3576_v58 = vunpack.i.l.bf16 %v3575_v54  ;;  %v3572_v59 = vunpack.i.h.bf16 %v3570_v55  ;;  %v3571_v60 = vunpack.i.l.bf16 %v3570_v55  ;;  %vm4655_vm0 = vmpackc.low %vm245_vm4, %vm245_vm4 }
  0xcc   :  { %v3061_v62 = vpack.c.bf16 %v172_v50, %v171_v52  ;;  %v3064_v8 = vpack.c.bf16 %v174_v51, %v173_v53  ;;  %v5915_v45 = vmov 0  ;;  %v5917_v51 = vmov 0 }
  0xcd   :  { %v195_v3 = vsel %vm5832_vm10, %v3572_v59, %v3577_v57  ;;  %v194_v5 = vsel %vm5832_vm10, %v3571_v60, %v3576_v58  ;;  %3060 = vmatpush1.bf16.msk.msra.mxu0 %vm4579_vm12, %v3058_v61  ;;  %v197_v6 = vsel %vm5832_vm10, %v3577_v57, %v3572_v59  ;;  %v196_v7 = vsel %vm5832_vm10, %v3576_v58, %v3571_v60  ;;  %vm4632_vm10 = vmpackc.low %vm222_vm14, %vm222_vm14 }
  0xce   :  { %v3585_v9 = vpop.permute.xlu1 %3584  ;;  %v3580_v10 = vpop.permute.xlu0 %3579  ;;  %v3067_v11 = vpack.c.bf16 %v195_v3, %v194_v5  ;;  %3063 = vmatprep.subr.msk.bf16.mxu0 %vm4586_vm13, %v3061_v62  ;;  %v3070_v25 = vpack.c.bf16 %v197_v6, %v196_v7  ;;  %v5914_v35 = vsel %vm4632_vm10, 4294967295, %v5913_v35  ;;  %v5918_v51 = vsel %vm4655_vm0, 4294967295, %v5917_v51 }
  0xcf   :  { %v3587_v13 = vunpack.i.h.bf16 %v3585_v9  ;;  %v3586_v14 = vunpack.i.l.bf16 %v3585_v9  ;;  %v3582_v15 = vunpack.i.h.bf16 %v3580_v10  ;;  %v3581_v16 = vunpack.i.l.bf16 %v3580_v10 }
  0xd0   :  { %vm268_vm1 = vcmp.ge.s32.totalorder %v4524_v18, 48  ;;  %v5919_v61 = vmov 0  ;;  %v5921_v7 = vmov 0 }
  0xd1   :  { %v218_v21 = vsel %vm5833_vm15, %v3582_v15, %v3587_v13  ;;  %v217_v22 = vsel %vm5833_vm15, %v3581_v16, %v3586_v14  ;;  %3066 = vmatpush1.bf16.msk.msra.mxu0 %vm4605_vm3, %v3064_v8  ;;  %v220_v23 = vsel %vm5833_vm15, %v3587_v13, %v3582_v15  ;;  %v219_v24 = vsel %vm5833_vm15, %v3586_v14, %v3581_v16 }
  0xd2   :  { %v3595_v26 = vpop.permute.xlu1 %3594  ;;  %v3590_v27 = vpop.permute.xlu0 %3589  ;;  %v3073_v28 = vpack.c.bf16 %v218_v21, %v217_v22  ;;  %3069 = vmatprep.subr.msk.bf16.mxu0 %vm4609_vm5, %v3067_v11  ;;  %vm221_vm15 = vcmp.ge.s32.totalorder %v4526_v19, 56  ;;  %v3076_v40 = vpack.c.bf16 %v220_v23, %v219_v24  ;;  %v5927_v21 = vmov 0 }
  0xd3   :  { %v3597_v30 = vunpack.i.h.bf16 %v3595_v26  ;;  %v3596_v31 = vunpack.i.l.bf16 %v3595_v26  ;;  %v3592_v32 = vunpack.i.h.bf16 %v3590_v27  ;;  %v3591_v33 = vunpack.i.l.bf16 %v3590_v27  ;;  %vm4651_vm14 = vmpackc.low %vm221_vm15, %vm221_vm15 }
  0xd4   :  { %v5916_v45 = vsel %vm4651_vm14, 4294967295, %v5915_v45  ;;  %vm4678_vm15 = vmpackc.low %vm268_vm1, %vm268_vm1  ;;  %v5929_v26 = vmov 0 }
  0xd5   :  { %v241_v36 = vsel %vm5836_vm11, %v3592_v32, %v3597_v30  ;;  %v240_v37 = vsel %vm5836_vm11, %v3591_v33, %v3596_v31  ;;  %3072 = vmatpush1.bf16.msk.msra.mxu0 %vm4628_vm2, %v3070_v25  ;;  %v243_v38 = vsel %vm5836_vm11, %v3597_v30, %v3592_v32  ;;  %v242_v39 = vsel %vm5836_vm11, %v3596_v31, %v3591_v33 }
  0xd6   :  { %v3605_v42 = vpop.permute.xlu1 %3604  ;;  %v3600_v43 = vpop.permute.xlu0 %3599  ;;  %v3079_v44 = vpack.c.bf16 %v241_v36, %v240_v37  ;;  %3075 = vmatprep.subr.msk.bf16.mxu0 %vm4632_vm10, %v3073_v28  ;;  %vm244_vm11 = vcmp.ge.s32.totalorder %v4526_v19, 52  ;;  %v3082_v57 = vpack.c.bf16 %v243_v38, %v242_v39  ;;  %v5922_v7 = vsel %vm4678_vm15, 4294967295, %v5921_v7 }
  0xd7   :  { %v3607_v47 = vunpack.i.h.bf16 %v3605_v42  ;;  %v3606_v48 = vunpack.i.l.bf16 %v3605_v42  ;;  %v3602_v49 = vunpack.i.h.bf16 %v3600_v43  ;;  %v3601_v50 = vunpack.i.l.bf16 %v3600_v43  ;;  %vm4674_vm4 = vmpackc.low %vm244_vm11, %vm244_vm11 }
  0xd8   :  { %v5920_v61 = vsel %vm4674_vm4, 4294967295, %v5919_v61  ;;  %vm5845_vm11 = vcmp.lt.s32.totalorder %v4522_v17, 40  ;;  %v5931_v38 = vmov 0 }
  0xd9   :  { %v264_v52 = vsel %vm5838_vm9, %v3602_v49, %v3607_v47  ;;  %v263_v53 = vsel %vm5838_vm9, %v3601_v50, %v3606_v48  ;;  %3078 = vmatpush1.bf16.msk.msra.mxu0 %vm4651_vm14, %v3076_v40  ;;  %v266_v54 = vsel %vm5838_vm9, %v3607_v47, %v3602_v49  ;;  %v265_v55 = vsel %vm5838_vm9, %v3606_v48, %v3601_v50 }
  0xda   :  { %v3615_v58 = vpop.permute.xlu1 %3614  ;;  %v3610_v59 = vpop.permute.xlu0 %3609  ;;  %v3085_v60 = vpack.c.bf16 %v264_v52, %v263_v53  ;;  %3081 = vmatprep.subr.msk.bf16.mxu0 %vm4655_vm0, %v3079_v44  ;;  %vm267_vm9 = vcmp.ge.s32.totalorder %v4526_v19, 48  ;;  %vm5923_vm14 = vcmp.lt.s32.totalorder %v4522_v17, 44  ;;  %vm291_vm0 = vcmp.ge.s32.totalorder %v4524_v18, 44 }
  0xdb   :  { %v3617_v62 = vunpack.i.h.bf16 %v3615_v58  ;;  %v3616_v3 = vunpack.i.l.bf16 %v3615_v58  ;;  %v3612_v5 = vunpack.i.h.bf16 %v3610_v59  ;;  %v3611_v6 = vunpack.i.l.bf16 %v3610_v59  ;;  %vm5924_vm10 = vmmov %vm5923_vm14 }
  0xdc   :  { %vm5925_vm1 = vmmov %vm5924_vm10  ;;  %v3088_v13 = vpack.c.bf16 %v266_v54, %v265_v55  ;;  %v5933_v44 = vmov 0 }
  0xdd   :  { %v287_v8 = vsel %vm5923_vm14, %v3612_v5, %v3617_v62  ;;  %v286_v9 = vsel %vm5924_vm10, %v3611_v6, %v3616_v3  ;;  %3084 = vmatpush1.bf16.msk.msra.mxu0 %vm4674_vm4, %v3082_v57  ;;  %v289_v10 = vsel %vm5925_vm1, %v3617_v62, %v3612_v5  ;;  %vm5926_vm2 = vmmov %vm5925_vm1  ;;  %vm314_vm1 = vcmp.ge.s32.totalorder %v4524_v18, 40 }
  0xde   :  { %v288_v11 = vsel %vm5926_vm2, %v3616_v3, %v3611_v6  ;;  %v3625_v14 = vpop.permute.xlu1 %3624  ;;  %v3620_v15 = vpop.permute.xlu0 %3619  ;;  %v3091_v16 = vpack.c.bf16 %v287_v8, %v286_v9  ;;  %3087 = vmatprep.subr.msk.bf16.mxu0 %vm4678_vm15, %v3085_v60  ;;  %vm4697_vm10 = vmpackc.low %vm267_vm9, %vm267_vm9  ;;  %vm290_vm2 = vcmp.ge.s32.totalorder %v4526_v19, 44  ;;  %v5939_v57 = vmov 0 }
  0xdf   :  { %v5928_v21 = vsel %vm4697_vm10, 4294967295, %v5927_v21  ;;  %v3627_v22 = vunpack.i.h.bf16 %v3625_v14  ;;  %v3626_v23 = vunpack.i.l.bf16 %v3625_v14  ;;  %v3622_v24 = vunpack.i.h.bf16 %v3620_v15  ;;  %vm4701_vm14 = vmpackc.low %vm291_vm0, %vm291_vm0 }
  0xe0   :  { %v3621_v25 = vunpack.i.l.bf16 %v3620_v15  ;;  %v5930_v26 = vsel %vm4701_vm14, 4294967295, %v5929_v26  ;;  %v3094_v32 = vpack.c.bf16 %v289_v10, %v288_v11  ;;  %vm4720_vm0 = vmpackc.low %vm290_vm2, %vm290_vm2  ;;  %vm5852_vm2 = vcmp.lt.s32.totalorder %v4522_v17, 32 }
  0xe1   :  { %v310_v27 = vsel %vm5845_vm11, %v3622_v24, %v3627_v22  ;;  %3090 = vmatpush1.bf16.msk.msra.mxu0 %vm4697_vm10, %v3088_v13  ;;  %v312_v30 = vsel %vm5845_vm11, %v3627_v22, %v3622_v24  ;;  %v5932_v38 = vsel %vm4720_vm0, 4294967295, %v5931_v38  ;;  %vm4724_vm9 = vmpackc.low %vm314_vm1, %vm314_vm1  ;;  %vm5935_vm10 = vcmp.lt.s32.totalorder %v4522_v17, 36 }
  0xe2   :  { %v309_v28 = vsel %vm5845_vm11, %v3621_v25, %v3626_v23  ;;  %v311_v31 = vsel %vm5845_vm11, %v3626_v23, %v3621_v25  ;;  %v3635_v33 = vpop.permute.xlu1 %3634  ;;  %v3630_v36 = vpop.permute.xlu0 %3629  ;;  %3093 = vmatprep.subr.msk.bf16.mxu0 %vm4701_vm14, %v3091_v16  ;;  %v5934_v44 = vsel %vm4724_vm9, 4294967295, %v5933_v44  ;;  %vm313_vm11 = vcmp.ge.s32.totalorder %v4526_v19, 40  ;;  %vm5936_vm15 = vmmov %vm5935_vm10 }
  0xe3   :  { %v3097_v37 = vpack.c.bf16 %v310_v27, %v309_v28  ;;  %v3637_v39 = vunpack.i.h.bf16 %v3635_v33  ;;  %v3636_v40 = vunpack.i.l.bf16 %v3635_v33  ;;  %v3632_v42 = vunpack.i.h.bf16 %v3630_v36  ;;  %vm5937_vm1 = vmmov %vm5935_vm10 }
  0xe4   :  { %v3631_v43 = vunpack.i.l.bf16 %v3630_v36  ;;  %vm337_vm14 = vcmp.ge.s32.totalorder %v4524_v18, 36  ;;  %vm5938_vm4 = vmmov %vm5937_vm1  ;;  %v3100_v52 = vpack.c.bf16 %v312_v30, %v311_v31  ;;  %v5941_v3 = vmov 0 }
  0xe5   :  { %v333_v47 = vsel %vm5935_vm10, %v3632_v42, %v3637_v39  ;;  %3096 = vmatpush1.bf16.msk.msra.mxu0 %vm4720_vm0, %v3094_v32  ;;  %v335_v49 = vsel %vm5937_vm1, %v3637_v39, %v3632_v42  ;;  %vm4747_vm10 = vmpackc.low %vm337_vm14, %vm337_vm14  ;;  %vm360_vm1 = vcmp.ge.s32.totalorder %v4524_v18, 32  ;;  %v5943_v15 = vmov 0 }
  0xe6   :  { %v332_v48 = vsel %vm5936_vm15, %v3631_v43, %v3636_v40  ;;  %v334_v50 = vsel %vm5938_vm4, %v3636_v40, %v3631_v43  ;;  %v3645_v53 = vpop.permute.xlu1 %3644  ;;  %v3640_v54 = vpop.permute.xlu0 %3639  ;;  %3099 = vmatprep.subr.msk.bf16.mxu0 %vm4724_vm9, %v3097_v37  ;;  %vm4743_vm15 = vmpackc.low %vm313_vm11, %vm313_vm11  ;;  %v5942_v3 = vsel %vm4747_vm10, 4294967295, %v5941_v3  ;;  %vm336_vm4 = vcmp.ge.s32.totalorder %v4526_v19, 36 }
  0xe7   :  { %v3103_v55 = vpack.c.bf16 %v333_v47, %v332_v48  ;;  %v5940_v57 = vsel %vm4743_vm15, 4294967295, %v5939_v57  ;;  %v3647_v58 = vunpack.i.h.bf16 %v3645_v53  ;;  %v3646_v59 = vunpack.i.l.bf16 %v3645_v53  ;;  %vm4766_vm14 = vmpackc.low %vm336_vm4, %vm336_vm4 }
  0xe8   :  { %v3642_v60 = vunpack.i.h.bf16 %v3640_v54  ;;  %v3641_v62 = vunpack.i.l.bf16 %v3640_v54  ;;  %v3106_v10 = vpack.c.bf16 %v335_v49, %v334_v50  ;;  %v5944_v15 = vsel %vm4766_vm14, 4294967295, %v5943_v15  ;;  %vm4770_vm11 = vmpackc.low %vm360_vm1, %vm360_vm1 }
  0xe9   :  { %3102 = vmatpush1.bf16.msk.msra.mxu0 %vm4743_vm15, %v3100_v52  ;;  %v5945_v25 = vmov 0  ;;  %vm5947_vm15 = vcmp.lt.s32.totalorder %v4522_v17, 28  ;;  %vm5859_vm4 = vcmp.lt.s32.totalorder %v4522_v17, 24  ;;  %v5951_v39 = vmov 0 }
  0xea   :  { %v356_v5 = vsel %vm5852_vm2, %v3642_v60, %v3647_v58  ;;  %v355_v6 = vsel %vm5852_vm2, %v3641_v62, %v3646_v59  ;;  %v358_v8 = vsel %vm5852_vm2, %v3647_v58, %v3642_v60  ;;  %v357_v9 = vsel %vm5852_vm2, %v3646_v59, %v3641_v62  ;;  %v3655_v11 = vpop.permute.xlu1 %3654  ;;  %v3650_v13 = vpop.permute.xlu0 %3649  ;;  %3105 = vmatprep.subr.msk.bf16.mxu0 %vm4747_vm10, %v3103_v55  ;;  %vm5948_vm9 = vmmov %vm5947_vm15 }
  0xeb   :  { %v3109_v14 = vpack.c.bf16 %v356_v5, %v355_v6  ;;  %v3657_v16 = vunpack.i.h.bf16 %v3655_v11  ;;  %v3656_v22 = vunpack.i.l.bf16 %v3655_v11  ;;  %v3652_v23 = vunpack.i.h.bf16 %v3650_v13  ;;  %vm5949_vm1 = vmmov %vm5948_vm9 }
  0xec   :  { %v3651_v24 = vunpack.i.l.bf16 %v3650_v13  ;;  %v5946_v25 = vsel %vm4770_vm11, 4294967295, %v5945_v25  ;;  %vm359_vm2 = vcmp.ge.s32.totalorder %v4526_v19, 32  ;;  %vm383_vm10 = vcmp.ge.s32.totalorder %v4524_v18, 28  ;;  %vm5950_vm0 = vmmov %vm5949_vm1 }
  0xed   :  { %v379_v27 = vsel %vm5947_vm15, %v3652_v23, %v3657_v16  ;;  %3108 = vmatpush1.bf16.msk.msra.mxu0 %vm4766_vm14, %v3106_v10  ;;  %v381_v30 = vsel %vm5949_vm1, %v3657_v16, %v3652_v23  ;;  %v3112_v32 = vpack.c.bf16 %v358_v8, %v357_v9  ;;  %vm4793_vm15 = vmpackc.low %vm383_vm10, %vm383_vm10  ;;  %v5953_v48 = vmov 0 }
  0xee   :  { %v378_v28 = vsel %vm5948_vm9, %v3651_v24, %v3656_v22  ;;  %v380_v31 = vsel %vm5950_vm0, %v3656_v22, %v3651_v24  ;;  %v3665_v33 = vpop.permute.xlu1 %3664  ;;  %v3660_v36 = vpop.permute.xlu0 %3659  ;;  %3111 = vmatprep.subr.msk.bf16.mxu0 %vm4770_vm11, %v3109_v14  ;;  %vm4789_vm9 = vmpackc.low %vm359_vm2, %vm359_vm2  ;;  %v5954_v48 = vsel %vm4793_vm15, 4294967295, %v5953_v48  ;;  %vm382_vm0 = vcmp.ge.s32.totalorder %v4526_v19, 28 }
  0xef   :  { %v3115_v37 = vpack.c.bf16 %v379_v27, %v378_v28  ;;  %v5952_v39 = vsel %vm4789_vm9, 4294967295, %v5951_v39  ;;  %v3667_v40 = vunpack.i.h.bf16 %v3665_v33  ;;  %v3666_v42 = vunpack.i.l.bf16 %v3665_v33  ;;  %vm4812_vm10 = vmpackc.low %vm382_vm0, %vm382_vm0 }
  0xf0   :  { %v3662_v43 = vunpack.i.h.bf16 %v3660_v36  ;;  %v3661_v47 = vunpack.i.l.bf16 %v3660_v36  ;;  %vm406_vm1 = vcmp.ge.s32.totalorder %v4524_v18, 24  ;;  %v3118_v54 = vpack.c.bf16 %v381_v30, %v380_v31 }
  0xf1   :  { %3114 = vmatpush1.bf16.msk.msra.mxu0 %vm4789_vm9, %v3112_v32  ;;  %v5955_v60 = vmov 0  ;;  %vm4816_vm2 = vmpackc.low %vm406_vm1, %vm406_vm1  ;;  %v5957_v9 = vmov 0  ;;  %vm5959_vm9 = vcmp.lt.s32.totalorder %v4522_v17, 20  ;;  %vm5866_vm0 = vcmp.lt.s32.totalorder %v4522_v17, 16 }
  0xf2   :  { %v402_v49 = vsel %vm5859_vm4, %v3662_v43, %v3667_v40  ;;  %v401_v50 = vsel %vm5859_vm4, %v3661_v47, %v3666_v42  ;;  %v404_v52 = vsel %vm5859_vm4, %v3667_v40, %v3662_v43  ;;  %v403_v53 = vsel %vm5859_vm4, %v3666_v42, %v3661_v47  ;;  %v3675_v55 = vpop.permute.xlu1 %3674  ;;  %v3670_v58 = vpop.permute.xlu0 %3669  ;;  %3117 = vmatprep.subr.msk.bf16.mxu0 %vm4793_vm15, %v3115_v37  ;;  %vm5960_vm11 = vmmov %vm5959_vm9 }
  0xf3   :  { %v3121_v59 = vpack.c.bf16 %v402_v49, %v401_v50  ;;  %v5956_v60 = vsel %vm4812_vm10, 4294967295, %v5955_v60  ;;  %v3677_v62 = vunpack.i.h.bf16 %v3675_v55  ;;  %v3676_v5 = vunpack.i.l.bf16 %v3675_v55  ;;  %vm5961_vm1 = vmmov %vm5959_vm9 }
  0xf4   :  { %v3672_v6 = vunpack.i.h.bf16 %v3670_v58  ;;  %v3671_v8 = vunpack.i.l.bf16 %v3670_v58  ;;  %v5958_v9 = vsel %vm4816_vm2, 4294967295, %v5957_v9  ;;  %vm405_vm4 = vcmp.ge.s32.totalorder %v4526_v19, 24  ;;  %vm5962_vm14 = vmmov %vm5961_vm1 }
  0xf5   :  { %vm429_vm15 = vcmp.ge.s32.totalorder %v4524_v18, 20  ;;  %3120 = vmatpush1.bf16.msk.msra.mxu0 %vm4812_vm10, %v3118_v54  ;;  %v3124_v16 = vpack.c.bf16 %v404_v52, %v403_v53  ;;  %v5963_v27 = vmov 0  ;;  %v5965_v33 = vmov 0 }
  0xf6   :  { %v425_v10 = vsel %vm5959_vm9, %v3672_v6, %v3677_v62  ;;  %v424_v11 = vsel %vm5960_vm11, %v3671_v8, %v3676_v5  ;;  %v427_v13 = vsel %vm5961_vm1, %v3677_v62, %v3672_v6  ;;  %v426_v14 = vsel %vm5962_vm14, %v3676_v5, %v3671_v8  ;;  %v3685_v22 = vpop.permute.xlu1 %3684  ;;  %v3680_v23 = vpop.permute.xlu0 %3679  ;;  %3123 = vmatprep.subr.msk.bf16.mxu0 %vm4816_vm2, %v3121_v59  ;;  %vm4835_vm11 = vmpackc.low %vm405_vm4, %vm405_vm4 }
  0xf7   :  { %v3127_v24 = vpack.c.bf16 %v425_v10, %v424_v11  ;;  %v5964_v27 = vsel %vm4835_vm11, 4294967295, %v5963_v27  ;;  %v3687_v28 = vunpack.i.h.bf16 %v3685_v22  ;;  %v3686_v30 = vunpack.i.l.bf16 %v3685_v22  ;;  %vm4839_vm9 = vmpackc.low %vm429_vm15, %vm429_vm15 }
  0xf8   :  { %v3682_v31 = vunpack.i.h.bf16 %v3680_v23  ;;  %v3681_v32 = vunpack.i.l.bf16 %v3680_v23  ;;  %v5966_v33 = vsel %vm4839_vm9, 4294967295, %v5965_v33  ;;  %vm428_vm14 = vcmp.ge.s32.totalorder %v4526_v19, 20 }
  0xf9   :  { %vm452_vm1 = vcmp.ge.s32.totalorder %v4524_v18, 16  ;;  %3126 = vmatpush1.bf16.msk.msra.mxu0 %vm4835_vm11, %v3124_v16  ;;  %v3130_v43 = vpack.c.bf16 %v427_v13, %v426_v14  ;;  %vm4858_vm15 = vmpackc.low %vm428_vm14, %vm428_vm14  ;;  %v5969_v59 = vmov 0  ;;  %vm5971_vm11 = vcmp.lt.s32.totalorder %v4522_v17, 12 }
  0xfa   :  { %v448_v36 = vsel %vm5866_vm0, %v3682_v31, %v3687_v28  ;;  %v447_v37 = vsel %vm5866_vm0, %v3681_v32, %v3686_v30  ;;  %v450_v40 = vsel %vm5866_vm0, %v3687_v28, %v3682_v31  ;;  %v449_v42 = vsel %vm5866_vm0, %v3686_v30, %v3681_v32  ;;  %v3695_v47 = vpop.permute.xlu1 %3694  ;;  %v3690_v49 = vpop.permute.xlu0 %3689  ;;  %3129 = vmatprep.subr.msk.bf16.mxu0 %vm4839_vm9, %v3127_v24  ;;  %vm4862_vm4 = vmpackc.low %vm452_vm1, %vm452_vm1 }
  0xfb   :  { %v3133_v50 = vpack.c.bf16 %v448_v36, %v447_v37  ;;  %v3697_v53 = vunpack.i.h.bf16 %v3695_v47  ;;  %v3696_v54 = vunpack.i.l.bf16 %v3695_v47  ;;  %v3692_v55 = vunpack.i.h.bf16 %v3690_v49  ;;  %vm5972_vm2 = vmmov %vm5971_vm11 }
  0xfc   :  { %v3691_v58 = vunpack.i.l.bf16 %v3690_v49  ;;  %v5970_v59 = vsel %vm4862_vm4, 4294967295, %v5969_v59  ;;  %vm451_vm0 = vcmp.ge.s32.totalorder %v4526_v19, 16  ;;  %vm5873_vm14 = vcmp.lt.s32.totalorder %v4522_v17, 8  ;;  %vm5973_vm1 = vmmov %vm5972_vm2 }
  0xfd   :  { %v471_v62 = vsel %vm5971_vm11, %v3692_v55, %v3697_v53  ;;  %vm475_vm9 = vcmp.ge.s32.totalorder %v4524_v18, 12  ;;  %3132 = vmatpush1.bf16.msk.msra.mxu0 %vm4858_vm15, %v3130_v43  ;;  %v473_v6 = vsel %vm5973_vm1, %v3697_v53, %v3692_v55  ;;  %vm5974_vm10 = vmmov %vm5973_vm1  ;;  %v3136_v10 = vpack.c.bf16 %v450_v40, %v449_v42 }
  0xfe   :  { %v470_v5 = vsel %vm5972_vm2, %v3691_v58, %v3696_v54  ;;  %v472_v8 = vsel %vm5974_vm10, %v3696_v54, %v3691_v58  ;;  %v3705_v11 = vpop.permute.xlu1 %3704  ;;  %v3700_v13 = vpop.permute.xlu0 %3699  ;;  %3135 = vmatprep.subr.msk.bf16.mxu0 %vm4862_vm4, %v3133_v50  ;;  %vm4881_vm2 = vmpackc.low %vm451_vm0, %vm451_vm0  ;;  %v5975_v16 = vmov 0  ;;  %v5977_v30 = vmov 0 }
  0xff   :  { %v3139_v14 = vpack.c.bf16 %v471_v62, %v470_v5  ;;  %v5976_v16 = vsel %vm4881_vm2, 4294967295, %v5975_v16  ;;  %v3707_v22 = vunpack.i.h.bf16 %v3705_v11  ;;  %v3706_v23 = vunpack.i.l.bf16 %v3705_v11  ;;  %vm4885_vm11 = vmpackc.low %vm475_vm9, %vm475_vm9 }
 0x100   :  { %v3702_v24 = vunpack.i.h.bf16 %v3700_v13  ;;  %v3701_v28 = vunpack.i.l.bf16 %v3700_v13  ;;  %v5978_v30 = vsel %vm4885_vm11, 4294967295, %v5977_v30  ;;  %vm474_vm10 = vcmp.ge.s32.totalorder %v4526_v19, 12 }
 0x101   :  { %vm498_vm1 = vcmp.ge.s32.totalorder %v4524_v18, 8  ;;  %3138 = vmatpush1.bf16.msk.msra.mxu0 %vm4881_vm2, %v3136_v10  ;;  %v3142_v40 = vpack.c.bf16 %v473_v6, %v472_v8  ;;  %vm4904_vm9 = vmpackc.low %vm474_vm10, %vm474_vm10  ;;  %v5981_v58 = vmov 0  ;;  %vm5983_vm2 = vcmp.lt.s32.totalorder %v4522_v17, 4  ;;  %v534_v8 = vld [vmem:[%s5820_s2] sm:$0xff] }
 0x102   :  { %v494_v31 = vsel %vm5873_vm14, %v3702_v24, %v3707_v22  ;;  %v493_v32 = vsel %vm5873_vm14, %v3701_v28, %v3706_v23  ;;  %v496_v36 = vsel %vm5873_vm14, %v3707_v22, %v3702_v24  ;;  %v495_v37 = vsel %vm5873_vm14, %v3706_v23, %v3701_v28  ;;  %v3715_v42 = vpop.permute.xlu1 %3714  ;;  %v3710_v43 = vpop.permute.xlu0 %3709  ;;  %3141 = vmatprep.subr.msk.bf16.mxu0 %vm4885_vm11, %v3139_v14  ;;  %vm4908_vm0 = vmpackc.low %vm498_vm1, %vm498_vm1  ;;  %v538_v22 = vld [vmem:[%s5820_s2 + $0x20] sm:$0xff]  ;;  %v537_v28 = vld [vmem:[%s5820_s2 + $0x18] sm:$0xff] }
 0x103   :  { %v3145_v47 = vpack.c.bf16 %v494_v31, %v493_v32  ;;  %v3717_v50 = vunpack.i.h.bf16 %v3715_v42  ;;  %v3716_v53 = vunpack.i.l.bf16 %v3715_v42  ;;  %v3712_v54 = vunpack.i.h.bf16 %v3710_v43  ;;  %vm5984_vm4 = vmmov %vm5983_vm2 }
 0x104   :  { %v3711_v55 = vunpack.i.l.bf16 %v3710_v43  ;;  %v5982_v58 = vsel %vm4908_vm0, 4294967295, %v5981_v58  ;;  %vm497_vm14 = vcmp.ge.s32.totalorder %v4526_v19, 8  ;;  %vm521_vm10 = vcmp.ge.s32.totalorder %v4524_v18, 4  ;;  %vm5985_vm1 = vmmov %vm5983_vm2 }
 0x105   :  { %v517_v62 = vsel %vm5983_vm2, %v3712_v54, %v3717_v50  ;;  %v3148_v6 = vpack.c.bf16 %v496_v36, %v495_v37  ;;  %3144 = vmatpush1.bf16.msk.msra.mxu0 %vm4904_vm9, %v3142_v40  ;;  %v519_v10 = vsel %vm5985_vm1, %v3717_v50, %v3712_v54  ;;  %vm5986_vm11 = vmmov %vm5985_vm1  ;;  %v5987_v13 = vmov 0  ;;  %v536_v40 = vld [vmem:[%s5820_s2 + $0x10] sm:$0xff] }
 0x106   :  { %v516_v5 = vsel %vm5984_vm4, %v3711_v55, %v3716_v53  ;;  %v518_v11 = vsel %vm5986_vm11, %v3716_v53, %v3711_v55  ;;  %3147 = vmatprep.subr.msk.bf16.mxu0 %vm4908_vm0, %v3145_v47  ;;  %vm4929_vm4 = vmpackc.low %vm497_vm14, %vm497_vm14  ;;  %vm520_vm1 = vcmp.ge.s32.totalorder %v4526_v19, 4  ;;  %v5991_v31 = vmov 0 }
 0x107   :  { %v5988_v13 = vsel %vm4929_vm4, 4294967295, %v5987_v13  ;;  %v3151_v14 = vpack.c.bf16 %v517_v62, %v516_v5  ;;  %vm4936_vm2 = vmpackc.low %vm521_vm10, %vm521_vm10  ;;  %v3154_v24 = vpack.c.bf16 %v519_v10, %v518_v11  ;;  %v3157_v32 = vpack.c.bf16 %v4470_v4, %v4466_v2  ;;  %v539_v2 = vld [vmem:[%s5820_s2 + $0x28] sm:$0xff]  ;;  %s5993_s2 = smov 8  }
 0x108   :  { %700 = vmatmul.mubr.f32.vlgmr.msra.gmra.mrb[0].mxu0 %v534_v8  ;;  %vm4948_vm14 = vmpackc.low %vm520_vm1, %vm520_vm1  ;;  %v3159_v36 = vpack.c.bf16 %v4464_v1, %v4462_v0  ;;  %v4327_v37 = vmov 0.0   ;;  %vm5879_vm11 = vcmask 392192   ;;  %vm5994_vm10 = vcmp.lt.s32.totalorder %v4522_v17, 72 }
 0x109   :  { %3150 = vmatpush1.bf16.msk.msra.mxu0 %vm4929_vm4, %v3148_v6  ;;  %705 = vmatprep.mubr.f32.mxu0 %v538_v22  ;;  %v5992_v31 = vsel %vm4948_vm14, 4294967295, %v5991_v31  ;;  %vm5995_vm1 = vmmov %vm5994_vm10  ;;  %v4328_v23 = vmov 0.0|0.0  }
 0x10a   :  { %3153 = vmatprep.subr.msk.bf16.mxu0 %vm4936_vm2, %v3151_v14 }
 0x10c   :  { %706 = vmatmul.mubr.f32.gmra.mrb[2].mxu0 %v537_v28  ;;  %v1247_v28 = vld [vmem:[%s5823_s5] sm:$0xff] }
 0x10d   :  { %3156 = vmatpush1.bf16.msk.msra.mxu0 %vm4948_vm14, %v3154_v24  ;;  %776 = vmatprep.mubr.f32.mxu0 %v4327_v37  ;;  %v1166_v24 = vld [vmem:[#allocation7 + $0x8] sm:$0xff]  ;;  %vm5997_vm14 = vmmov %vm5995_vm1 }
 0x10e   :  { %3158 = vmatprep.subr.bf16.mxu0 %v3157_v32  ;;  %1329 = vmatprep.mubr.f32.mxu1 %v1166_v24  ;;  %v1248_v32 = vld [vmem:[%s5823_s5 + $0x8] sm:$0xff]  ;;  %s4329_s5 = smov 120  }
 0x111   :  { %3160 = vmatpush1.bf16.msra.mxu0 %v3159_v36 }
 0x112   :  { %3273 = vmatprep.subr.bf16.mxu0 %v4328_v23 }
 0x113   :  { %v621_v0 = vpop.permute.xlu0 %620  ;;  %v626_v42 = vpop.permute.xlu1 %625 }
 0x114   :  { %2777 = vmatmul.mubr.msk.f32.vlgmr.msra.gmra.mrb[0].mxu0 %vm5879_vm11, %v536_v40 }
 0x115   :  { %782 = vmatprep.mubr.f32.mxu0 %v4327_v37  ;;  %3274 = vmatpush1.bf16.msra.mxu0 %v4328_v23 }
 0x116   :  { %3275 = vmatprep.subr.bf16.mxu0 %v4328_v23 }
 0x118   :  { %2778 = vmatmul.mubr.msk.f32.gmra.mrb[2].mxu0 %vm5879_vm11, %v539_v2  ;;  %vm5996_vm11 = vmmov %vm5995_vm1 }
 0x119   :  { %3276 = vmatpush1.bf16.msra.mxu0 %v4328_v23 }
 0x11a   :  { %3277 = vmatprep.subr.bf16.mxu0 %v4328_v23 }
 0x11d   :  { %3278 = vmatpush1.bf16.msra.mxu0 %v4328_v23 }
 0x1e7   :  { %v778_v1 = vpop.f32.mrb[0].mxu0 }
 0x1e8   :  { %v780_v4 = vpop.f32.mrb[1].mxu0  ;;  %v3473_v43 = vadd.f32 %v778_v1, %v621_v0 }
 0x1e9   :  { %v3474_v47 = vadd.f32 %v780_v4, %v621_v0 }
 0x1ea   :  { %v789_v62 = vmax.f32 %v3473_v43, 0.0 }
 0x1eb   :  { %v784_v50 = vpop.f32.mrb[2].mxu0  ;;  %v790_v6 = vmax.f32 %v3474_v47, 0.0 }
 0x1ec   :  { %v3475_v53 = vadd.f32 %v784_v50, %v626_v42  ;;  %v786_v54 = vpop.f32.mrb[3].mxu0 }
 0x1ed   :  { %v3476_v55 = vadd.f32 %v786_v54, %v626_v42 }
 0x1ee   :  { %v791_v5 = vmax.f32 %v3475_v53, 0.0 }
 0x1ef   :  { %v792_v8 = vmax.f32 %v3476_v55, 0.0 }
 0x1f0   :  { %v3720_v10 = vpack.i.bf16 %v791_v5, %v789_v62  ;;  %v4974_v22 = vpack.c.bf16 %v791_v5, %v789_v62 }
 0x1f1   :  { %v3810_v11 = vpack.i.bf16 %v792_v8, %v790_v6  ;;  %v4972_v14 = vpack.c.bf16 %v792_v8, %v790_v6 }
 0x1f2   :  { %3721 = vrot.lane.b32.xlu1 %v3720_v10, %s4311_s10 }
 0x1f3   :  { %3811 = vrot.lane.b32.xlu0 %v3810_v11, %s4311_s10 }
 0x1f6   :  { %3726 = vrot.lane.b32.xlu1 %v3720_v10, %s4310_s26 }
 0x1f7   :  { %3816 = vrot.lane.b32.xlu0 %v3810_v11, %s4310_s26 }
 0x1fa   :  { %3731 = vrot.lane.b32.xlu1 %v3720_v10, %s4312_s4 }
 0x1fb   :  { %3821 = vrot.lane.b32.xlu0 %v3810_v11, %s4312_s4 }
 0x1fe   :  { %3736 = vrot.lane.b32.xlu1 %v3720_v10, %s4313_s30 }
 0x1ff   :  { %3826 = vrot.lane.b32.xlu0 %v3810_v11, %s4313_s30 }
 0x202   :  { %3741 = vrot.lane.b32.xlu1 %v3720_v10, %s4314_s16 }
 0x203   :  { %3831 = vrot.lane.b32.xlu0 %v3810_v11, %s4314_s16 }
 0x206   :  { %3746 = vrot.lane.b32.xlu1 %v3720_v10, %s4315_s17 }
 0x207   :  { %3836 = vrot.lane.b32.xlu0 %v3810_v11, %s4315_s17 }
 0x20a   :  { %3751 = vrot.lane.b32.xlu1 %v3720_v10, %s4316_s19 }
 0x20b   :  { %3841 = vrot.lane.b32.xlu0 %v3810_v11, %s4316_s19 }
 0x20e   :  { %3756 = vrot.lane.b32.xlu1 %v3720_v10, %s4317_s20 }
 0x20f   :  { %3846 = vrot.lane.b32.xlu0 %v3810_v11, %s4317_s20 }
 0x212   :  { %3761 = vrot.lane.b32.xlu1 %v3720_v10, %s4318_s1 }
 0x213   :  { %3851 = vrot.lane.b32.xlu0 %v3810_v11, %s4318_s1 }
 0x216   :  { %3766 = vrot.lane.b32.xlu1 %v3720_v10, %s4319_s13 }
 0x217   :  { %3856 = vrot.lane.b32.xlu0 %v3810_v11, %s4319_s13  ;;  %s4330_s13 = smov 112  }
 0x21a   :  { %3771 = vrot.lane.b32.xlu1 %v3720_v10, %s4320_s21 }
 0x21b   :  { %3861 = vrot.lane.b32.xlu0 %v3810_v11, %s4320_s21 }
 0x21e   :  { %3776 = vrot.lane.b32.xlu1 %v3720_v10, %s4321_s22 }
 0x21f   :  { %3866 = vrot.lane.b32.xlu0 %v3810_v11, %s4321_s22  ;;  %s4331_s22 = smov 104  }
 0x222   :  { %3781 = vrot.lane.b32.xlu1 %v3720_v10, %s4304_s28 }
 0x223   :  { %3871 = vrot.lane.b32.xlu0 %v3810_v11, %s4304_s28 }
 0x226   :  { %3786 = vrot.lane.b32.xlu1 %v3720_v10, %s4322_s23 }
 0x227   :  { %3876 = vrot.lane.b32.xlu0 %v3810_v11, %s4322_s23  ;;  %s4332_s23 = smov 96  }
 0x22a   :  { %3791 = vrot.lane.b32.xlu1 %v3720_v10, %s4307_s18 }
 0x22b   :  { %3881 = vrot.lane.b32.xlu0 %v3810_v11, %s4307_s18 }
 0x22e   :  { %3796 = vrot.lane.b32.xlu1 %v3720_v10, %s4323_s29 }
 0x22f   :  { %3886 = vrot.lane.b32.xlu0 %v3810_v11, %s4323_s29  ;;  %s4333_s29 = smov 88  }
 0x232   :  { %3801 = vrot.lane.b32.xlu1 %v3720_v10, %s5993_s2 }
 0x233   :  { %3891 = vrot.lane.b32.xlu0 %v3810_v11, %s5993_s2 }
 0x236   :  { %3806 = vrot.lane.b32.xlu1 %v3720_v10, %s4325_s14 }
 0x237   :  { %3896 = vrot.lane.b32.xlu0 %v3810_v11, %s4325_s14  ;;  %s4334_s14 = smov 80  }
 0x23a   :  { %1251 = vperm.xlu1 %3719, %v1247_v28  }
 0x23b   :  { %1256 = vperm.xlu0 %3718, %v1248_v32  }
 0x264   :  { %v3722_v36 = vpop.permute.xlu1 %3721 }
 0x265   :  { %v3724_v40 = vunpack.i.h.bf16 %v3722_v36  ;;  %v3723_v2 = vunpack.i.l.bf16 %v3722_v36  ;;  %v3812_v0 = vpop.permute.xlu0 %3811 }
 0x266   :  { %v3814_v1 = vunpack.i.h.bf16 %v3812_v0  ;;  %v3813_v4 = vunpack.i.l.bf16 %v3812_v0 }
 0x268   :  { %v3727_v42 = vpop.permute.xlu1 %3726  ;;  %v809_v43 = vsel %vm5994_vm10, %v3723_v2, %v3813_v4  ;;  %v810_v47 = vsel %vm5995_vm1, %v3724_v40, %v3814_v1  ;;  %v811_v50 = vsel %vm5996_vm11, %v3813_v4, %v3723_v2  ;;  %v812_v53 = vsel %vm5997_vm14, %v3814_v1, %v3724_v40 }
 0x269   :  { %v3729_v54 = vunpack.i.h.bf16 %v3727_v42  ;;  %v3728_v55 = vunpack.i.l.bf16 %v3727_v42  ;;  %v3817_v62 = vpop.permute.xlu0 %3816  ;;  %v3161_v5 = vpack.c.bf16 %v810_v47, %v809_v43  ;;  %v3164_v6 = vpack.c.bf16 %v812_v53, %v811_v50 }
 0x26a   :  { %v3819_v8 = vunpack.i.h.bf16 %v3817_v62  ;;  %v3818_v10 = vunpack.i.l.bf16 %v3817_v62  ;;  %vm5998_vm10 = vcmp.lt.s32.totalorder %v4522_v17, 68 }
 0x26b   :  { %3163 = vmatprep.subr.msk.bf16.mxu1 %vm4542_vm6, %v3161_v5  ;;  %vm5999_vm1 = vmmov %vm5998_vm10 }
 0x26c   :  { %v829_v11 = vsel %vm5998_vm10, %v3728_v55, %v3818_v10  ;;  %v830_v24 = vsel %vm5999_vm1, %v3729_v54, %v3819_v8  ;;  %vm6000_vm11 = vmmov %vm5999_vm1  ;;  %v3732_v36 = vpop.permute.xlu1 %3731  ;;  %3166 = vmatpush1.bf16.msk.msra.mxu1 %vm4550_vm7, %v3164_v6  ;;  %vm6002_vm10 = vcmp.lt.s32.totalorder %v4522_v17, 64 }
 0x26d   :  { %v831_v28 = vsel %vm6000_vm11, %v3818_v10, %v3728_v55  ;;  %vm6001_vm14 = vmmov %vm5999_vm1  ;;  %v3734_v40 = vunpack.i.h.bf16 %v3732_v36  ;;  %v3733_v2 = vunpack.i.l.bf16 %v3732_v36  ;;  %v3822_v0 = vpop.permute.xlu0 %3821  ;;  %v3167_v1 = vpack.c.bf16 %v830_v24, %v829_v11 }
 0x26e   :  { %v832_v32 = vsel %vm6001_vm14, %v3819_v8, %v3729_v54  ;;  %v3824_v42 = vunpack.i.h.bf16 %v3822_v0  ;;  %v3823_v43 = vunpack.i.l.bf16 %v3822_v0  ;;  %vm6003_vm1 = vmmov %vm6002_vm10 }
 0x26f   :  { %v3170_v4 = vpack.c.bf16 %v832_v32, %v831_v28  ;;  %3169 = vmatprep.subr.msk.bf16.mxu1 %vm4554_vm8, %v3167_v1  ;;  %vm6004_vm11 = vmmov %vm6003_vm1  ;;  %vm6006_vm8 = vcmp.lt.s32.totalorder %v4522_v17, 60 }
 0x270   :  { %v849_v47 = vsel %vm6002_vm10, %v3733_v2, %v3823_v43  ;;  %v850_v50 = vsel %vm6003_vm1, %v3734_v40, %v3824_v42  ;;  %v851_v53 = vsel %vm6004_vm11, %v3823_v43, %v3733_v2  ;;  %vm6005_vm14 = vmmov %vm6003_vm1  ;;  %v3737_v55 = vpop.permute.xlu1 %3736  ;;  %vm6010_vm11 = vcmp.lt.s32.totalorder %v4522_v17, 56 }
 0x271   :  { %v852_v54 = vsel %vm6005_vm14, %v3824_v42, %v3734_v40  ;;  %3172 = vmatpush1.bf16.msk.msra.mxu1 %vm4579_vm12, %v3170_v4  ;;  %v3739_v62 = vunpack.i.h.bf16 %v3737_v55  ;;  %v3738_v5 = vunpack.i.l.bf16 %v3737_v55  ;;  %v3827_v46 = vpop.permute.xlu0 %3826  ;;  %v3173_v6 = vpack.c.bf16 %v850_v50, %v849_v47  ;;  %vm6007_vm10 = vmmov %vm6006_vm8 }
 0x272   :  { %v3176_v8 = vpack.c.bf16 %v852_v54, %v851_v53  ;;  %v3829_v10 = vunpack.i.h.bf16 %v3827_v46  ;;  %v3828_v11 = vunpack.i.l.bf16 %v3827_v46  ;;  %vm6008_vm1 = vmmov %vm6006_vm8 }
 0x273   :  { %3175 = vmatprep.subr.msk.bf16.mxu1 %vm4586_vm13, %v3173_v6  ;;  %vm6009_vm12 = vmmov %vm6008_vm1 }
 0x274   :  { %v869_v24 = vsel %vm6006_vm8, %v3738_v5, %v3828_v11  ;;  %v870_v28 = vsel %vm6007_vm10, %v3739_v62, %v3829_v10  ;;  %v871_v56 = vsel %vm6008_vm1, %v3828_v11, %v3738_v5  ;;  %v872_v32 = vsel %vm6009_vm12, %v3829_v10, %v3739_v62  ;;  %v3742_v36 = vpop.permute.xlu1 %3741  ;;  %vm6011_vm14 = vmmov %vm6010_vm11 }
 0x275   :  { %3178 = vmatpush1.bf16.msk.msra.mxu1 %vm4605_vm3, %v3176_v8  ;;  %v3179_v40 = vpack.c.bf16 %v870_v28, %v869_v24  ;;  %v3182_v2 = vpack.c.bf16 %v872_v32, %v871_v56  ;;  %v3744_v0 = vunpack.i.h.bf16 %v3742_v36  ;;  %v3743_v1 = vunpack.i.l.bf16 %v3742_v36  ;;  %v3832_v4 = vpop.permute.xlu0 %3831  ;;  %vm6012_vm8 = vmmov %vm6010_vm11 }
 0x276   :  { %v3834_v42 = vunpack.i.h.bf16 %v3832_v4  ;;  %v3833_v43 = vunpack.i.l.bf16 %v3832_v4  ;;  %vm6013_vm10 = vmmov %vm6012_vm8  ;;  %vm6014_vm1 = vnez %v5912_v29  ;;  %vm6016_vm12 = vcmp.lt.s32.totalorder %v4522_v17, 52 }
 0x277   :  { %3181 = vmatprep.subr.msk.bf16.mxu1 %vm4609_vm5, %v3179_v40  ;;  %vm6015_vm5 = vnez %v5914_v35 }
 0x278   :  { %v889_v47 = vsel %vm6010_vm11, %v3743_v1, %v3833_v43  ;;  %v890_v50 = vsel %vm6011_vm14, %v3744_v0, %v3834_v42  ;;  %v891_v53 = vsel %vm6012_vm8, %v3833_v43, %v3743_v1  ;;  %v892_v54 = vsel %vm6013_vm10, %v3834_v42, %v3744_v0  ;;  %v3747_v55 = vpop.permute.xlu1 %3746  ;;  %vm6017_vm11 = vmmov %vm6016_vm12 }
 0x279   :  { %3184 = vmatpush1.bf16.msk.msra.mxu1 %vm6014_vm1, %v3182_v2  ;;  %v3185_v62 = vpack.c.bf16 %v890_v50, %v889_v47  ;;  %v3188_v5 = vpack.c.bf16 %v892_v54, %v891_v53  ;;  %v3749_v20 = vunpack.i.h.bf16 %v3747_v55  ;;  %v3748_v46 = vunpack.i.l.bf16 %v3747_v55  ;;  %v3837_v6 = vpop.permute.xlu0 %3836  ;;  %vm6018_vm14 = vmmov %vm6017_vm11 }
 0x27a   :  { %v3839_v8 = vunpack.i.h.bf16 %v3837_v6  ;;  %v3838_v10 = vunpack.i.l.bf16 %v3837_v6  ;;  %vm6019_vm8 = vmmov %vm6017_vm11  ;;  %vm6020_vm10 = vnez %v5916_v45  ;;  %vm6021_vm1 = vnez %v5918_v51 }
 0x27b   :  { %3187 = vmatprep.subr.msk.bf16.mxu1 %vm6015_vm5, %v3185_v62 }
 0x27c   :  { %v909_v11 = vsel %vm6016_vm12, %v3748_v46, %v3838_v10  ;;  %v910_v24 = vsel %vm6017_vm11, %v3749_v20, %v3839_v8  ;;  %v911_v29 = vsel %vm6018_vm14, %v3838_v10, %v3748_v46  ;;  %v912_v28 = vsel %vm6019_vm8, %v3839_v8, %v3749_v20  ;;  %v3752_v56 = vpop.permute.xlu1 %3751 }
 0x27d   :  { %3190 = vmatpush1.bf16.msk.msra.mxu1 %vm6020_vm10, %v3188_v5  ;;  %v3191_v32 = vpack.c.bf16 %v910_v24, %v909_v11  ;;  %v3194_v36 = vpack.c.bf16 %v912_v28, %v911_v29  ;;  %v3754_v40 = vunpack.i.h.bf16 %v3752_v56  ;;  %v3753_v2 = vunpack.i.l.bf16 %v3752_v56  ;;  %v3842_v0 = vpop.permute.xlu0 %3841 }
 0x27e   :  { %v3844_v1 = vunpack.i.h.bf16 %v3842_v0  ;;  %v3843_v4 = vunpack.i.l.bf16 %v3842_v0  ;;  %vm6022_vm12 = vcmp.lt.s32.totalorder %v4522_v17, 48  ;;  %vm6026_vm10 = vnez %v5920_v61 }
 0x27f   :  { %3193 = vmatprep.subr.msk.bf16.mxu1 %vm6021_vm1, %v3191_v32  ;;  %vm6023_vm11 = vmmov %vm6022_vm12  ;;  %vm6027_vm1 = vnez %v5922_v7 }
 0x280   :  { %v929_v42 = vsel %vm6022_vm12, %v3753_v2, %v3843_v4  ;;  %v930_v43 = vsel %vm6023_vm11, %v3754_v40, %v3844_v1  ;;  %vm6024_vm14 = vmmov %vm6023_vm11  ;;  %v3757_v53 = vpop.permute.xlu1 %3756  ;;  %vm6028_vm12 = vcmp.lt.s32.totalorder %v4522_v17, 44 }
 0x281   :  { %v931_v47 = vsel %vm6024_vm14, %v3843_v4, %v3753_v2  ;;  %vm6025_vm8 = vmmov %vm6023_vm11  ;;  %3196 = vmatpush1.bf16.msk.msra.mxu1 %vm6026_vm10, %v3194_v36  ;;  %v3197_v54 = vpack.c.bf16 %v930_v43, %v929_v42  ;;  %v3759_v51 = vunpack.i.h.bf16 %v3757_v53  ;;  %v3758_v62 = vunpack.i.l.bf16 %v3757_v53  ;;  %v3847_v5 = vpop.permute.xlu0 %3846 }
 0x282   :  { %v932_v50 = vsel %vm6025_vm8, %v3844_v1, %v3754_v40  ;;  %v3849_v20 = vunpack.i.h.bf16 %v3847_v5  ;;  %v3848_v46 = vunpack.i.l.bf16 %v3847_v5  ;;  %vm6029_vm11 = vmmov %vm6028_vm12  ;;  %vm6032_vm8 = vnez %v5928_v21 }
 0x283   :  { %v3200_v55 = vpack.c.bf16 %v932_v50, %v931_v47  ;;  %3199 = vmatprep.subr.msk.bf16.mxu1 %vm6027_vm1, %v3197_v54  ;;  %vm6030_vm14 = vmmov %vm6029_vm11  ;;  %vm6038_vm1 = vnez %v5932_v38 }
 0x284   :  { %v949_v6 = vsel %vm6028_vm12, %v3758_v62, %v3848_v46  ;;  %v950_v8 = vsel %vm6029_vm11, %v3759_v51, %v3849_v20  ;;  %v951_v61 = vsel %vm6030_vm14, %v3848_v46, %v3758_v62  ;;  %vm6031_vm10 = vmmov %vm6029_vm11  ;;  %v3762_v11 = vpop.permute.xlu1 %3761  ;;  %vm6033_vm12 = vnez %v5930_v26 }
 0x285   :  { %v952_v10 = vsel %vm6031_vm10, %v3849_v20, %v3759_v51  ;;  %3202 = vmatpush1.bf16.msk.msra.mxu1 %vm6032_vm8, %v3200_v55  ;;  %v3203_v24 = vpack.c.bf16 %v950_v8, %v949_v6  ;;  %v3764_v28 = vunpack.i.h.bf16 %v3762_v11  ;;  %v3763_v56 = vunpack.i.l.bf16 %v3762_v11  ;;  %v3852_v32 = vpop.permute.xlu0 %3851 }
 0x286   :  { %v3206_v29 = vpack.c.bf16 %v952_v10, %v951_v61  ;;  %v3854_v36 = vunpack.i.h.bf16 %v3852_v32  ;;  %v3853_v40 = vunpack.i.l.bf16 %v3852_v32  ;;  %vm6034_vm11 = vcmp.lt.s32.totalorder %v4522_v17, 40 }
 0x287   :  { %3205 = vmatprep.subr.msk.bf16.mxu1 %vm6033_vm12, %v3203_v24  ;;  %vm6035_vm14 = vmmov %vm6034_vm11  ;;  %vm6039_vm12 = vnez %v5934_v44 }
 0x288   :  { %v969_v2 = vsel %vm6034_vm11, %v3763_v56, %v3853_v40  ;;  %v970_v0 = vsel %vm6035_vm14, %v3764_v28, %v3854_v36  ;;  %vm6036_vm10 = vmmov %vm6034_vm11  ;;  %v3767_v42 = vpop.permute.xlu1 %3766  ;;  %vm6040_vm11 = vcmp.lt.s32.totalorder %v4522_v17, 36 }
 0x289   :  { %v971_v1 = vsel %vm6036_vm10, %v3853_v40, %v3763_v56  ;;  %vm6037_vm8 = vmmov %vm6036_vm10  ;;  %3208 = vmatpush1.bf16.msk.msra.mxu1 %vm6038_vm1, %v3206_v29  ;;  %v3209_v43 = vpack.c.bf16 %v970_v0, %v969_v2  ;;  %v3769_v26 = vunpack.i.h.bf16 %v3767_v42  ;;  %v3768_v50 = vunpack.i.l.bf16 %v3767_v42  ;;  %v3857_v53 = vpop.permute.xlu0 %3856 }
 0x28a   :  { %v972_v4 = vsel %vm6037_vm8, %v3854_v36, %v3764_v28  ;;  %v3859_v54 = vunpack.i.h.bf16 %v3857_v53  ;;  %v3858_v55 = vunpack.i.l.bf16 %v3857_v53  ;;  %vm6041_vm14 = vmmov %vm6040_vm11  ;;  %vm6044_vm10 = vnez %v5940_v57 }
 0x28b   :  { %v3212_v47 = vpack.c.bf16 %v972_v4, %v971_v1  ;;  %3211 = vmatprep.subr.msk.bf16.mxu1 %vm6039_vm12, %v3209_v43  ;;  %vm6042_vm8 = vmmov %vm6040_vm11  ;;  %vm6050_vm12 = vnez %v5944_v15 }
 0x28c   :  { %v989_v51 = vsel %vm6040_vm11, %v3768_v50, %v3858_v55  ;;  %v990_v62 = vsel %vm6041_vm14, %v3769_v26, %v3859_v54  ;;  %v991_v38 = vsel %vm6042_vm8, %v3858_v55, %v3768_v50  ;;  %vm6043_vm1 = vmmov %vm6042_vm8  ;;  %v3772_v20 = vpop.permute.xlu1 %3771  ;;  %vm6045_vm11 = vnez %v5942_v3 }
 0x28d   :  { %v992_v5 = vsel %vm6043_vm1, %v3859_v54, %v3769_v26  ;;  %3214 = vmatpush1.bf16.msk.msra.mxu1 %vm6044_vm10, %v3212_v47  ;;  %v3215_v46 = vpack.c.bf16 %v990_v62, %v989_v51  ;;  %v3774_v8 = vunpack.i.h.bf16 %v3772_v20  ;;  %v3773_v61 = vunpack.i.l.bf16 %v3772_v20  ;;  %v3862_v10 = vpop.permute.xlu0 %3861 }
 0x28e   :  { %v3218_v6 = vpack.c.bf16 %v992_v5, %v991_v38  ;;  %v3864_v11 = vunpack.i.h.bf16 %v3862_v10  ;;  %v3863_v24 = vunpack.i.l.bf16 %v3862_v10  ;;  %vm6046_vm14 = vcmp.lt.s32.totalorder %v4522_v17, 32 }
 0x28f   :  { %3217 = vmatprep.subr.msk.bf16.mxu1 %vm6045_vm11, %v3215_v46  ;;  %vm6047_vm8 = vmmov %vm6046_vm14  ;;  %vm6051_vm11 = vnez %v5946_v25 }
 0x290   :  { %v1009_v29 = vsel %vm6046_vm14, %v3773_v61, %v3863_v24  ;;  %v1010_v28 = vsel %vm6047_vm8, %v3774_v8, %v3864_v11  ;;  %vm6048_vm1 = vmmov %vm6047_vm8  ;;  %v3777_v36 = vpop.permute.xlu1 %3776  ;;  %vm6052_vm14 = vcmp.lt.s32.totalorder %v4522_v17, 28 }
 0x291   :  { %v1011_v56 = vsel %vm6048_vm1, %v3863_v24, %v3773_v61  ;;  %vm6049_vm10 = vmmov %vm6048_vm1  ;;  %3220 = vmatpush1.bf16.msk.msra.mxu1 %vm6050_vm12, %v3218_v6  ;;  %v3221_v40 = vpack.c.bf16 %v1010_v28, %v1009_v29  ;;  %v3779_v3 = vunpack.i.h.bf16 %v3777_v36  ;;  %v3778_v0 = vunpack.i.l.bf16 %v3777_v36  ;;  %v3867_v1 = vpop.permute.xlu0 %3866 }
 0x292   :  { %v1012_v32 = vsel %vm6049_vm10, %v3864_v11, %v3774_v8  ;;  %v3869_v4 = vunpack.i.h.bf16 %v3867_v1  ;;  %v3868_v42 = vunpack.i.l.bf16 %v3867_v1  ;;  %vm6053_vm8 = vmmov %vm6052_vm14  ;;  %vm6056_vm1 = vnez %v5952_v39 }
 0x293   :  { %v3224_v2 = vpack.c.bf16 %v1012_v32, %v1011_v56  ;;  %3223 = vmatprep.subr.msk.bf16.mxu1 %vm6051_vm11, %v3221_v40  ;;  %vm6054_vm10 = vmmov %vm6053_vm8  ;;  %vm6062_vm11 = vnez %v5956_v60 }
 0x294   :  { %v1029_v43 = vsel %vm6052_vm14, %v3778_v0, %v3868_v42  ;;  %v1030_v47 = vsel %vm6053_vm8, %v3779_v3, %v3869_v4  ;;  %v1031_v15 = vsel %vm6054_vm10, %v3868_v42, %v3778_v0  ;;  %vm6055_vm12 = vmmov %vm6053_vm8  ;;  %v3782_v50 = vpop.permute.xlu1 %3781  ;;  %vm6057_vm14 = vnez %v5954_v48 }
 0x295   :  { %v1032_v26 = vsel %vm6055_vm12, %v3869_v4, %v3779_v3  ;;  %3226 = vmatpush1.bf16.msk.msra.mxu1 %vm6056_vm1, %v3224_v2  ;;  %v3227_v53 = vpack.c.bf16 %v1030_v47, %v1029_v43  ;;  %v3784_v55 = vunpack.i.h.bf16 %v3782_v50  ;;  %v3783_v51 = vunpack.i.l.bf16 %v3782_v50  ;;  %v3872_v62 = vpop.permute.xlu0 %3871 }
 0x296   :  { %v3230_v54 = vpack.c.bf16 %v1032_v26, %v1031_v15  ;;  %v3874_v38 = vunpack.i.h.bf16 %v3872_v62  ;;  %v3873_v5 = vunpack.i.l.bf16 %v3872_v62  ;;  %vm6058_vm8 = vcmp.lt.s32.totalorder %v4522_v17, 24 }
 0x297   :  { %3229 = vmatprep.subr.msk.bf16.mxu1 %vm6057_vm14, %v3227_v53  ;;  %vm6059_vm10 = vmmov %vm6058_vm8  ;;  %vm6063_vm14 = vnez %v5958_v9  ;;  %v2367_v9 = vld [vmem:[%s5826_s8] sm:$0xff] }
 0x298   :  { %v1049_v20 = vsel %vm6058_vm8, %v3783_v51, %v3873_v5  ;;  %v1050_v46 = vsel %vm6059_vm10, %v3784_v55, %v3874_v38  ;;  %vm6060_vm12 = vmmov %vm6058_vm8  ;;  %v3787_v61 = vpop.permute.xlu1 %3786 }
 0x299   :  { %v1051_v6 = vsel %vm6060_vm12, %v3873_v5, %v3783_v51  ;;  %vm6061_vm1 = vmmov %vm6058_vm8  ;;  %3232 = vmatpush1.bf16.msk.msra.mxu1 %vm6062_vm11, %v3230_v54  ;;  %v3233_v10 = vpack.c.bf16 %v1050_v46, %v1049_v20  ;;  %v3789_v48 = vunpack.i.h.bf16 %v3787_v61  ;;  %v3788_v24 = vunpack.i.l.bf16 %v3787_v61  ;;  %v3877_v29 = vpop.permute.xlu0 %3876 }
 0x29a   :  { %v1052_v8 = vsel %vm6061_vm1, %v3874_v38, %v3784_v55  ;;  %v3879_v28 = vunpack.i.h.bf16 %v3877_v29  ;;  %v3878_v56 = vunpack.i.l.bf16 %v3877_v29  ;;  %vm6064_vm8 = vcmp.lt.s32.totalorder %v4522_v17, 20 }
 0x29b   :  { %v3236_v11 = vpack.c.bf16 %v1052_v8, %v1051_v6  ;;  %3235 = vmatprep.subr.msk.bf16.mxu1 %vm6063_vm14, %v3233_v10  ;;  %vm6065_vm10 = vmmov %vm6064_vm8  ;;  %vm6068_vm12 = vnez %v5964_v27 }
 0x29c   :  { %v1069_v32 = vsel %vm6064_vm8, %v3788_v24, %v3878_v56  ;;  %v1070_v36 = vsel %vm6065_vm10, %v3789_v48, %v3879_v28  ;;  %vm6066_vm1 = vmmov %vm6064_vm8  ;;  %v3792_v2 = vpop.permute.xlu1 %3791  ;;  %vm6069_vm8 = vnez %v5966_v33  ;;  %vm6070_vm10 = vcmp.lt.s32.totalorder %v4522_v17, 16 }
 0x29d   :  { %v1071_v60 = vsel %vm6066_vm1, %v3878_v56, %v3788_v24  ;;  %vm6067_vm11 = vmmov %vm6066_vm1  ;;  %3238 = vmatpush1.bf16.msk.msra.mxu1 %vm6068_vm12, %v3236_v11  ;;  %v3239_v3 = vpack.c.bf16 %v1070_v36, %v1069_v32  ;;  %v3794_v1 = vunpack.i.h.bf16 %v3792_v2  ;;  %v3793_v4 = vunpack.i.l.bf16 %v3792_v2  ;;  %v3882_v42 = vpop.permute.xlu0 %3881 }
 0x29e   :  { %v1072_v40 = vsel %vm6067_vm11, %v3879_v28, %v3789_v48  ;;  %v3884_v43 = vunpack.i.h.bf16 %v3882_v42  ;;  %v3883_v47 = vunpack.i.l.bf16 %v3882_v42  ;;  %vm6071_vm1 = vmmov %vm6070_vm10 }
 0x29f   :  { %v3242_v0 = vpack.c.bf16 %v1072_v40, %v1071_v60  ;;  %3241 = vmatprep.subr.msk.bf16.mxu1 %vm6069_vm8, %v3239_v3  ;;  %vm6072_vm11 = vmmov %vm6071_vm1  ;;  %vm6074_vm8 = vnez %v5970_v59  ;;  %v1165_v3 = vld [vmem:[#allocation7] sm:$0xff] }
 0x2a0   :  { %v1089_v15 = vsel %vm6070_vm10, %v3793_v4, %v3883_v47  ;;  %v1090_v26 = vsel %vm6071_vm1, %v3794_v1, %v3884_v43  ;;  %v1091_v50 = vsel %vm6072_vm11, %v3883_v47, %v3793_v4  ;;  %vm6073_vm12 = vmmov %vm6071_vm1  ;;  %v3797_v54 = vpop.permute.xlu1 %3796  ;;  %vm6075_vm10 = vcmp.lt.s32.totalorder %v4522_v17, 12 }
 0x2a1   :  { %v1092_v53 = vsel %vm6073_vm12, %v3884_v43, %v3794_v1  ;;  %3244 = vmatpush1.bf16.msk.msra.mxu1 %vm4858_vm15, %v3242_v0  ;;  %v3245_v55 = vpack.c.bf16 %v1090_v26, %v1089_v15  ;;  %v3799_v33 = vunpack.i.h.bf16 %v3797_v54  ;;  %v3798_v62 = vunpack.i.l.bf16 %v3797_v54  ;;  %v3887_v38 = vpop.permute.xlu0 %3886  ;;  %vm6076_vm1 = vmmov %vm6075_vm10  ;;  %v1169_v15 = vld [vmem:[#allocation7 + $0x20] sm:$0xff]  ;;  %v1168_v54 = vld [vmem:[#allocation7 + $0x18] sm:$0xff] }
 0x2a2   :  { %v3248_v51 = vpack.c.bf16 %v1092_v53, %v1091_v50  ;;  %v3889_v5 = vunpack.i.h.bf16 %v3887_v38  ;;  %v3888_v20 = vunpack.i.l.bf16 %v3887_v38  ;;  %vm6077_vm12 = vmmov %vm6076_vm1  ;;  %vm6079_vm11 = vnez %v5976_v16 }
 0x2a3   :  { %3247 = vmatprep.subr.msk.bf16.mxu1 %vm6074_vm8, %v3245_v55  ;;  %vm6078_vm15 = vmmov %vm6076_vm1 }
 0x2a4   :  { %v1109_v46 = vsel %vm6075_vm10, %v3798_v62, %v3888_v20  ;;  %v1110_v6 = vsel %vm6076_vm1, %v3799_v33, %v3889_v5  ;;  %v1111_v52 = vsel %vm6077_vm12, %v3888_v20, %v3798_v62  ;;  %v1112_v8 = vsel %vm6078_vm15, %v3889_v5, %v3799_v33  ;;  %v3802_v61 = vpop.permute.xlu1 %3801  ;;  %v1167_v33 = vld [vmem:[#allocation7 + $0x10] sm:$0xff]  ;;  %v1170_v62 = vld [vmem:[#allocation7 + $0x28] sm:$0xff] }
 0x2a5   :  { %3250 = vmatpush1.bf16.msk.msra.mxu1 %vm6079_vm11, %v3248_v51  ;;  %v3251_v10 = vpack.c.bf16 %v1110_v6, %v1109_v46  ;;  %v3254_v11 = vpack.c.bf16 %v1112_v8, %v1111_v52  ;;  %v3804_v48 = vunpack.i.h.bf16 %v3802_v61  ;;  %v3803_v24 = vunpack.i.l.bf16 %v3802_v61  ;;  %v3892_v29 = vpop.permute.xlu0 %3891 }
 0x2a6   :  { %v3894_v28 = vunpack.i.h.bf16 %v3892_v29  ;;  %v3893_v56 = vunpack.i.l.bf16 %v3892_v29  ;;  %vm6080_vm10 = vnez %v5978_v30  ;;  %vm6081_vm1 = vcmp.lt.s32.totalorder %v4522_v17, 8  ;;  %v4205_v29 = vld [vmem:[#allocation5 + $0x8] sm:$0xff] }
 0x2a7   :  { %3253 = vmatprep.subr.msk.bf16.mxu1 %vm6080_vm10, %v3251_v10  ;;  %vm6082_vm12 = vmmov %vm6081_vm1  ;;  %vm6085_vm10 = vcmp.lt.s32.totalorder %v4522_v17, 4 }
 0x2a8   :  { %v1129_v32 = vsel %vm6081_vm1, %v3803_v24, %v3893_v56  ;;  %v1130_v36 = vsel %vm6082_vm12, %v3804_v48, %v3894_v28  ;;  %vm6083_vm15 = vmmov %vm6081_vm1  ;;  %v3807_v2 = vpop.permute.xlu1 %3806  ;;  %vm6089_vm12 = vnez %v5992_v31 }
 0x2a9   :  { %v1131_v60 = vsel %vm6083_vm15, %v3893_v56, %v3803_v24  ;;  %vm6084_vm11 = vmmov %vm6081_vm1  ;;  %3256 = vmatpush1.bf16.msk.msra.mxu1 %vm4904_vm9, %v3254_v11  ;;  %v3257_v0 = vpack.c.bf16 %v1130_v36, %v1129_v32  ;;  %v3809_v1 = vunpack.i.h.bf16 %v3807_v2  ;;  %v3808_v4 = vunpack.i.l.bf16 %v3807_v2  ;;  %v3897_v42 = vpop.permute.xlu0 %3896  ;;  %v4204_v11 = vld [vmem:[#allocation5] sm:$0xff]  ;;  %v4206_v32 = vld [vmem:[#allocation5 + $0x10] sm:$0xff] }
 0x2aa   :  { %v1132_v40 = vsel %vm6084_vm11, %v3894_v28, %v3804_v48  ;;  %v3899_v43 = vunpack.i.h.bf16 %v3897_v42  ;;  %v3898_v47 = vunpack.i.l.bf16 %v3897_v42  ;;  %vm6086_vm11 = vmmov %vm6085_vm10  ;;  %vm6090_vm15 = vcmask 392192   ;;  %v1786_v42 = vld [vmem:[#allocation9 + $0x8] sm:$0xff] }
 0x2ab   :  { %v3260_v30 = vpack.c.bf16 %v1132_v40, %v1131_v60  ;;  %3259 = vmatprep.subr.msk.bf16.mxu1 %vm4908_vm0, %v3257_v0  ;;  %vm6087_vm9 = vmmov %vm6085_vm10  ;;  %v4207_v60 = vld [vmem:[#allocation5 + $0x18] sm:$0xff]  ;;  %1949 = vmatprep.mubr.f32.mxu0 %v1786_v42 }
 0x2ac   :  { %1330 = vmatmul.mubr.f32.vlgmr.msra.gmra.mrb[0].mxu1 %v1165_v3  ;;  %v1149_v26 = vsel %vm6085_vm10, %v3808_v4, %v3898_v47  ;;  %v1150_v49 = vsel %vm6086_vm11, %v3809_v1, %v3899_v43  ;;  %v1151_v50 = vsel %vm6087_vm9, %v3898_v47, %v3808_v4  ;;  %vm6088_vm1 = vmmov %vm6087_vm9  ;;  %v1868_v47 = vld [vmem:[%s5825_s7 + $0x8] sm:$0xff]  ;;  %vm1477_vm11 = vcmp.ge.s32.totalorder %v4524_v18, 120 }
 0x2ad   :  { %v1152_v53 = vsel %vm6088_vm1, %v3899_v43, %v3809_v1  ;;  %3262 = vmatpush1.bf16.msk.msra.mxu1 %vm4929_vm4, %v3260_v30  ;;  %v3263_v55 = vpack.c.bf16 %v1150_v49, %v1149_v26  ;;  %1335 = vmatprep.mubr.f32.mxu1 %v1169_v15  ;;  %vm6091_vm10 = vmmov %vm6090_vm15  ;;  %v1867_v43 = vld [vmem:[%s5825_s7] sm:$0xff]  ;;  %vm1476_vm9 = vcmp.ge.s32.totalorder %v4526_v19, 120  ;;  %vm5882_vm1 = vcmp.lt.s32.totalorder %v4522_v17, 112 }
 0x2ae   :  { %v3266_v51 = vpack.c.bf16 %v1152_v53, %v1151_v50 }
 0x2af   :  { %3265 = vmatprep.subr.msk.bf16.mxu1 %vm4936_vm2, %v3263_v55  ;;  %vm5881_vm2 = vcmp.lt.s32.totalorder %v4522_v17, 120 }
 0x2b0   :  { %1336 = vmatmul.mubr.f32.gmra.mrb[2].mxu1 %v1168_v54 }
 0x2b1   :  { %3268 = vmatpush1.bf16.msk.msra.mxu1 %vm6089_vm12, %v3266_v51  ;;  %1406 = vmatprep.mubr.f32.mxu1 %v4327_v37  ;;  %vm1499_vm12 = vcmp.ge.s32.totalorder %v4526_v19, 112 }
 0x2b2   :  { %3270 = vmatprep.subr.bf16.mxu1 %v4972_v14 }
 0x2b5   :  { %3272 = vmatpush1.bf16.msra.mxu1 %v4974_v22 }
 0x2b6   :  { %3373 = vmatprep.subr.bf16.mxu1 %v4328_v23 }
 0x2b8   :  { %2779 = vmatmul.mubr.msk.f32.vlgmr.msra.gmra.mrb[0].mxu1 %vm6090_vm15, %v1167_v33  ;;  %vm5297_vm15 = vmpackc.low %vm1477_vm11, %vm1477_vm11  ;;  %vm1522_vm11 = vcmp.ge.s32.totalorder %v4526_v19, 104 }
 0x2b9   :  { %1412 = vmatprep.mubr.f32.mxu1 %v4327_v37  ;;  %3374 = vmatpush1.bf16.msra.mxu1 %v4328_v23  ;;  %v1252_v31 = vpop.permute.xlu1 %1251 }
 0x2ba   :  { %3375 = vmatprep.subr.bf16.mxu1 %v4328_v23  ;;  %v1257_v46 = vpop.permute.xlu0 %1256 }
 0x2bc   :  { %2780 = vmatmul.mubr.msk.f32.gmra.mrb[2].mxu1 %vm6091_vm10, %v1170_v62  ;;  %vm5301_vm10 = vmpackc.low %vm1476_vm9, %vm1476_vm9  ;;  %vm6096_vm9 = vcmp.ge.s32.totalorder %v4524_v18, 112 }
 0x2bd   :  { %3376 = vmatpush1.bf16.msra.mxu1 %v4328_v23 }
 0x2be   :  { %3377 = vmatprep.subr.bf16.mxu1 %v4328_v23 }
 0x2c1   :  { %3378 = vmatpush1.bf16.msra.mxu1 %v4328_v23 }
 0x38b   :  { %v1408_v14 = vpop.f32.mrb[0].mxu1 }
 0x38c   :  { %v3477_v22 = vadd.f32 %v1408_v14, %v1252_v31  ;;  %v1410_v38 = vpop.f32.mrb[1].mxu1 }
 0x38d   :  { %v3478_v5 = vadd.f32 %v1410_v38, %v1252_v31  ;;  %v6092_v31 = vmov 0 }
 0x38e   :  { %v1419_v20 = vmax.f32 %v3477_v22, 0.0  ;;  %v6093_v31 = vsel %vm5297_vm15, 4294967295, %v6092_v31 }
 0x38f   :  { %v1420_v6 = vmax.f32 %v3478_v5, 0.0  ;;  %v1414_v52 = vpop.f32.mrb[2].mxu1 }
 0x390   :  { %v3479_v8 = vadd.f32 %v1414_v52, %v1257_v46  ;;  %v1416_v61 = vpop.f32.mrb[3].mxu1  ;;  %v1435_v48 = vadd.f32 %v4204_v11, %v1419_v20 }
 0x391   :  { %v3480_v10 = vadd.f32 %v1416_v61, %v1257_v46  ;;  %v1436_v28 = vadd.f32 %v4205_v29, %v1420_v6  ;;  %v6094_v46 = vmov 0 }
 0x392   :  { %v1421_v24 = vmax.f32 %v3479_v8, 0.0  ;;  %v5236_v2 = vmax.f32 %v1435_v48, 0.0  ;;  %v6095_v46 = vsel %vm5301_vm10, 4294967295, %v6094_v46 }
 0x393   :  { %v1422_v56 = vmax.f32 %v3480_v10, 0.0  ;;  %v5240_v0 = vmax.f32 %v1436_v28, 0.0 }
 0x394   :  { %v1437_v36 = vadd.f32 %v4206_v32, %v1421_v24  ;;  %v6097_v24 = vmov 0 }
 0x395   :  { %v1438_v40 = vadd.f32 %v4207_v60, %v1422_v56  ;;  %v6099_v60 = vmov 0 }
 0x396   :  { %v5238_v3 = vmax.f32 %v1437_v36, 0.0 }
 0x397   :  { %v5242_v30 = vmax.f32 %v1438_v40, 0.0 }
 0x398   :  { %v3900_v1 = vpack.i.bf16 %v5238_v3, %v5236_v2 }
 0x399   :  { %v3975_v4 = vpack.i.bf16 %v5242_v30, %v5240_v0 }
 0x39a   :  { %3901 = vrot.lane.b32.xlu1 %v3900_v1, %s4329_s5 }
 0x39b   :  { %3976 = vrot.lane.b32.xlu0 %v3975_v4, %s4329_s5 }
 0x39e   :  { %3906 = vrot.lane.b32.xlu1 %v3900_v1, %s4330_s13 }
 0x39f   :  { %3981 = vrot.lane.b32.xlu0 %v3975_v4, %s4330_s13 }
 0x3a2   :  { %3911 = vrot.lane.b32.xlu1 %v3900_v1, %s4331_s22 }
 0x3a3   :  { %3986 = vrot.lane.b32.xlu0 %v3975_v4, %s4331_s22 }
 0x3a6   :  { %3916 = vrot.lane.b32.xlu1 %v3900_v1, %s4332_s23 }
 0x3a7   :  { %3991 = vrot.lane.b32.xlu0 %v3975_v4, %s4332_s23 }
 0x3aa   :  { %3921 = vrot.lane.b32.xlu1 %v3900_v1, %s4333_s29 }
 0x3ab   :  { %3996 = vrot.lane.b32.xlu0 %v3975_v4, %s4333_s29 }
 0x3ae   :  { %3926 = vrot.lane.b32.xlu1 %v3900_v1, %s4334_s14 }
 0x3af   :  { %4001 = vrot.lane.b32.xlu0 %v3975_v4, %s4334_s14 }
 0x3b2   :  { %3931 = vrot.lane.b32.xlu1 %v3900_v1, %s4311_s10 }
 0x3b3   :  { %4006 = vrot.lane.b32.xlu0 %v3975_v4, %s4311_s10 }
 0x3b6   :  { %3936 = vrot.lane.b32.xlu1 %v3900_v1, %s4312_s4 }
 0x3b7   :  { %4011 = vrot.lane.b32.xlu0 %v3975_v4, %s4312_s4 }
 0x3ba   :  { %3941 = vrot.lane.b32.xlu1 %v3900_v1, %s4314_s16 }
 0x3bb   :  { %4016 = vrot.lane.b32.xlu0 %v3975_v4, %s4314_s16 }
 0x3be   :  { %3946 = vrot.lane.b32.xlu1 %v3900_v1, %s4316_s19 }
 0x3bf   :  { %4021 = vrot.lane.b32.xlu0 %v3975_v4, %s4316_s19 }
 0x3c2   :  { %3951 = vrot.lane.b32.xlu1 %v3900_v1, %s4318_s1 }
 0x3c3   :  { %4026 = vrot.lane.b32.xlu0 %v3975_v4, %s4318_s1 }
 0x3c6   :  { %3956 = vrot.lane.b32.xlu1 %v3900_v1, %s4320_s21 }
 0x3c7   :  { %4031 = vrot.lane.b32.xlu0 %v3975_v4, %s4320_s21 }
 0x3ca   :  { %3961 = vrot.lane.b32.xlu1 %v3900_v1, %s4304_s28 }
 0x3cb   :  { %4036 = vrot.lane.b32.xlu0 %v3975_v4, %s4304_s28 }
 0x3ce   :  { %3966 = vrot.lane.b32.xlu1 %v3900_v1, %s4307_s18 }
 0x3cf   :  { %4041 = vrot.lane.b32.xlu0 %v3975_v4, %s4307_s18 }
 0x3d2   :  { %3971 = vrot.lane.b32.xlu1 %v3900_v1, %s5993_s2 }
 0x3d3   :  { %4046 = vrot.lane.b32.xlu0 %v3975_v4, %s5993_s2 }
 0x3d6   :  { %1871 = vperm.xlu1 %3719, %v1867_v43  }
 0x3d7   :  { %1876 = vperm.xlu0 %3718, %v1868_v47  }
 0x40c   :  { %v3902_v15 = vpop.permute.xlu1 %3901 }
 0x40d   :  { %v3904_v26 = vunpack.i.h.bf16 %v3902_v15  ;;  %v3903_v49 = vunpack.i.l.bf16 %v3902_v15  ;;  %v3977_v50 = vpop.permute.xlu0 %3976 }
 0x40e   :  { %v3979_v53 = vunpack.i.h.bf16 %v3977_v50  ;;  %v3978_v54 = vunpack.i.l.bf16 %v3977_v50 }
 0x410   :  { %v1472_v55 = vsel %vm5881_vm2, %v3903_v49, %v3978_v54  ;;  %v1473_v51 = vsel %vm5881_vm2, %v3904_v26, %v3979_v53  ;;  %v1474_v33 = vsel %vm5881_vm2, %v3978_v54, %v3903_v49  ;;  %v1475_v62 = vsel %vm5881_vm2, %v3979_v53, %v3904_v26  ;;  %v3907_v23 = vpop.permute.xlu1 %3906  ;;  %vm5323_vm2 = vmpackc.low %vm6096_vm9, %vm6096_vm9 }
 0x411   :  { %v3279_v14 = vpack.c.bf16 %v1473_v51, %v1472_v55  ;;  %v3282_v22 = vpack.c.bf16 %v1475_v62, %v1474_v33  ;;  %v3909_v38 = vunpack.i.h.bf16 %v3907_v23  ;;  %v3908_v5 = vunpack.i.l.bf16 %v3907_v23  ;;  %v3982_v20 = vpop.permute.xlu0 %3981 }
 0x412   :  { %v3984_v6 = vunpack.i.h.bf16 %v3982_v20  ;;  %v3983_v52 = vunpack.i.l.bf16 %v3982_v20  ;;  %v6098_v24 = vsel %vm5323_vm2, 4294967295, %v6097_v24  ;;  %vm6105_vm9 = vcmp.ge.s32.totalorder %v4524_v18, 104 }
 0x413   :  { %3281 = vmatprep.subr.msk.bf16.mxu0 %vm5297_vm15, %v3279_v14  ;;  %vm6101_vm15 = vcmp.lt.s32.totalorder %v4522_v17, 104  ;;  %v6106_v26 = vmov 0  ;;  %v6108_v51 = vmov 0 }
 0x414   :  { %v1495_v8 = vsel %vm5882_vm1, %v3908_v5, %v3983_v52  ;;  %v1496_v61 = vsel %vm5882_vm1, %v3909_v38, %v3984_v6  ;;  %v1497_v10 = vsel %vm5882_vm1, %v3983_v52, %v3908_v5  ;;  %v1498_v11 = vsel %vm5882_vm1, %v3984_v6, %v3909_v38  ;;  %v3912_v48 = vpop.permute.xlu1 %3911  ;;  %3284 = vmatpush1.bf16.msk.msra.mxu0 %vm5301_vm10, %v3282_v22  ;;  %vm5330_vm1 = vmpackc.low %vm1499_vm12, %vm1499_vm12 }
 0x415   :  { %v3285_v29 = vpack.c.bf16 %v1496_v61, %v1495_v8  ;;  %v3288_v28 = vpack.c.bf16 %v1498_v11, %v1497_v10  ;;  %v3914_v56 = vunpack.i.h.bf16 %v3912_v48  ;;  %v3913_v32 = vunpack.i.l.bf16 %v3912_v48  ;;  %v3987_v36 = vpop.permute.xlu0 %3986  ;;  %vm6102_vm4 = vmmov %vm6101_vm15 }
 0x416   :  { %v6100_v60 = vsel %vm5330_vm1, 4294967295, %v6099_v60  ;;  %v3989_v40 = vunpack.i.h.bf16 %v3987_v36  ;;  %v3988_v1 = vunpack.i.l.bf16 %v3987_v36  ;;  %vm6103_vm12 = vmmov %vm6102_vm4  ;;  %v6117_v11 = vmov 0 }
 0x417   :  { %3287 = vmatprep.subr.msk.bf16.mxu0 %vm5323_vm2, %v3285_v29  ;;  %vm6104_vm0 = vmmov %vm6102_vm4 }
 0x418   :  { %v1518_v4 = vsel %vm6101_vm15, %v3913_v32, %v3988_v1  ;;  %v1519_v42 = vsel %vm6102_vm4, %v3914_v56, %v3989_v40  ;;  %v1520_v43 = vsel %vm6103_vm12, %v3988_v1, %v3913_v32  ;;  %v1521_v47 = vsel %vm6104_vm0, %v3989_v40, %v3914_v56  ;;  %v3917_v15 = vpop.permute.xlu1 %3916  ;;  %3290 = vmatpush1.bf16.msk.msra.mxu0 %vm5330_vm1, %v3288_v28  ;;  %vm5352_vm10 = vmpackc.low %vm6105_vm9, %vm6105_vm9 }
 0x419   :  { %v6107_v26 = vsel %vm5352_vm10, 4294967295, %v6106_v26  ;;  %v3291_v49 = vpack.c.bf16 %v1519_v42, %v1518_v4  ;;  %v3294_v50 = vpack.c.bf16 %v1521_v47, %v1520_v43  ;;  %v3919_v53 = vunpack.i.h.bf16 %v3917_v15  ;;  %v3992_v55 = vpop.permute.xlu0 %3991  ;;  %vm5359_vm0 = vmpackc.low %vm1522_vm11, %vm1522_vm11 }
 0x41a   :  { %v3918_v54 = vunpack.i.l.bf16 %v3917_v15  ;;  %v6109_v51 = vsel %vm5359_vm0, 4294967295, %v6108_v51  ;;  %v3994_v33 = vunpack.i.h.bf16 %v3992_v55  ;;  %v3993_v62 = vunpack.i.l.bf16 %v3992_v55 }
 0x41b   :  { %vm1545_vm4 = vcmp.ge.s32.totalorder %v4526_v19, 96  ;;  %3293 = vmatprep.subr.msk.bf16.mxu0 %vm5352_vm10, %v3291_v49  ;;  %vm6110_vm12 = vcmp.lt.s32.totalorder %v4522_v17, 96  ;;  %vm6114_vm15 = vcmp.ge.s32.totalorder %v4524_v18, 96  ;;  %v6124_v1 = vmov 0 }
 0x41c   :  { %v1541_v23 = vsel %vm6110_vm12, %v3918_v54, %v3993_v62  ;;  %vm6111_vm1 = vmmov %vm6110_vm12  ;;  %v3922_v5 = vpop.permute.xlu1 %3921  ;;  %3296 = vmatpush1.bf16.msk.msra.mxu0 %vm5359_vm0, %v3294_v50 }
 0x41d   :  { %v1542_v14 = vsel %vm6111_vm1, %v3919_v53, %v3994_v33  ;;  %vm6112_vm11 = vmmov %vm6111_vm1  ;;  %v3924_v8 = vunpack.i.h.bf16 %v3922_v5  ;;  %v3923_v61 = vunpack.i.l.bf16 %v3922_v5  ;;  %v3997_v10 = vpop.permute.xlu0 %3996 }
 0x41e   :  { %v1543_v22 = vsel %vm6112_vm11, %v3993_v62, %v3918_v54  ;;  %vm6113_vm2 = vmmov %vm6111_vm1  ;;  %v3297_v6 = vpack.c.bf16 %v1542_v14, %v1541_v23  ;;  %v3999_v48 = vunpack.i.h.bf16 %v3997_v10  ;;  %v3998_v29 = vunpack.i.l.bf16 %v3997_v10 }
 0x41f   :  { %v1544_v38 = vsel %vm6113_vm2, %v3994_v33, %v3919_v53  ;;  %vm5381_vm9 = vmpackc.low %vm6114_vm15, %vm6114_vm15  ;;  %vm1568_vm1 = vcmp.ge.s32.totalorder %v4526_v19, 88  ;;  %vm6119_vm11 = vcmp.lt.s32.totalorder %v4522_v17, 88  ;;  %vm6123_vm15 = vcmp.ge.s32.totalorder %v4524_v18, 88 }
 0x420   :  { %v3300_v52 = vpack.c.bf16 %v1544_v38, %v1543_v22  ;;  %vm5388_vm2 = vmpackc.low %vm1545_vm4, %vm1545_vm4  ;;  %3299 = vmatprep.subr.msk.bf16.mxu0 %vm5381_vm9, %v3297_v6  ;;  %v1564_v28 = vsel %vm6119_vm11, %v3923_v61, %v3998_v29  ;;  %v3927_v40 = vpop.permute.xlu1 %3926 }
 0x421   :  { %v6118_v11 = vsel %vm5388_vm2, 4294967295, %v6117_v11  ;;  %vm6120_vm0 = vmmov %vm6119_vm11  ;;  %v3929_v43 = vunpack.i.h.bf16 %v3927_v40  ;;  %v3928_v47 = vunpack.i.l.bf16 %v3927_v40  ;;  %v4002_v15 = vpop.permute.xlu0 %4001 }
 0x422   :  { %v1565_v56 = vsel %vm6120_vm0, %v3924_v8, %v3999_v48  ;;  %vm6121_vm4 = vmmov %vm6120_vm0  ;;  %3302 = vmatpush1.bf16.msk.msra.mxu0 %vm5388_vm2, %v3300_v52  ;;  %v4004_v50 = vunpack.i.h.bf16 %v4002_v15  ;;  %v4003_v53 = vunpack.i.l.bf16 %v4002_v15  ;;  %vm6132_vm2 = vcmp.ge.s32.totalorder %v4524_v18, 80 }
 0x423   :  { %v1566_v32 = vsel %vm6121_vm4, %v3998_v29, %v3923_v61  ;;  %vm6122_vm10 = vmmov %vm6120_vm0  ;;  %v3303_v4 = vpack.c.bf16 %v1565_v56, %v1564_v28  ;;  %vm1591_vm0 = vcmp.ge.s32.totalorder %v4526_v19, 80 }
 0x424   :  { %v1567_v36 = vsel %vm6122_vm10, %v3999_v48, %v3924_v8  ;;  %vm5410_vm12 = vmpackc.low %vm6123_vm15, %vm6123_vm15  ;;  %vm6128_vm15 = vcmp.lt.s32.totalorder %v4522_v17, 80  ;;  %v3932_v23 = vpop.permute.xlu1 %3931 }
 0x425   :  { %v6125_v1 = vsel %vm5410_vm12, 4294967295, %v6124_v1  ;;  %v3306_v42 = vpack.c.bf16 %v1567_v36, %v1566_v32  ;;  %vm5417_vm10 = vmpackc.low %vm1568_vm1, %vm1568_vm1  ;;  %3305 = vmatprep.subr.msk.bf16.mxu0 %vm5410_vm12, %v3303_v4  ;;  %v1587_v54 = vsel %vm6128_vm15, %v3928_v47, %v4003_v53  ;;  %v3934_v38 = vunpack.i.h.bf16 %v3932_v23  ;;  %v4007_v6 = vpop.permute.xlu0 %4006 }
 0x426   :  { %vm6129_vm11 = vmmov %vm6128_vm15  ;;  %v3933_v5 = vunpack.i.l.bf16 %v3932_v23  ;;  %v4009_v8 = vunpack.i.h.bf16 %v4007_v6  ;;  %v4008_v61 = vunpack.i.l.bf16 %v4007_v6 }
 0x427   :  { %v1588_v55 = vsel %vm6129_vm11, %v3929_v43, %v4004_v50  ;;  %vm6130_vm4 = vmmov %vm6129_vm11  ;;  %3308 = vmatpush1.bf16.msk.msra.mxu0 %vm5417_vm10, %v3306_v42  ;;  %vm6137_vm11 = vcmp.lt.s32.totalorder %v4522_v17, 72 }
 0x428   :  { %v1589_v33 = vsel %vm6130_vm4, %v4003_v53, %v3928_v47  ;;  %vm6131_vm1 = vmmov %vm6130_vm4  ;;  %v3309_v14 = vpack.c.bf16 %v1588_v55, %v1587_v54  ;;  %v1609_v18 = vsel %vm6137_vm11, %v3933_v5, %v4008_v61  ;;  %v3937_v28 = vpop.permute.xlu1 %3936 }
 0x429   :  { %v1590_v62 = vsel %vm6131_vm1, %v4004_v50, %v3929_v43  ;;  %vm5437_vm12 = vmpackc.low %vm6132_vm2, %vm6132_vm2  ;;  %v3939_v36 = vunpack.i.h.bf16 %v3937_v28  ;;  %v3938_v40 = vunpack.i.l.bf16 %v3937_v28  ;;  %v4012_v4 = vpop.permute.xlu0 %4011 }
 0x42a   :  { %v3312_v22 = vpack.c.bf16 %v1590_v62, %v1589_v33  ;;  %vm5441_vm15 = vmpackc.low %vm1591_vm0, %vm1591_vm0  ;;  %3311 = vmatprep.subr.msk.bf16.mxu0 %vm5437_vm12, %v3309_v14  ;;  %v4014_v42 = vunpack.i.h.bf16 %v4012_v4  ;;  %v4013_v43 = vunpack.i.l.bf16 %v4012_v4  ;;  %vm6141_vm0 = vcmp.lt.s32.totalorder %v4522_v17, 64 }
 0x42b   :  { %vm6138_vm2 = vmmov %vm6137_vm11 }
 0x42c   :  { %v1610_v10 = vsel %vm6138_vm2, %v3934_v38, %v4009_v8  ;;  %vm6139_vm4 = vmmov %vm6138_vm2  ;;  %3314 = vmatpush1.bf16.msk.msra.mxu0 %vm5441_vm15, %v3312_v22  ;;  %v1629_v47 = vsel %vm6141_vm0, %v3938_v40, %v4013_v43  ;;  %v3942_v54 = vpop.permute.xlu1 %3941 }
 0x42d   :  { %v1611_v48 = vsel %vm6139_vm4, %v4008_v61, %v3933_v5  ;;  %vm6140_vm1 = vmmov %vm6138_vm2  ;;  %v3315_v56 = vpack.c.bf16 %v1610_v10, %v1609_v18  ;;  %v3944_v62 = vunpack.i.h.bf16 %v3942_v54  ;;  %v3943_v23 = vunpack.i.l.bf16 %v3942_v54  ;;  %v4017_v14 = vpop.permute.xlu0 %4016 }
 0x42e   :  { %v1612_v29 = vsel %vm6140_vm1, %v4009_v8, %v3934_v38  ;;  %vm6142_vm11 = vmmov %vm6141_vm0  ;;  %v4019_v22 = vunpack.i.h.bf16 %v4017_v14  ;;  %v4018_v38 = vunpack.i.l.bf16 %v4017_v14  ;;  %vm6145_vm1 = vcmp.lt.s32.totalorder %v4522_v17, 56 }
 0x42f   :  { %v3318_v32 = vpack.c.bf16 %v1612_v29, %v1611_v48  ;;  %3317 = vmatprep.subr.msk.bf16.mxu0 %vm4542_vm6, %v3315_v56  ;;  %v1630_v15 = vsel %vm6142_vm11, %v3939_v36, %v4014_v42  ;;  %vm6143_vm2 = vmmov %vm6141_vm0 }
 0x430   :  { %v1631_v50 = vsel %vm6143_vm2, %v4013_v43, %v3938_v40  ;;  %vm6144_vm4 = vmmov %vm6141_vm0  ;;  %v3321_v55 = vpack.c.bf16 %v1630_v15, %v1629_v47  ;;  %v1649_v5 = vsel %vm6145_vm1, %v3943_v23, %v4018_v38  ;;  %v3947_v18 = vpop.permute.xlu1 %3946 }
 0x431   :  { %v1632_v53 = vsel %vm6144_vm4, %v4014_v42, %v3939_v36  ;;  %3320 = vmatpush1.bf16.msk.msra.mxu0 %vm4550_vm7, %v3318_v32  ;;  %vm6146_vm0 = vmmov %vm6145_vm1  ;;  %v3949_v29 = vunpack.i.h.bf16 %v3947_v18  ;;  %v3948_v28 = vunpack.i.l.bf16 %v3947_v18  ;;  %v4022_v56 = vpop.permute.xlu0 %4021  ;;  %vm6149_vm4 = vcmp.lt.s32.totalorder %v4522_v17, 48 }
 0x432   :  { %v3324_v33 = vpack.c.bf16 %v1632_v53, %v1631_v50  ;;  %3323 = vmatprep.subr.msk.bf16.mxu0 %vm4586_vm13, %v3321_v55  ;;  %v1650_v6 = vsel %vm6146_vm0, %v3944_v62, %v4019_v22  ;;  %vm6147_vm11 = vmmov %vm6146_vm0  ;;  %v4024_v32 = vunpack.i.h.bf16 %v4022_v56  ;;  %v4023_v36 = vunpack.i.l.bf16 %v4022_v56 }
 0x433   :  { %v1651_v8 = vsel %vm6147_vm11, %v4018_v38, %v3943_v23  ;;  %vm6148_vm2 = vmmov %vm6146_vm0  ;;  %v3327_v10 = vpack.c.bf16 %v1650_v6, %v1649_v5 }
 0x434   :  { %v1652_v61 = vsel %vm6148_vm2, %v4019_v22, %v3944_v62  ;;  %v1669_v40 = vsel %vm6149_vm4, %v3948_v28, %v4023_v36  ;;  %vm6150_vm1 = vmmov %vm6149_vm4  ;;  %v3952_v47 = vpop.permute.xlu1 %3951  ;;  %vm6153_vm2 = vnez %v5916_v45  ;;  %vm6154_vm4 = vnez %v5922_v7 }
 0x435   :  { %3326 = vmatpush1.bf16.msk.msra.mxu0 %vm4605_vm3, %v3324_v33  ;;  %v3330_v48 = vpack.c.bf16 %v1652_v61, %v1651_v8  ;;  %v1670_v4 = vsel %vm6150_vm1, %v3949_v29, %v4024_v32  ;;  %vm6151_vm0 = vmmov %vm6150_vm1  ;;  %v3954_v53 = vunpack.i.h.bf16 %v3952_v47  ;;  %v3953_v54 = vunpack.i.l.bf16 %v3952_v47  ;;  %v4027_v55 = vpop.permute.xlu0 %4026 }
 0x436   :  { %3329 = vmatprep.subr.msk.bf16.mxu0 %vm6015_vm5, %v3327_v10  ;;  %v1671_v42 = vsel %vm6151_vm0, %v4023_v36, %v3948_v28  ;;  %vm6152_vm11 = vmmov %vm6151_vm0  ;;  %v3333_v15 = vpack.c.bf16 %v1670_v4, %v1669_v40  ;;  %v4029_v33 = vunpack.i.h.bf16 %v4027_v55  ;;  %v4028_v62 = vunpack.i.l.bf16 %v4027_v55 }
 0x437   :  { %v1672_v43 = vsel %vm6152_vm11, %v4024_v32, %v3949_v29  ;;  %vm6155_vm1 = vcmp.lt.s32.totalorder %v4522_v17, 40  ;;  %vm6159_vm5 = vnez %v5928_v21 }
 0x438   :  { %v3336_v50 = vpack.c.bf16 %v1672_v43, %v1671_v42  ;;  %v1689_v23 = vsel %vm6155_vm1, %v3953_v54, %v4028_v62  ;;  %vm6156_vm0 = vmmov %vm6155_vm1  ;;  %v3957_v5 = vpop.permute.xlu1 %3956  ;;  %vm6160_vm1 = vnez %v5934_v44 }
 0x439   :  { %3332 = vmatpush1.bf16.msk.msra.mxu0 %vm6153_vm2, %v3330_v48  ;;  %v1690_v14 = vsel %vm6156_vm0, %v3954_v53, %v4029_v33  ;;  %vm6157_vm11 = vmmov %vm6156_vm0  ;;  %v3959_v61 = vunpack.i.h.bf16 %v3957_v5  ;;  %v3958_v18 = vunpack.i.l.bf16 %v3957_v5  ;;  %v4032_v10 = vpop.permute.xlu0 %4031 }
 0x43a   :  { %3335 = vmatprep.subr.msk.bf16.mxu0 %vm6154_vm4, %v3333_v15  ;;  %v1691_v22 = vsel %vm6157_vm11, %v4028_v62, %v3953_v54  ;;  %vm6158_vm2 = vmmov %vm6156_vm0  ;;  %v3339_v6 = vpack.c.bf16 %v1690_v14, %v1689_v23  ;;  %v4034_v48 = vunpack.i.h.bf16 %v4032_v10  ;;  %v4033_v29 = vunpack.i.l.bf16 %v4032_v10 }
 0x43b   :  { %v1692_v38 = vsel %vm6158_vm2, %v4029_v33, %v3954_v53  ;;  %vm6161_vm0 = vcmp.lt.s32.totalorder %v4522_v17, 32  ;;  %vm6165_vm4 = vnez %v5940_v57 }
 0x43c   :  { %v3342_v8 = vpack.c.bf16 %v1692_v38, %v1691_v22  ;;  %v1709_v28 = vsel %vm6161_vm0, %v3958_v18, %v4033_v29  ;;  %vm6162_vm11 = vmmov %vm6161_vm0  ;;  %v3962_v40 = vpop.permute.xlu1 %3961 }
 0x43d   :  { %3338 = vmatpush1.bf16.msk.msra.mxu0 %vm6159_vm5, %v3336_v50  ;;  %v1710_v56 = vsel %vm6162_vm11, %v3959_v61, %v4034_v48  ;;  %vm6163_vm2 = vmmov %vm6161_vm0  ;;  %v3964_v43 = vunpack.i.h.bf16 %v3962_v40  ;;  %v3963_v47 = vunpack.i.l.bf16 %v3962_v40  ;;  %v4037_v15 = vpop.permute.xlu0 %4036  ;;  %vm6167_vm11 = vcmp.lt.s32.totalorder %v4522_v17, 24 }
 0x43e   :  { %3341 = vmatprep.subr.msk.bf16.mxu0 %vm6160_vm1, %v3339_v6  ;;  %v1711_v32 = vsel %vm6163_vm2, %v4033_v29, %v3958_v18  ;;  %vm6164_vm5 = vmmov %vm6161_vm0  ;;  %v3345_v4 = vpack.c.bf16 %v1710_v56, %v1709_v28  ;;  %v4039_v50 = vunpack.i.h.bf16 %v4037_v15  ;;  %v4038_v53 = vunpack.i.l.bf16 %v4037_v15  ;;  %v1785_v56 = vld [vmem:[#allocation9] sm:$0xff] }
 0x43f   :  { %v1712_v36 = vsel %vm6164_vm5, %v4034_v48, %v3959_v61  ;;  %vm6166_vm0 = vnez %v5946_v25  ;;  %vm6168_vm2 = vmmov %vm6167_vm11  ;;  %vm6171_vm1 = vnez %v5952_v39  ;;  %v1789_v15 = vld [vmem:[#allocation9 + $0x20] sm:$0xff] }
 0x440   :  { %v3348_v42 = vpack.c.bf16 %v1712_v36, %v1711_v32  ;;  %v1729_v54 = vsel %vm6167_vm11, %v3963_v47, %v4038_v53  ;;  %v1730_v55 = vsel %vm6168_vm2, %v3964_v43, %v4039_v50  ;;  %vm6169_vm5 = vmmov %vm6168_vm2  ;;  %v3967_v23 = vpop.permute.xlu1 %3966  ;;  %vm6172_vm11 = vcmp.lt.s32.totalorder %v4522_v17, 16 }
 0x441   :  { %3344 = vmatpush1.bf16.msk.msra.mxu0 %vm6165_vm4, %v3342_v8  ;;  %v1731_v33 = vsel %vm6169_vm5, %v4038_v53, %v3963_v47  ;;  %vm6170_vm4 = vmmov %vm6168_vm2  ;;  %v3351_v14 = vpack.c.bf16 %v1730_v55, %v1729_v54  ;;  %v3969_v38 = vunpack.i.h.bf16 %v3967_v23  ;;  %v3968_v5 = vunpack.i.l.bf16 %v3967_v23  ;;  %v4042_v6 = vpop.permute.xlu0 %4041 }
 0x442   :  { %3347 = vmatprep.subr.msk.bf16.mxu0 %vm6166_vm0, %v3345_v4  ;;  %v1732_v62 = vsel %vm6170_vm4, %v4039_v50, %v3964_v43  ;;  %v4044_v8 = vunpack.i.h.bf16 %v4042_v6  ;;  %v4043_v61 = vunpack.i.l.bf16 %v4042_v6  ;;  %vm6173_vm2 = vmmov %vm6172_vm11 }
 0x443   :  { %v3354_v22 = vpack.c.bf16 %v1732_v62, %v1731_v33  ;;  %vm6174_vm4 = vmmov %vm6173_vm2  ;;  %v1788_v33 = vld [vmem:[#allocation9 + $0x18] sm:$0xff] }
 0x444   :  { %v1749_v18 = vsel %vm6172_vm11, %v3968_v5, %v4043_v61  ;;  %v1750_v10 = vsel %vm6173_vm2, %v3969_v38, %v4044_v8  ;;  %v1751_v48 = vsel %vm6174_vm4, %v4043_v61, %v3968_v5  ;;  %vm6175_vm5 = vmmov %vm6173_vm2  ;;  %v3972_v28 = vpop.permute.xlu1 %3971  ;;  %vm6177_vm11 = vcmp.lt.s32.totalorder %v4522_v17, 8  ;;  %v1790_v5 = vld [vmem:[#allocation9 + $0x28] sm:$0xff] }
 0x445   :  { %3350 = vmatpush1.bf16.msk.msra.mxu0 %vm6171_vm1, %v3348_v42  ;;  %v1752_v29 = vsel %vm6175_vm5, %v4044_v8, %v3969_v38  ;;  %vm6176_vm1 = vnez %v5964_v27  ;;  %v3357_v32 = vpack.c.bf16 %v1750_v10, %v1749_v18  ;;  %v3974_v40 = vunpack.i.h.bf16 %v3972_v28  ;;  %v4047_v42 = vpop.permute.xlu0 %4046  ;;  %vm6178_vm2 = vmmov %vm6177_vm11  ;;  %v1787_v38 = vld [vmem:[#allocation9 + $0x10] sm:$0xff] }
 0x446   :  { %3353 = vmatprep.subr.msk.bf16.mxu0 %vm6063_vm14, %v3351_v14  ;;  %v3360_v36 = vpack.c.bf16 %v1752_v29, %v1751_v48  ;;  %v3973_v4 = vunpack.i.l.bf16 %v3972_v28  ;;  %v4049_v43 = vunpack.i.h.bf16 %v4047_v42  ;;  %v4048_v47 = vunpack.i.l.bf16 %v4047_v42  ;;  %vm6179_vm4 = vmmov %vm6178_vm2 }
 0x447   :  { %vm6180_vm5 = vmmov %vm6178_vm2  ;;  %v3369_v14 = vpack.c.bf16 %v5242_v30, %v5240_v0 }
 0x448   :  { %v1769_v50 = vsel %vm6177_vm11, %v3973_v4, %v4048_v47  ;;  %v1770_v53 = vsel %vm6178_vm2, %v3974_v40, %v4049_v43  ;;  %v1771_v54 = vsel %vm6179_vm4, %v4048_v47, %v3973_v4  ;;  %v1772_v55 = vsel %vm6180_vm5, %v4049_v43, %v3974_v40 }
 0x449   :  { %3356 = vmatpush1.bf16.msk.msra.mxu0 %vm6176_vm1, %v3354_v22  ;;  %vm6181_vm1 = vnez %v5976_v16  ;;  %v3363_v62 = vpack.c.bf16 %v1770_v53, %v1769_v50  ;;  %v3366_v23 = vpack.c.bf16 %v1772_v55, %v1771_v54  ;;  %vm6183_vm11 = vnez %v5988_v13  ;;  %v2368_v53 = vld [vmem:[%s5826_s8 + $0x8] sm:$0xff]  ;;  %v2449_v54 = vld [vmem:[%s5827_s9] sm:$0xff] }
 0x44a   :  { %3359 = vmatprep.subr.msk.bf16.mxu0 %vm6074_vm8, %v3357_v32  ;;  %vm6182_vm8 = vnez %v5982_v58  ;;  %v3371_v22 = vpack.c.bf16 %v5238_v3, %v5236_v2  ;;  %vm6184_vm2 = vcmask 392192   ;;  %2531 = vmatprep.mubr.f32.mxu1 %v2368_v53  ;;  %v2450_v55 = vld [vmem:[%s5827_s9 + $0x8] sm:$0xff]  ;;  %vm6186_vm5 = vcmp.lt.s32.totalorder %v4522_v17, 120 }
 0x44b   :  { %vm6185_vm4 = vmmov %vm6184_vm2 }
 0x44c   :  { %1950 = vmatmul.mubr.f32.vlgmr.msra.gmra.mrb[4].mxu0 %v1785_v56 }
 0x44d   :  { %3362 = vmatpush1.bf16.msk.msra.mxu0 %vm6181_vm1, %v3360_v36  ;;  %1955 = vmatprep.mubr.f32.mxu0 %v1789_v15  ;;  %vm6195_vm1 = vnez %v6095_v46 }
 0x44e   :  { %3365 = vmatprep.subr.msk.bf16.mxu0 %vm6182_vm8, %v3363_v62  ;;  %vm6190_vm8 = vnez %v6093_v31 }
 0x450   :  { %1956 = vmatmul.mubr.f32.gmra.mrb[6].mxu0 %v1788_v33 }
 0x451   :  { %3368 = vmatpush1.bf16.msk.msra.mxu0 %vm6183_vm11, %v3366_v23  ;;  %2026 = vmatprep.mubr.f32.mxu0 %v4327_v37 }
 0x452   :  { %3370 = vmatprep.subr.bf16.mxu0 %v3369_v14 }
 0x455   :  { %3372 = vmatpush1.bf16.msra.mxu0 %v3371_v22  ;;  %v1872_v61 = vpop.permute.xlu1 %1871 }
 0x456   :  { %v1877_v10 = vpop.permute.xlu0 %1876 }
 0x458   :  { %2781 = vmatmul.mubr.msk.f32.vlgmr.msra.gmra.mrb[4].mxu0 %vm6184_vm2, %v1787_v38  ;;  %vm6187_vm2 = vmmov %vm6186_vm5 }
 0x459   :  { %2032 = vmatprep.mubr.f32.mxu0 %v4327_v37  ;;  %vm6189_vm11 = vmmov %vm6187_vm2 }
 0x45c   :  { %2782 = vmatmul.mubr.msk.f32.gmra.mrb[6].mxu0 %vm6185_vm4, %v1790_v5  ;;  %vm6188_vm4 = vmmov %vm6187_vm2 }
 0x52b   :  { %v2028_v6 = vpop.f32.mrb[4].mxu0 }
 0x52c   :  { %v2030_v8 = vpop.f32.mrb[5].mxu0  ;;  %v3481_v18 = vadd.f32 %v2028_v6, %v1872_v61 }
 0x52d   :  { %v3482_v48 = vadd.f32 %v2030_v8, %v1872_v61 }
 0x52e   :  { %v2039_v36 = vmax.f32 %v3481_v18, 0.0 }
 0x52f   :  { %v2034_v29 = vpop.f32.mrb[6].mxu0  ;;  %v2040_v4 = vmax.f32 %v3482_v48, 0.0 }
 0x530   :  { %v3483_v28 = vadd.f32 %v2034_v29, %v1877_v10  ;;  %v2036_v56 = vpop.f32.mrb[7].mxu0 }
 0x531   :  { %v3484_v32 = vadd.f32 %v2036_v56, %v1877_v10 }
 0x532   :  { %v2041_v40 = vmax.f32 %v3483_v28, 0.0 }
 0x533   :  { %v2042_v42 = vmax.f32 %v3484_v32, 0.0 }
 0x534   :  { %v4050_v43 = vpack.i.bf16 %v2041_v40, %v2039_v36  ;;  %v5571_v50 = vpack.c.bf16 %v2041_v40, %v2039_v36 }
 0x535   :  { %v4125_v47 = vpack.i.bf16 %v2042_v42, %v2040_v4  ;;  %v5569_v15 = vpack.c.bf16 %v2042_v42, %v2040_v4 }
 0x536   :  { %4051 = vrot.lane.b32.xlu1 %v4050_v43, %s4329_s5 }
 0x537   :  { %4126 = vrot.lane.b32.xlu0 %v4125_v47, %s4329_s5 }
 0x53a   :  { %4056 = vrot.lane.b32.xlu1 %v4050_v43, %s4330_s13 }
 0x53b   :  { %4131 = vrot.lane.b32.xlu0 %v4125_v47, %s4330_s13 }
 0x53e   :  { %4061 = vrot.lane.b32.xlu1 %v4050_v43, %s4331_s22 }
 0x53f   :  { %4136 = vrot.lane.b32.xlu0 %v4125_v47, %s4331_s22 }
 0x542   :  { %4066 = vrot.lane.b32.xlu1 %v4050_v43, %s4332_s23 }
 0x543   :  { %4141 = vrot.lane.b32.xlu0 %v4125_v47, %s4332_s23 }
 0x546   :  { %4071 = vrot.lane.b32.xlu1 %v4050_v43, %s4333_s29 }
 0x547   :  { %4146 = vrot.lane.b32.xlu0 %v4125_v47, %s4333_s29 }
 0x54a   :  { %4076 = vrot.lane.b32.xlu1 %v4050_v43, %s4334_s14 }
 0x54b   :  { %4151 = vrot.lane.b32.xlu0 %v4125_v47, %s4334_s14 }
 0x54e   :  { %4081 = vrot.lane.b32.xlu1 %v4050_v43, %s4311_s10 }
 0x54f   :  { %4156 = vrot.lane.b32.xlu0 %v4125_v47, %s4311_s10 }
 0x552   :  { %4086 = vrot.lane.b32.xlu1 %v4050_v43, %s4312_s4 }
 0x553   :  { %4161 = vrot.lane.b32.xlu0 %v4125_v47, %s4312_s4 }
 0x556   :  { %4091 = vrot.lane.b32.xlu1 %v4050_v43, %s4314_s16 }
 0x557   :  { %4166 = vrot.lane.b32.xlu0 %v4125_v47, %s4314_s16 }
 0x55a   :  { %4096 = vrot.lane.b32.xlu1 %v4050_v43, %s4316_s19 }
 0x55b   :  { %4171 = vrot.lane.b32.xlu0 %v4125_v47, %s4316_s19 }
 0x55e   :  { %4101 = vrot.lane.b32.xlu1 %v4050_v43, %s4318_s1 }
 0x55f   :  { %4176 = vrot.lane.b32.xlu0 %v4125_v47, %s4318_s1 }
 0x562   :  { %4106 = vrot.lane.b32.xlu1 %v4050_v43, %s4320_s21 }
 0x563   :  { %4181 = vrot.lane.b32.xlu0 %v4125_v47, %s4320_s21 }
 0x566   :  { %4111 = vrot.lane.b32.xlu1 %v4050_v43, %s4304_s28 }
 0x567   :  { %4186 = vrot.lane.b32.xlu0 %v4125_v47, %s4304_s28 }
 0x56a   :  { %4116 = vrot.lane.b32.xlu1 %v4050_v43, %s4307_s18 }
 0x56b   :  { %4191 = vrot.lane.b32.xlu0 %v4125_v47, %s4307_s18 }
 0x56e   :  { %4121 = vrot.lane.b32.xlu1 %v4050_v43, %s5993_s2 }
 0x56f   :  { %4196 = vrot.lane.b32.xlu0 %v4125_v47, %s5993_s2 }
 0x572   :  { %2453 = vperm.xlu1 %3719, %v2449_v54  }
 0x573   :  { %2458 = vperm.xlu0 %3718, %v2450_v55  }
 0x5a8   :  { %v4052_v33 = vpop.permute.xlu1 %4051 }
 0x5a9   :  { %v4054_v62 = vunpack.i.h.bf16 %v4052_v33  ;;  %v4053_v23 = vunpack.i.l.bf16 %v4052_v33  ;;  %v4127_v14 = vpop.permute.xlu0 %4126 }
 0x5aa   :  { %v4129_v22 = vunpack.i.h.bf16 %v4127_v14  ;;  %v4128_v38 = vunpack.i.l.bf16 %v4127_v14 }
 0x5ac   :  { %v2071_v5 = vsel %vm6186_vm5, %v4053_v23, %v4128_v38  ;;  %v2072_v6 = vsel %vm6187_vm2, %v4054_v62, %v4129_v22  ;;  %v2073_v8 = vsel %vm6188_vm4, %v4128_v38, %v4053_v23  ;;  %v2074_v61 = vsel %vm6189_vm11, %v4129_v22, %v4054_v62  ;;  %v4057_v18 = vpop.permute.xlu1 %4056 }
 0x5ad   :  { %v3379_v10 = vpack.c.bf16 %v2072_v6, %v2071_v5  ;;  %v3382_v48 = vpack.c.bf16 %v2074_v61, %v2073_v8  ;;  %v4059_v29 = vunpack.i.h.bf16 %v4057_v18  ;;  %v4058_v28 = vunpack.i.l.bf16 %v4057_v18  ;;  %v4132_v56 = vpop.permute.xlu0 %4131 }
 0x5ae   :  { %v4134_v32 = vunpack.i.h.bf16 %v4132_v56  ;;  %v4133_v36 = vunpack.i.l.bf16 %v4132_v56  ;;  %vm6191_vm5 = vcmp.lt.s32.totalorder %v4522_v17, 112 }
 0x5af   :  { %3381 = vmatprep.subr.msk.bf16.mxu1 %vm6190_vm8, %v3379_v10  ;;  %vm6192_vm2 = vmmov %vm6191_vm5  ;;  %vm6196_vm8 = vnez %v6098_v24 }
 0x5b0   :  { %v2091_v40 = vsel %vm6191_vm5, %v4058_v28, %v4133_v36  ;;  %v2092_v4 = vsel %vm6192_vm2, %v4059_v29, %v4134_v32  ;;  %vm6193_vm4 = vmmov %vm6192_vm2  ;;  %v4062_v47 = vpop.permute.xlu1 %4061  ;;  %3384 = vmatpush1.bf16.msk.msra.mxu1 %vm6195_vm1, %v3382_v48  ;;  %vm6197_vm5 = vcmp.lt.s32.totalorder %v4522_v17, 104 }
 0x5b1   :  { %v2093_v42 = vsel %vm6193_vm4, %v4133_v36, %v4058_v28  ;;  %vm6194_vm11 = vmmov %vm6192_vm2  ;;  %v3385_v53 = vpack.c.bf16 %v2092_v4, %v2091_v40  ;;  %v4064_v31 = vunpack.i.h.bf16 %v4062_v47  ;;  %v4063_v55 = vunpack.i.l.bf16 %v4062_v47  ;;  %v4137_v33 = vpop.permute.xlu0 %4136 }
 0x5b2   :  { %v2094_v43 = vsel %vm6194_vm11, %v4134_v32, %v4059_v29  ;;  %v4139_v62 = vunpack.i.h.bf16 %v4137_v33  ;;  %v4138_v23 = vunpack.i.l.bf16 %v4137_v33  ;;  %vm6198_vm2 = vmmov %vm6197_vm5  ;;  %vm6201_vm11 = vnez %v6100_v60 }
 0x5b3   :  { %v3388_v54 = vpack.c.bf16 %v2094_v43, %v2093_v42  ;;  %3387 = vmatprep.subr.msk.bf16.mxu1 %vm6196_vm8, %v3385_v53  ;;  %vm6199_vm4 = vmmov %vm6198_vm2  ;;  %vm6202_vm8 = vnez %v6107_v26 }
 0x5b4   :  { %v2111_v14 = vsel %vm6197_vm5, %v4063_v55, %v4138_v23  ;;  %v2112_v22 = vsel %vm6198_vm2, %v4064_v31, %v4139_v62  ;;  %v2113_v46 = vsel %vm6199_vm4, %v4138_v23, %v4063_v55  ;;  %vm6200_vm1 = vmmov %vm6198_vm2  ;;  %v4067_v5 = vpop.permute.xlu1 %4066  ;;  %vm6203_vm5 = vcmp.lt.s32.totalorder %v4522_v17, 96 }
 0x5b5   :  { %v2114_v38 = vsel %vm6200_vm1, %v4139_v62, %v4064_v31  ;;  %3390 = vmatpush1.bf16.msk.msra.mxu1 %vm6201_vm11, %v3388_v54  ;;  %v3391_v6 = vpack.c.bf16 %v2112_v22, %v2111_v14  ;;  %v4069_v24 = vunpack.i.h.bf16 %v4067_v5  ;;  %v4068_v61 = vunpack.i.l.bf16 %v4067_v5  ;;  %v4142_v18 = vpop.permute.xlu0 %4141  ;;  %vm6204_vm2 = vmmov %vm6203_vm5 }
 0x5b6   :  { %v3394_v8 = vpack.c.bf16 %v2114_v38, %v2113_v46  ;;  %v4144_v10 = vunpack.i.h.bf16 %v4142_v18  ;;  %v4143_v48 = vunpack.i.l.bf16 %v4142_v18  ;;  %vm6205_vm4 = vmmov %vm6204_vm2  ;;  %vm6207_vm11 = vnez %v6109_v51 }
 0x5b7   :  { %3393 = vmatprep.subr.msk.bf16.mxu1 %vm6202_vm8, %v3391_v6  ;;  %vm6206_vm1 = vmmov %vm6204_vm2  ;;  %vm6208_vm8 = vcmp.lt.s32.totalorder %v4522_v17, 88 }
 0x5b8   :  { %v2131_v29 = vsel %vm6203_vm5, %v4068_v61, %v4143_v48  ;;  %v2132_v28 = vsel %vm6204_vm2, %v4069_v24, %v4144_v10  ;;  %v2133_v60 = vsel %vm6205_vm4, %v4143_v48, %v4068_v61  ;;  %v2134_v56 = vsel %vm6206_vm1, %v4144_v10, %v4069_v24  ;;  %v4072_v32 = vpop.permute.xlu1 %4071  ;;  %vm6209_vm5 = vmmov %vm6208_vm8 }
 0x5b9   :  { %3396 = vmatpush1.bf16.msk.msra.mxu1 %vm6207_vm11, %v3394_v8  ;;  %v3397_v36 = vpack.c.bf16 %v2132_v28, %v2131_v29  ;;  %v3400_v40 = vpack.c.bf16 %v2134_v56, %v2133_v60  ;;  %v4074_v26 = vunpack.i.h.bf16 %v4072_v32  ;;  %v4073_v4 = vunpack.i.l.bf16 %v4072_v32  ;;  %v4147_v42 = vpop.permute.xlu0 %4146  ;;  %vm6210_vm2 = vmmov %vm6209_vm5 }
 0x5ba   :  { %v4149_v43 = vunpack.i.h.bf16 %v4147_v42  ;;  %v4148_v47 = vunpack.i.l.bf16 %v4147_v42  ;;  %vm6211_vm4 = vmmov %vm6210_vm2  ;;  %vm6212_vm1 = vnez %v6118_v11  ;;  %vm6214_vm11 = vcmp.lt.s32.totalorder %v4522_v17, 80 }
 0x5bb   :  { %3399 = vmatprep.subr.msk.bf16.mxu1 %vm5381_vm9, %v3397_v36  ;;  %vm6213_vm9 = vnez %v6125_v1 }
 0x5bc   :  { %v2151_v53 = vsel %vm6208_vm8, %v4073_v4, %v4148_v47  ;;  %v2152_v54 = vsel %vm6209_vm5, %v4074_v26, %v4149_v43  ;;  %v2153_v51 = vsel %vm6210_vm2, %v4148_v47, %v4073_v4  ;;  %v2154_v31 = vsel %vm6211_vm4, %v4149_v43, %v4074_v26  ;;  %v4077_v55 = vpop.permute.xlu1 %4076  ;;  %vm6215_vm8 = vmmov %vm6214_vm11 }
 0x5bd   :  { %3402 = vmatpush1.bf16.msk.msra.mxu1 %vm6212_vm1, %v3400_v40  ;;  %v3403_v33 = vpack.c.bf16 %v2152_v54, %v2151_v53  ;;  %v3406_v62 = vpack.c.bf16 %v2154_v31, %v2153_v51  ;;  %v4079_v20 = vunpack.i.h.bf16 %v4077_v55  ;;  %v4078_v23 = vunpack.i.l.bf16 %v4077_v55  ;;  %v4152_v14 = vpop.permute.xlu0 %4151  ;;  %vm6216_vm5 = vmmov %vm6215_vm8 }
 0x5be   :  { %v4154_v22 = vunpack.i.h.bf16 %v4152_v14  ;;  %v4153_v46 = vunpack.i.l.bf16 %v4152_v14  ;;  %vm6217_vm2 = vmmov %vm6216_vm5  ;;  %vm6218_vm4 = vcmp.lt.s32.totalorder %v4522_v17, 72 }
 0x5bf   :  { %3405 = vmatprep.subr.msk.bf16.mxu1 %vm6213_vm9, %v3403_v33  ;;  %vm6219_vm1 = vmmov %vm6218_vm4 }
 0x5c0   :  { %v2171_v38 = vsel %vm6214_vm11, %v4078_v23, %v4153_v46  ;;  %v2172_v5 = vsel %vm6215_vm8, %v4079_v20, %v4154_v22  ;;  %v2173_v11 = vsel %vm6216_vm5, %v4153_v46, %v4078_v23  ;;  %v2174_v6 = vsel %vm6217_vm2, %v4154_v22, %v4079_v20  ;;  %v4082_v8 = vpop.permute.xlu1 %4081  ;;  %vm6220_vm9 = vmmov %vm6219_vm1 }
 0x5c1   :  { %3408 = vmatpush1.bf16.msk.msra.mxu1 %vm5417_vm10, %v3406_v62  ;;  %v3409_v24 = vpack.c.bf16 %v2172_v5, %v2171_v38  ;;  %v3412_v61 = vpack.c.bf16 %v2174_v6, %v2173_v11  ;;  %v4084_v1 = vunpack.i.h.bf16 %v4082_v8  ;;  %v4083_v18 = vunpack.i.l.bf16 %v4082_v8  ;;  %v4157_v10 = vpop.permute.xlu0 %4156  ;;  %vm6221_vm10 = vmmov %vm6219_vm1 }
 0x5c2   :  { %v4159_v48 = vunpack.i.h.bf16 %v4157_v10  ;;  %v4158_v29 = vunpack.i.l.bf16 %v4157_v10 }
 0x5c3   :  { %3411 = vmatprep.subr.msk.bf16.mxu1 %vm5437_vm12, %v3409_v24  ;;  %vm6222_vm12 = vcmp.lt.s32.totalorder %v4522_v17, 64 }
 0x5c4   :  { %v2191_v28 = vsel %vm6218_vm4, %v4083_v18, %v4158_v29  ;;  %v2192_v60 = vsel %vm6219_vm1, %v4084_v1, %v4159_v48  ;;  %v2193_v49 = vsel %vm6220_vm9, %v4158_v29, %v4083_v18  ;;  %v2194_v56 = vsel %vm6221_vm10, %v4159_v48, %v4084_v1  ;;  %v4087_v32 = vpop.permute.xlu1 %4086  ;;  %vm6223_vm11 = vmmov %vm6222_vm12 }
 0x5c5   :  { %3414 = vmatpush1.bf16.msk.msra.mxu1 %vm5441_vm15, %v3412_v61  ;;  %v3415_v36 = vpack.c.bf16 %v2192_v60, %v2191_v28  ;;  %v3418_v40 = vpack.c.bf16 %v2194_v56, %v2193_v49  ;;  %v4089_v19 = vunpack.i.h.bf16 %v4087_v32  ;;  %v4088_v26 = vunpack.i.l.bf16 %v4087_v32  ;;  %v4162_v4 = vpop.permute.xlu0 %4161  ;;  %vm6224_vm8 = vmmov %vm6223_vm11 }
 0x5c6   :  { %v4164_v42 = vunpack.i.h.bf16 %v4162_v4  ;;  %v4163_v43 = vunpack.i.l.bf16 %v4162_v4  ;;  %vm6225_vm15 = vmmov %vm6224_vm8  ;;  %vm6231_vm4 = vcmp.lt.s32.totalorder %v4522_v17, 48  ;;  %vm6235_vm10 = vnez %v5916_v45 }
 0x5c7   :  { %3417 = vmatprep.subr.msk.bf16.mxu1 %vm4542_vm6, %v3415_v36  ;;  %vm6226_vm6 = vcmp.lt.s32.totalorder %v4522_v17, 56  ;;  %vm6232_vm1 = vmmov %vm6231_vm4 }
 0x5c8   :  { %v2211_v47 = vsel %vm6222_vm12, %v4088_v26, %v4163_v43  ;;  %v2212_v53 = vsel %vm6223_vm11, %v4089_v19, %v4164_v42  ;;  %v2213_v52 = vsel %vm6224_vm8, %v4163_v43, %v4088_v26  ;;  %v2214_v54 = vsel %vm6225_vm15, %v4164_v42, %v4089_v19  ;;  %v4092_v51 = vpop.permute.xlu1 %4091  ;;  %vm6227_vm5 = vmmov %vm6226_vm6 }
 0x5c9   :  { %3420 = vmatpush1.bf16.msk.msra.mxu1 %vm4550_vm7, %v3418_v40  ;;  %v3421_v31 = vpack.c.bf16 %v2212_v53, %v2211_v47  ;;  %v3424_v55 = vpack.c.bf16 %v2214_v54, %v2213_v52  ;;  %v4094_v34 = vunpack.i.h.bf16 %v4092_v51  ;;  %v4093_v33 = vunpack.i.l.bf16 %v4092_v51  ;;  %v4167_v62 = vpop.permute.xlu0 %4166  ;;  %vm6228_vm2 = vmmov %vm6227_vm5 }
 0x5ca   :  { %v4169_v20 = vunpack.i.h.bf16 %v4167_v62  ;;  %v4168_v23 = vunpack.i.l.bf16 %v4167_v62  ;;  %vm6229_vm7 = vmmov %vm6228_vm2  ;;  %vm6236_vm12 = vnez %v5922_v7  ;;  %vm6237_vm11 = vcmp.lt.s32.totalorder %v4522_v17, 40 }
 0x5cb   :  { %3423 = vmatprep.subr.msk.bf16.mxu1 %vm4586_vm13, %v3421_v31  ;;  %vm6230_vm13 = vnez %v5914_v35  ;;  %vm6233_vm9 = vmmov %vm6232_vm1 }
 0x5cc   :  { %v2231_v14 = vsel %vm6226_vm6, %v4093_v33, %v4168_v23  ;;  %v2232_v22 = vsel %vm6227_vm5, %v4094_v34, %v4169_v20  ;;  %v2233_v41 = vsel %vm6228_vm2, %v4168_v23, %v4093_v33  ;;  %v2234_v46 = vsel %vm6229_vm7, %v4169_v20, %v4094_v34  ;;  %v4097_v38 = vpop.permute.xlu1 %4096  ;;  %vm6238_vm8 = vmmov %vm6237_vm11 }
 0x5cd   :  { %3426 = vmatpush1.bf16.msk.msra.mxu1 %vm4605_vm3, %v3424_v55  ;;  %v3427_v5 = vpack.c.bf16 %v2232_v22, %v2231_v14  ;;  %v3430_v11 = vpack.c.bf16 %v2234_v46, %v2233_v41  ;;  %v4099_v63 = vunpack.i.h.bf16 %v4097_v38  ;;  %v4098_v6 = vunpack.i.l.bf16 %v4097_v38  ;;  %v4172_v8 = vpop.permute.xlu0 %4171  ;;  %vm6234_vm3 = vmmov %vm6232_vm1 }
 0x5ce   :  { %v4174_v24 = vunpack.i.h.bf16 %v4172_v8  ;;  %v4173_v61 = vunpack.i.l.bf16 %v4172_v8  ;;  %vm6239_vm15 = vmmov %vm6238_vm8  ;;  %vm6241_vm5 = vnez %v5928_v21  ;;  %vm6242_vm2 = vnez %v5934_v44 }
 0x5cf   :  { %3429 = vmatprep.subr.msk.bf16.mxu1 %vm6230_vm13, %v3427_v5  ;;  %vm6240_vm6 = vmmov %vm6238_vm8  ;;  %vm6243_vm7 = vcmp.lt.s32.totalorder %v4522_v17, 32 }
 0x5d0   :  { %v2251_v1 = vsel %vm6231_vm4, %v4098_v6, %v4173_v61  ;;  %v2252_v18 = vsel %vm6232_vm1, %v4099_v63, %v4174_v24  ;;  %v2253_v12 = vsel %vm6233_vm9, %v4173_v61, %v4098_v6  ;;  %v2254_v10 = vsel %vm6234_vm3, %v4174_v24, %v4099_v63  ;;  %v4102_v48 = vpop.permute.xlu1 %4101  ;;  %vm6244_vm13 = vmmov %vm6243_vm7 }
 0x5d1   :  { %3432 = vmatpush1.bf16.msk.msra.mxu1 %vm6235_vm10, %v3430_v11  ;;  %v3433_v29 = vpack.c.bf16 %v2252_v18, %v2251_v1  ;;  %v3436_v28 = vpack.c.bf16 %v2254_v10, %v2253_v12  ;;  %v4104_v35 = vunpack.i.h.bf16 %v4102_v48  ;;  %v4103_v60 = vunpack.i.l.bf16 %v4102_v48  ;;  %v4177_v49 = vpop.permute.xlu0 %4176  ;;  %vm6245_vm4 = vmmov %vm6243_vm7 }
 0x5d2   :  { %v4179_v56 = vunpack.i.h.bf16 %v4177_v49  ;;  %v4178_v32 = vunpack.i.l.bf16 %v4177_v49  ;;  %vm6246_vm1 = vmmov %vm6245_vm4  ;;  %vm6247_vm9 = vnez %v5940_v57  ;;  %vm6248_vm3 = vcmp.lt.s32.totalorder %v4522_v17, 24 }
 0x5d3   :  { %3435 = vmatprep.subr.msk.bf16.mxu1 %vm6236_vm12, %v3433_v29  ;;  %vm6249_vm10 = vmmov %vm6248_vm3 }
 0x5d4   :  { %v2271_v36 = vsel %vm6237_vm11, %v4103_v60, %v4178_v32  ;;  %v2272_v40 = vsel %vm6238_vm8, %v4104_v35, %v4179_v56  ;;  %v2273_v45 = vsel %vm6239_vm15, %v4178_v32, %v4103_v60  ;;  %v2274_v19 = vsel %vm6240_vm6, %v4179_v56, %v4104_v35  ;;  %v4107_v26 = vpop.permute.xlu1 %4106  ;;  %vm6250_vm12 = vmmov %vm6248_vm3  ;;  %v2371_v56 = vld [vmem:[%s5826_s8 + $0x20] sm:$0xff] }
 0x5d5   :  { %3438 = vmatpush1.bf16.msk.msra.mxu1 %vm6241_vm5, %v3436_v28  ;;  %v3439_v4 = vpack.c.bf16 %v2272_v40, %v2271_v36  ;;  %v3442_v42 = vpack.c.bf16 %v2274_v19, %v2273_v45  ;;  %v4109_v7 = vunpack.i.h.bf16 %v4107_v26  ;;  %v4108_v43 = vunpack.i.l.bf16 %v4107_v26  ;;  %v4182_v47 = vpop.permute.xlu0 %4181  ;;  %vm6251_vm11 = vmmov %vm6248_vm3 }
 0x5d6   :  { %v4184_v53 = vunpack.i.h.bf16 %v4182_v47  ;;  %v4183_v52 = vunpack.i.l.bf16 %v4182_v47  ;;  %vm6252_vm8 = vnez %v5952_v39 }
 0x5d7   :  { %3441 = vmatprep.subr.msk.bf16.mxu1 %vm6242_vm2, %v3439_v4  ;;  %vm6257_vm2 = vnez %v5964_v27 }
 0x5d8   :  { %v2291_v54 = vsel %vm6243_vm7, %v4108_v43, %v4183_v52  ;;  %v2292_v51 = vsel %vm6244_vm13, %v4109_v7, %v4184_v53  ;;  %v2293_v21 = vsel %vm6245_vm4, %v4183_v52, %v4108_v43  ;;  %v2294_v31 = vsel %vm6246_vm1, %v4184_v53, %v4109_v7  ;;  %v4112_v55 = vpop.permute.xlu1 %4111 }
 0x5d9   :  { %3444 = vmatpush1.bf16.msk.msra.mxu1 %vm6247_vm9, %v3442_v42  ;;  %v3445_v34 = vpack.c.bf16 %v2292_v51, %v2291_v54  ;;  %v3448_v33 = vpack.c.bf16 %v2294_v31, %v2293_v21  ;;  %v4114_v44 = vunpack.i.h.bf16 %v4112_v55  ;;  %v4113_v62 = vunpack.i.l.bf16 %v4112_v55  ;;  %v4187_v20 = vpop.permute.xlu0 %4186  ;;  %v2653_v31 = vld [vmem:[#allocation10] sm:$0xff] }
 0x5da   :  { %v4189_v23 = vunpack.i.h.bf16 %v4187_v20  ;;  %v4188_v14 = vunpack.i.l.bf16 %v4187_v20  ;;  %vm6259_vm7 = vcmp.lt.s32.totalorder %v4522_v17, 8  ;;  %vm6263_vm9 = vnez %v5976_v16  ;;  %v2372_v16 = vld [vmem:[%s5826_s8 + $0x28] sm:$0xff] }
 0x5db   :  { %3447 = vmatprep.subr.msk.bf16.mxu1 %vm6166_vm0, %v3445_v34  ;;  %vm6253_vm0 = vcmp.lt.s32.totalorder %v4522_v17, 16  ;;  %vm6260_vm13 = vmmov %vm6259_vm7  ;;  %v2369_v17 = vld [vmem:[%s5826_s8 + $0x10] sm:$0xff]  ;;  %v2676_v34 = vld [vmem:[#allocation10 + $0x20] sm:$0xff] }
 0x5dc   :  { %v2311_v22 = vsel %vm6248_vm3, %v4113_v62, %v4188_v14  ;;  %v2312_v41 = vsel %vm6249_vm10, %v4114_v44, %v4189_v23  ;;  %v2313_v57 = vsel %vm6250_vm12, %v4188_v14, %v4113_v62  ;;  %v2314_v46 = vsel %vm6251_vm11, %v4189_v23, %v4114_v44  ;;  %v4117_v38 = vpop.permute.xlu1 %4116  ;;  %vm6254_vm15 = vmmov %vm6253_vm0  ;;  %v2722_v44 = vld [vmem:[#allocation10 + $0x60] sm:$0xff]  ;;  %v2654_v20 = vld [vmem:[#allocation10 + $0x8] sm:$0xff] }
 0x5dd   :  { %3450 = vmatpush1.bf16.msk.msra.mxu1 %vm6252_vm8, %v3448_v33  ;;  %v3451_v5 = vpack.c.bf16 %v2312_v41, %v2311_v22  ;;  %v3454_v11 = vpack.c.bf16 %v2314_v46, %v2313_v57  ;;  %v4119_v25 = vunpack.i.h.bf16 %v4117_v38  ;;  %v4118_v63 = vunpack.i.l.bf16 %v4117_v38  ;;  %v4192_v6 = vpop.permute.xlu0 %4191  ;;  %vm6255_vm6 = vmmov %vm6253_vm0  ;;  %v2699_v33 = vld [vmem:[#allocation10 + $0x40] sm:$0xff]  ;;  %v2677_v23 = vld [vmem:[#allocation10 + $0x28] sm:$0xff] }
 0x5de   :  { %v4194_v8 = vunpack.i.h.bf16 %v4192_v6  ;;  %v4193_v24 = vunpack.i.l.bf16 %v4192_v6  ;;  %vm6256_vm5 = vmmov %vm6253_vm0  ;;  %vm6264_vm3 = vnez %v5982_v58  ;;  %vm6265_vm10 = vnez %v5988_v13  ;;  %v2700_v14 = vld [vmem:[#allocation10 + $0x48] sm:$0xff]  ;;  %v2678_v57 = vld [vmem:[#allocation10 + $0x30] sm:$0xff] }
 0x5df   :  { %3453 = vmatprep.subr.msk.bf16.mxu1 %vm6063_vm14, %v3451_v5  ;;  %vm6258_vm14 = vnez %v5970_v59  ;;  %vm6261_vm4 = vmmov %vm6259_vm7  ;;  %v2370_v59 = vld [vmem:[%s5826_s8 + $0x18] sm:$0xff]  ;;  %vm6266_vm12 = vcmask 392192   ;;  %v2723_v22 = vld [vmem:[#allocation10 + $0x68] sm:$0xff]  ;;  %vm2744_vm8 = vcmask 1040384  }
 0x5e0   :  { %v2331_v61 = vsel %vm6253_vm0, %v4118_v63, %v4193_v24  ;;  %v2332_v1 = vsel %vm6254_vm15, %v4119_v25, %v4194_v8  ;;  %v2333_v39 = vsel %vm6255_vm6, %v4193_v24, %v4118_v63  ;;  %v2334_v18 = vsel %vm6256_vm5, %v4194_v8, %v4119_v25  ;;  %v4122_v12 = vpop.permute.xlu1 %4121  ;;  %vm6262_vm1 = vmmov %vm6261_vm4  ;;  %v2701_v5 = vld [vmem:[#allocation10 + $0x50] sm:$0xff]  ;;  %v2656_v25 = vld [vmem:[#allocation10 + $0x18] sm:$0xff] }
 0x5e1   :  { %3456 = vmatpush1.bf16.msk.msra.mxu1 %vm6257_vm2, %v3454_v11  ;;  %v3457_v10 = vpack.c.bf16 %v2332_v1, %v2331_v61  ;;  %v3460_v48 = vpack.c.bf16 %v2334_v18, %v2333_v39  ;;  %v4124_v29 = vunpack.i.h.bf16 %v4122_v12  ;;  %v4123_v28 = vunpack.i.l.bf16 %v4122_v12  ;;  %v4197_v35 = vpop.permute.xlu0 %4196  ;;  %vm6267_vm11 = vmmov %vm6266_vm12  ;;  %v2724_v11 = vld [vmem:[#allocation10 + $0x70] sm:$0xff]  ;;  %v2679_v61 = vld [vmem:[#allocation10 + $0x38] sm:$0xff] }
 0x5e2   :  { %v4199_v60 = vunpack.i.h.bf16 %v4197_v35  ;;  %v4198_v49 = vunpack.i.l.bf16 %v4197_v35  ;;  %v2702_v1 = vld [vmem:[#allocation10 + $0x58] sm:$0xff]  ;;  %vm2747_vm0 = vcmask 1041408   ;;  %vm2750_vm15 = vcmask 1042432  }
 0x5e3   :  { %3459 = vmatprep.subr.msk.bf16.mxu1 %vm6258_vm14, %v3457_v10  ;;  %v2725_v39 = vld [vmem:[#allocation10 + $0x78] sm:$0xff]  ;;  %vm2753_vm6 = vcmask 1043456   ;;  %vm2760_vm5 = vcmask 7168   ;;  %vm2768_vm2 = vcmask 11264  }
 0x5e4   :  { %2532 = vmatmul.mubr.f32.vlgmr.msra.gmra.mrb[4].mxu1 %v2367_v9  ;;  %v2351_v27 = vsel %vm6259_vm7, %v4123_v28, %v4198_v49  ;;  %v2352_v32 = vsel %vm6260_vm13, %v4124_v29, %v4199_v60  ;;  %v2353_v36 = vsel %vm6261_vm4, %v4198_v49, %v4123_v28  ;;  %v2354_v40 = vsel %vm6262_vm1, %v4199_v60, %v4124_v29 }
 0x5e5   :  { %3462 = vmatpush1.bf16.msk.msra.mxu1 %vm6263_vm9, %v3460_v48  ;;  %v3463_v45 = vpack.c.bf16 %v2352_v32, %v2351_v27  ;;  %v3466_v19 = vpack.c.bf16 %v2354_v40, %v2353_v36  ;;  %2537 = vmatprep.mubr.f32.mxu1 %v2371_v56 }
 0x5e7   :  { %3465 = vmatprep.subr.msk.bf16.mxu1 %vm6264_vm3, %v3463_v45 }
 0x5e8   :  { %2538 = vmatmul.mubr.f32.gmra.mrb[6].mxu1 %v2370_v59 }
 0x5e9   :  { %3468 = vmatpush1.bf16.msk.msra.mxu1 %vm6265_vm10, %v3466_v19  ;;  %2608 = vmatprep.mubr.f32.mxu1 %v4327_v37 }
 0x5ea   :  { %3470 = vmatprep.subr.bf16.mxu1 %v5569_v15 }
 0x5ed   :  { %3472 = vmatpush1.bf16.msra.mxu1 %v5571_v50 }
 0x5f0   :  { %2783 = vmatmul.mubr.msk.f32.vlgmr.msra.gmra.mrb[4].mxu1 %vm6266_vm12, %v2369_v17 }
 0x5f1   :  { %2614 = vmatprep.mubr.f32.mxu1 %v4327_v37  ;;  %v2454_v58 = vpop.permute.xlu1 %2453 }
 0x5f2   :  { %v2459_v42 = vpop.permute.xlu0 %2458 }
 0x5f4   :  { %2784 = vmatmul.mubr.msk.f32.gmra.mrb[6].mxu1 %vm6267_vm11, %v2372_v16 }
 0x6c3   :  { %v2610_v13 = vpop.f32.mrb[4].mxu1 }
 0x6c4   :  { %v3485_v26 = vadd.f32 %v2610_v13, %v2454_v58  ;;  %v2612_v15 = vpop.f32.mrb[5].mxu1 }
 0x6c5   :  { %v3486_v4 = vadd.f32 %v2612_v15, %v2454_v58 }
 0x6c6   :  { %v2621_v50 = vmax.f32 %v3485_v26, 0.0 }
 0x6c7   :  { %v2622_v7 = vmax.f32 %v3486_v4, 0.0  ;;  %v2616_v43 = vpop.f32.mrb[6].mxu1 }
 0x6c8   :  { %v2637_v47 = vadd.f32 %v2621_v50, %v5236_v2  ;;  %v3487_v53 = vadd.f32 %v2616_v43, %v2459_v42  ;;  %v2618_v52 = vpop.f32.mrb[7].mxu1  ;;  %v2655_v2 = vld [vmem:[#allocation10 + $0x10] sm:$0xff] }
 0x6c9   :  { %v2638_v37 = vadd.f32 %v2622_v7, %v5240_v0  ;;  %v3488_v54 = vadd.f32 %v2618_v52, %v2459_v42 }
 0x6ca   :  { %v2623_v51 = vmax.f32 %v3487_v53, 0.0  ;;  %v2641_v21 = vmax.f32 %v2637_v47, 0.0 }
 0x6cb   :  { %v2624_v55 = vmax.f32 %v3488_v54, 0.0  ;;  %v2642_v62 = vmax.f32 %v2638_v37, 0.0 }
 0x6cc   :  { %v2639_v41 = vadd.f32 %v2623_v51, %v5238_v3  ;;  %v2657_v0 = vmul.f32 %v2653_v31, %v2641_v21  ;;  %v2680_v38 = vmul.f32 %v2676_v34, %v2641_v21  ;;  %v2703_v63 = vmul.f32 %v2699_v33, %v2641_v21 }
 0x6cd   :  { %v2640_v46 = vadd.f32 %v2624_v55, %v5242_v30  ;;  %v2726_v6 = vmul.f32 %v2722_v44, %v2641_v21  ;;  %v2658_v18 = vmul.f32 %v2654_v20, %v2642_v62  ;;  %v2681_v12 = vmul.f32 %v2677_v23, %v2642_v62 }
 0x6ce   :  { %v2643_v8 = vmax.f32 %v2639_v41, 0.0  ;;  %v2704_v9 = vmul.f32 %v2700_v14, %v2642_v62  ;;  %v2727_v3 = vmul.f32 %v2723_v22, %v2642_v62 }
 0x6cf   :  { %v2644_v24 = vmax.f32 %v2640_v46, 0.0 }
 0x6d0   :  { %v2659_v10 = vmul.f32 %v2655_v2, %v2643_v8  ;;  %v2682_v48 = vmul.f32 %v2678_v57, %v2643_v8  ;;  %v2705_v29 = vmul.f32 %v2701_v5, %v2643_v8  ;;  %v2728_v30 = vmul.f32 %v2724_v11, %v2643_v8 }
 0x6d1   :  { %v2660_v28 = vmul.f32 %v2656_v25, %v2644_v24  ;;  %v2683_v35 = vmul.f32 %v2679_v61, %v2644_v24  ;;  %v2706_v60 = vmul.f32 %v2702_v1, %v2644_v24  ;;  %v2729_v49 = vmul.f32 %v2725_v39, %v2644_v24 }
 0x6d2   :  { %v2661_v56 = vadd.f32 %v2659_v10, %v2657_v0  ;;  %v2684_v27 = vadd.f32 %v2682_v48, %v2680_v38  ;;  %v2707_v32 = vadd.f32 %v2705_v29, %v2703_v63  ;;  %v2730_v36 = vadd.f32 %v2728_v30, %v2726_v6 }
 0x6d3   :  { %v2668_v40 = vadd.f32 %v2660_v28, %v2658_v18  ;;  %v2691_v59 = vadd.f32 %v2683_v35, %v2681_v12  ;;  %v2714_v45 = vadd.f32 %v2706_v60, %v2704_v9  ;;  %v2737_v19 = vadd.f32 %v2729_v49, %v2727_v3 }
 0x6d4   :  { %v2662_v17 = vrot.slane %v2661_v56, 4  ;;  %v2685_v16 = vrot.slane %v2684_v27, 4  ;;  %v2708_v58 = vrot.slane %v2707_v32, 4  ;;  %v2731_v13 = vrot.slane %v2730_v36, 4 }
 0x6d5   :  { %v2669_v26 = vrot.slane %v2668_v40, 4  ;;  %v2692_v15 = vrot.slane %v2691_v59, 4  ;;  %v2715_v4 = vrot.slane %v2714_v45, 4  ;;  %v2738_v50 = vrot.slane %v2737_v19, 4 }
 0x6d6   :  { %v2663_v42 = vadd.f32 %v2662_v17, %v2661_v56  ;;  %v2686_v7 = vadd.f32 %v2685_v16, %v2684_v27  ;;  %v2709_v43 = vadd.f32 %v2708_v58, %v2707_v32  ;;  %v2732_v47 = vadd.f32 %v2731_v13, %v2730_v36 }
 0x6d7   :  { %v2670_v53 = vadd.f32 %v2669_v26, %v2668_v40  ;;  %v2693_v52 = vadd.f32 %v2692_v15, %v2691_v59  ;;  %v2716_v37 = vadd.f32 %v2715_v4, %v2714_v45  ;;  %v2739_v54 = vadd.f32 %v2738_v50, %v2737_v19 }
 0x6d8   :  { %v2664_v51 = vrot.slane %v2663_v42, 2  ;;  %v2687_v21 = vrot.slane %v2686_v7, 2  ;;  %v2710_v31 = vrot.slane %v2709_v43, 2  ;;  %v2733_v55 = vrot.slane %v2732_v47, 2 }
 0x6d9   :  { %v2671_v34 = vrot.slane %v2670_v53, 2  ;;  %v2694_v33 = vrot.slane %v2693_v52, 2  ;;  %v2717_v44 = vrot.slane %v2716_v37, 2  ;;  %v2740_v62 = vrot.slane %v2739_v54, 2 }
 0x6da   :  { %v2665_v20 = vadd.f32 %v2664_v51, %v2663_v42  ;;  %v2688_v23 = vadd.f32 %v2687_v21, %v2686_v7  ;;  %v2711_v14 = vadd.f32 %v2710_v31, %v2709_v43  ;;  %v2734_v22 = vadd.f32 %v2733_v55, %v2732_v47 }
 0x6db   :  { %v2672_v41 = vadd.f32 %v2671_v34, %v2670_v53  ;;  %v2695_v2 = vadd.f32 %v2694_v33, %v2693_v52  ;;  %v2718_v57 = vadd.f32 %v2717_v44, %v2716_v37  ;;  %v2741_v46 = vadd.f32 %v2740_v62, %v2739_v54 }
 0x6dc   :  { %v2666_v0 = vrot.slane %v2665_v20, 1  ;;  %v2689_v38 = vrot.slane %v2688_v23, 1  ;;  %v2712_v5 = vrot.slane %v2711_v14, 1  ;;  %v2735_v11 = vrot.slane %v2734_v22, 1 }
 0x6dd   :  { %v2673_v25 = vrot.slane %v2672_v41, 1  ;;  %v2696_v63 = vrot.slane %v2695_v2, 1  ;;  %v2719_v6 = vrot.slane %v2718_v57, 1  ;;  %v2742_v8 = vrot.slane %v2741_v46, 1 }
 0x6de   :  { %v2667_v24 = vadd.f32 %v2666_v0, %v2665_v20  ;;  %v2690_v61 = vadd.f32 %v2689_v38, %v2688_v23  ;;  %v2713_v1 = vadd.f32 %v2712_v5, %v2711_v14  ;;  %v2736_v9 = vadd.f32 %v2735_v11, %v2734_v22 }
 0x6df   :  { %v2674_v39 = vadd.f32 %v2673_v25, %v2672_v41  ;;  %v2697_v18 = vadd.f32 %v2696_v63, %v2695_v2  ;;  %v2720_v12 = vadd.f32 %v2719_v6, %v2718_v57  ;;  %v2743_v48 = vadd.f32 %v2742_v8, %v2741_v46 }
 0x6e0   :  { %v2745_v3 = vsel %vm2744_vm8, %v2667_v24, %v2690_v61 }
 0x6e1   :  { %v2748_v10 = vsel %vm2747_vm0, %v2745_v3, %v2713_v1  ;;  %v2746_v29 = vsel %vm2744_vm8, %v2674_v39, %v2697_v18 }
 0x6e2   :  { %v2751_v30 = vsel %vm2750_vm15, %v2748_v10, %v2736_v9  ;;  %v2749_v28 = vsel %vm2747_vm0, %v2746_v29, %v2720_v12 }
 0x6e3   :  { %v2754_v35 = vsel %vm2753_vm6, %v2751_v30, 0.0  ;;  %v2752_v60 = vsel %vm2750_vm15, %v2749_v28, %v2743_v48 }
 0x6e4   :  { %2755 = vadd.xlane.f32.xlu1 %v2754_v35  ;;  %v2757_v49 = vsel %vm2753_vm6, %v2752_v60, 0.0 }
 0x6e5   :  { %2758 = vadd.xlane.f32.xlu0 %v2757_v49 }
 0x771   :  { %v2756_v56 = vpop.xlane.xlu1 %2755 }
 0x772   :  { %v2759_v27 = vpop.xlane.xlu0 %2758 }
 0x773   :  { %v2761_v32 = vsel %vm2760_vm5, %v2756_v56, %v2759_v27 }
 0x774   :  { %v2762_v36 = vsub.f32 0.0, %v2761_v32 }
 0x776   :  { %v2763_v40 = vmul.f32 1.442695, %v2762_v36 }
 0x778   :  { %4200 = vpow2.f32 %v2763_v40 }
 0x782   :  { %v4201_v59 = vpop.eup %4200 }
 0x783   :  { %v2765_v45 = vadd.f32 1.0, %v4201_v59 }
 0x785   :  { %4202 = vrcp.f32 %v2765_v45 }
 0x78f   :  { %v4203_v19 = vpop.eup %4202 }
 0x790   :  { %2769 = vst.msk [vmem:[%s5829_s11] sm:$0xf] %vm2768_vm2, %v4203_v19 }
 0x791   :  { %2774 = vsyncpa [#allocation6], 1 }
 0x792   :  { %2775 = vsyncpa [#allocation8], 1 }
 0x793   :  { %2776 = vsyncpa [#allocation11], 1 }

</bundles_post_ra>
